<compile_context>
chip_gen: v7x
topology: tpu7x:2x2x1
jax: 0.10.0
libtpu: 0.0.40
codegen_flags: <defaults>
</compile_context>

<pallas_src>
import jax
import jax.numpy as jnp
from jax.experimental import pallas as pl
from jax.experimental.pallas import tpu as pltpu

KH = KW = 5          # conv kernel size (both convs)
TK_FC = 8192         # K tile of the fused fc1+fc2 kernel


def _round_up(x, m):
    return (x + m - 1) // m * m


# ----------------------------------------------------------------------------
# Fused Conv2d(valid, stride 1, 5x5) + 2x2 max-pool (stride 2) + ReLU.
# Activations use (N, H, C, W): channels on sublanes, width on the 128 lanes.
# ----------------------------------------------------------------------------
def conv_pool_relu(x, w2d, b, *, cout):
    """x: (N, H, Cin, W) f32.  w2d: (Cout, KH*G), G = round_up(KW*Cin, 8), with
    w2d[co, kh*G + kw*Cin + ci] = torch_w[co, ci, kh, kw] and zero padding
    columns.  b: (Cout,).  Returns (N, Hp, Cout, Wp)."""
    N, H, cin, W = x.shape
    G = _round_up(KW * cin, 8)
    Ho, Wo = H - KH + 1, W - KW + 1
    Hp, Wp = Ho // 2, Wo // 2
    assert w2d.shape == (cout, KH * G)

    b2 = b.reshape(cout, 1).astype(jnp.float32)
    # 0/1 selection matrix: (m @ sel)[:, j] == m[:, 2*j].  Stride-2 W pooling as
    # an exact MXU matmul instead of a lane-strided slice (constant-folded).
    sel = (jnp.arange(W)[:, None] == 2 * jnp.arange(Wp)[None, :]).astype(jnp.float32)

    def kernel(x_ref, w_ref, b_ref, sel_ref, o_ref, patch_ref):
        # Pass 1: build the kw-expanded input once per image:
        #   patch_ref[r*G + kw*Cin + ci, w] = x[r, ci, (w + kw) mod W]
        @pl.loop(0, H)
        def _build(r):
            row = x_ref[0, pl.ds(r, 1), :, :][0]                       # (Cin, W)
            pieces = [row] + [pltpu.roll(row, W - k, axis=1) for k in range(1, KW)]
            if G > KW * cin:
                pieces.append(jnp.zeros((G - KW * cin, W), jnp.float32))
            blk = jnp.concatenate(pieces, axis=0)                      # (G, W)
            patch_ref[pl.ds(pl.multiple_of(r * G, 8), G), :] = blk

        # Pass 2: one pooled output row per iteration.
        @pl.loop(0, Hp)
        def _row(p):
            def conv_row(h):
                start = pl.multiple_of(h * G, 8)
                patch = patch_ref[pl.ds(start, KH * G), :]             # (KH*G, W)
                return jnp.dot(w_ref[...], patch,
                               preferred_element_type=jnp.float32)     # (Cout, W)

            h0 = 2 * p
            m = jnp.maximum(conv_row(h0), conv_row(h0 + 1))            # 2-row max
            m = jnp.maximum(m, pltpu.roll(m, W - 1, axis=1))           # right-neighbor max
            pooled = jnp.dot(m, sel_ref[...],
                             preferred_element_type=jnp.float32)       # (Cout, Wp)
            out = jnp.maximum(pooled + b_ref[...], 0.0)                # bias + ReLU
            o_ref[0, pl.ds(p, 1), :, :] = out[None]

    return pl.pallas_call(
        kernel,
        out_shape=jax.ShapeDtypeStruct((N, Hp, cout, Wp), jnp.float32),
        grid=(N,),
        in_specs=[
            pl.BlockSpec((1, H, cin, W), lambda n: (n, 0, 0, 0)),
            pl.BlockSpec((cout, KH * G), lambda n: (0, 0)),
            pl.BlockSpec((cout, 1), lambda n: (0, 0)),
            pl.BlockSpec((W, Wp), lambda n: (0, 0)),
        ],
        out_specs=pl.BlockSpec((1, Hp, cout, Wp), lambda n: (n, 0, 0, 0)),
        scratch_shapes=[pltpu.VMEM((H * G, W), jnp.float32)],
        compiler_params=pltpu.CompilerParams(
            dimension_semantics=("parallel",)),
    )(x, w2d, b2, sel)


# ----------------------------------------------------------------------------
# Fused head: relu(x @ fc1 + b1) -> @ fc2 + b2 -> log_softmax, one pallas_call.
# fc1's K axis is tiled; fc2 (50x10) stays resident and runs in the epilogue.
# ----------------------------------------------------------------------------
def fc_head(x, w1T, b1, w2T, b2):
    N, K = x.shape
    KP, M1 = w1T.shape            # KP is zero-padded to a multiple of TK_FC at init
    M2 = w2T.shape[1]
    assert KP % TK_FC == 0 and KP >= K
    xp = jnp.pad(x, ((0, 0), (0, KP - K)))      # ~0.5 MB, cheap
    b1r = b1.reshape(1, M1).astype(jnp.float32)
    b2r = b2.reshape(1, M2).astype(jnp.float32)
    nk = KP // TK_FC

    def kernel(x_ref, w1_ref, b1_ref, w2_ref, b2_ref, o_ref, acc_ref):
        k = pl.program_id(0)

        @pl.when(k == 0)
        def _init():
            acc_ref[...] = jnp.zeros_like(acc_ref)

        acc_ref[...] += jnp.dot(x_ref[...], w1_ref[...],
                                preferred_element_type=jnp.float32)

        @pl.when(k == pl.num_programs(0) - 1)
        def _fin():
            h = jnp.maximum(acc_ref[...] + b1_ref[...], 0.0)           # fc1 + ReLU
            # TODO(synk): F.dropout is identity in eval mode; training-mode dropout not implemented.
            z = jnp.dot(h, w2_ref[...],
                        preferred_element_type=jnp.float32) + b2_ref[...]
            zmax = jnp.max(z, axis=-1, keepdims=True)
            lse = zmax + jnp.log(jnp.sum(jnp.exp(z - zmax), axis=-1, keepdims=True))
            o_ref[...] = z - lse

    return pl.pallas_call(
        kernel,
        out_shape=jax.ShapeDtypeStruct((N, M2), jnp.float32),
        grid=(nk,),
        in_specs=[
            pl.BlockSpec((N, TK_FC), lambda k: (0, k)),
            pl.BlockSpec((TK_FC, M1), lambda k: (k, 0)),
            pl.BlockSpec((1, M1), lambda k: (0, 0)),
            pl.BlockSpec((M1, M2), lambda k: (0, 0)),
            pl.BlockSpec((1, M2), lambda k: (0, 0)),
        ],
        out_specs=pl.BlockSpec((N, M2), lambda k: (0, 0)),
        scratch_shapes=[pltpu.VMEM((N, M1), jnp.float32)],
        compiler_params=pltpu.CompilerParams(
            dimension_semantics=("arbitrary",)),
    )(xp, w1T, b1r, w2T, b2r)


# ----------------------------------------------------------------------------
# Full forward pass (inference semantics).
# ----------------------------------------------------------------------------
def net_forward(x_nchw, params):
    # NCHW -> (N, H, C, W).  Kept as a single tiny XLA transpose (~1.2 MB here);
    # folding it into conv1 would need cross-plane sublane gathers in-kernel.
    x = jnp.transpose(x_nchw, (0, 2, 1, 3))

    x = conv_pool_relu(x, params["w1"], params["b1"], cout=10)   # (N, 110, 10, 110)
    # TODO(synk): nn.Dropout2d (conv2_drop) is identity in eval mode; training-mode channel dropout not implemented.
    x = conv_pool_relu(x, params["w2"], params["b2"], cout=20)   # (N, 53, 20, 53)

    # Flatten with NO runtime transpose: the (N,H,C,W) -> (N, H*C*W) reshape is
    # layout-preserving; fc1's weight rows are stored in this (h,c,w) order.
    N = x.shape[0]
    x = x.reshape(N, -1)                                          # (N, 56180)

    return fc_head(x, params["fc1_wT"], params["fc1_b"],
                   params["fc2_wT"], params["fc2_b"])             # (N, 10)


def init_params():
    key = jax.random.PRNGKey(0)
    ks = jax.random.split(key, 8)

    def u(k, shape, fan_in):
        bound = 1.0 / (fan_in ** 0.5)
        return jax.random.uniform(k, shape, jnp.float32, -bound, bound)

    def pack_conv(k, cout, cin):
        # Packed conv weight (Cout, KH*G), G = round_up(KW*Cin, 8).
        # From a PyTorch weight Wt (Cout,Cin,KH,KW) this layout is
        #   jnp.transpose(Wt, (0,2,3,1)).reshape(Cout, KH, KW*Cin)
        # zero-padded on the last axis to G and reshaped to (Cout, KH*G).
        G = _round_up(KW * cin, 8)
        w = u(k, (cout, KH, KW * cin), cin * KH * KW)
        w = jnp.pad(w, ((0, 0), (0, 0), (0, G - KW * cin)))
        return w.reshape(cout, KH * G)

    K_fc1 = 20 * 53 * 53                      # 56180
    KP = _round_up(K_fc1, TK_FC)              # 57344

    # fc1 stored transposed (K, 50) with rows in the kernels' (h, c, w) flatten
    # order (PyTorch order is (c, h, w); from a torch weight Wt (50, 56180) use
    # Wt.reshape(50,20,53,53).transpose(2,1,3,0).reshape(56180,50)).  Rows past
    # the true K are zero so the K-tiling needs no runtime masking.
    fc1_wT = u(ks[4], (K_fc1, 50), K_fc1)
    fc1_wT = jnp.pad(fc1_wT, ((0, KP - K_fc1), (0, 0)))

    return {
        "w1": pack_conv(ks[0], 10, 3),
        "b1": u(ks[1], (10,), 3 * KH * KW),
        "w2": pack_conv(ks[2], 20, 10),
        "b2": u(ks[3], (20,), 10 * KH * KW),
        "fc1_wT": fc1_wT,
        "fc1_b": u(ks[5], (50,), K_fc1),
        "fc2_wT": u(ks[6], (50, 10), 50),
        "fc2_b": u(ks[7], (10,), 50),
    }


if __name__ == "__main__":
    # fc1 expects 56180 = 20*53*53 features, which implies 224x224 spatial input.
    N, C, H, W = 2, 3, 224, 224
    x = jax.random.normal(jax.random.PRNGKey(0), (N, C, H, W), dtype=jnp.float32)

    params = init_params()
    fwd = jax.jit(net_forward)
    out = jax.block_until_ready(fwd(x, params))

    assert out.shape == (N, 10), out.shape
    assert bool(jnp.all(jnp.isfinite(out)))
    # log_softmax rows must exponentiate-sum to 1.
    assert bool(jnp.all(jnp.abs(jnp.sum(jnp.exp(out), axis=1) - 1.0) < 1e-4))
    print("KERNEL_OK")
</pallas_src>

<mosaic_0001>
module attributes {stable_mosaic.version = 11 : i64} {
  func.func @kernel(%arg0: i32, %arg1: memref<1x110x10x110xf32, #tpu.memory_space<vmem>>, %arg2: memref<20x280xf32, #tpu.memory_space<vmem>>, %arg3: memref<20x1xf32, #tpu.memory_space<vmem>>, %arg4: memref<110x53xf32, #tpu.memory_space<vmem>>, %arg5: memref<1x53x20x53xf32, #tpu.memory_space<vmem>>, %arg6: memref<6160x110xf32, #tpu.memory_space<vmem>>) attributes {dimension_semantics = [#tpu.dimension_semantics<parallel>], iteration_bounds = array<i64: 2>, scalar_prefetch = 0 : i64, scratch_operands = 1 : i64, tpu.core_type = #tpu.core_type<tc>, window_params = [{transform_indices = @transform_0, window_bounds = array<i64: 1, 110, 10, 110>}, {pipeline_mode = #tpu.pipeline_mode<synchronous>, transform_indices = @transform_1, window_bounds = array<i64: 20, 280>}, {pipeline_mode = #tpu.pipeline_mode<synchronous>, transform_indices = @transform_2, window_bounds = array<i64: 20, 1>}, {pipeline_mode = #tpu.pipeline_mode<synchronous>, transform_indices = @transform_3, window_bounds = array<i64: 110, 53>}, {transform_indices = @transform_4, window_bounds = array<i64: 1, 53, 20, 53>}]} {
    %c0_i32 = arith.constant 0 : i32
    %c110_i32 = arith.constant 110 : i32
    %0 = arith.addi %c0_i32, %c110_i32 : i32
    %c1_i32 = arith.constant 1 : i32
    scf.for %arg7 = %c0_i32 to %0 step %c1_i32  : i32 {
      %c1_i32_4 = arith.constant 1 : i32
      %2 = arith.muli %arg7, %c1_i32_4 : i32
      %c0_i32_5 = arith.constant 0 : i32
      %3 = arith.addi %c0_i32_5, %2 : i32
      %c0 = arith.constant 0 : index
      %4 = arith.index_cast %3 : i32 to index
      %c0_6 = arith.constant 0 : index
      %c0_7 = arith.constant 0 : index
      %5 = vector.load %arg1[%c0, %4, %c0_6, %c0_7] : memref<1x110x10x110xf32, #tpu.memory_space<vmem>>, vector<1x1x10x110xf32>
      %6 = vector.shape_cast %5 : vector<1x1x10x110xf32> to vector<1x10x110xf32>
      %7 = vector.shape_cast %6 : vector<1x10x110xf32> to vector<10x110xf32>
      %c109_i32 = arith.constant 109 : i32
      %8 = tpu.dynamic_rotate %7 by %c109_i32 dim 1 : vector<10x110xf32>, i32 -> vector<10x110xf32>
      %c108_i32 = arith.constant 108 : i32
      %9 = tpu.dynamic_rotate %7 by %c108_i32 dim 1 : vector<10x110xf32>, i32 -> vector<10x110xf32>
      %c107_i32 = arith.constant 107 : i32
      %10 = tpu.dynamic_rotate %7 by %c107_i32 dim 1 : vector<10x110xf32>, i32 -> vector<10x110xf32>
      %c106_i32 = arith.constant 106 : i32
      %11 = tpu.dynamic_rotate %7 by %c106_i32 dim 1 : vector<10x110xf32>, i32 -> vector<10x110xf32>
      %cst = arith.constant 0.000000e+00 : f32
      %12 = vector.broadcast %cst : f32 to vector<6x110xf32>
      %13 = tpu.concatenate %7, %8, %9, %10, %11, %12 in 0 : vector<10x110xf32>, vector<10x110xf32>, vector<10x110xf32>, vector<10x110xf32>, vector<10x110xf32>, vector<6x110xf32> -> vector<56x110xf32>
      %c56_i32 = arith.constant 56 : i32
      %14 = arith.muli %3, %c56_i32 : i32
      %15 = tpu.assume_multiple %14, 8 : i32
      %16 = arith.index_cast %15 : i32 to index
      %c0_8 = arith.constant 0 : index
      %17 = vector.load %arg6[%16, %c0_8] : memref<6160x110xf32, #tpu.memory_space<vmem>>, vector<56x110xf32>
      tpu.vector_store %arg6[%16, %c0_8], %13 {strides = array<i32>} : memref<6160x110xf32, #tpu.memory_space<vmem>>, vector<56x110xf32>,
    }
    %c110_i32_0 = arith.constant 110 : i32
    %c0_i32_1 = arith.constant 0 : i32
    %c53_i32 = arith.constant 53 : i32
    %1 = arith.addi %c0_i32_1, %c53_i32 : i32
    %c1_i32_2 = arith.constant 1 : i32
    scf.for %arg7 = %c0_i32_1 to %1 step %c1_i32_2  : i32 {
      %c1_i32_4 = arith.constant 1 : i32
      %2 = arith.muli %arg7, %c1_i32_4 : i32
      %c0_i32_5 = arith.constant 0 : i32
      %3 = arith.addi %c0_i32_5, %2 : i32
      %c2_i32 = arith.constant 2 : i32
      %4 = arith.muli %c2_i32, %3 : i32
      %c56_i32 = arith.constant 56 : i32
      %5 = arith.muli %4, %c56_i32 : i32
      %6 = tpu.assume_multiple %5, 8 : i32
      %7 = arith.index_cast %6 : i32 to index
      %c0 = arith.constant 0 : index
      %8 = vector.load %arg6[%7, %c0] : memref<6160x110xf32, #tpu.memory_space<vmem>>, vector<280x110xf32>
      %c0_6 = arith.constant 0 : index
      %c0_7 = arith.constant 0 : index
      %9 = vector.load %arg2[%c0_6, %c0_7] : memref<20x280xf32, #tpu.memory_space<vmem>>, vector<20x280xf32>
      %cst = arith.constant dense<0.000000e+00> : vector<20x110xf32>
      %10 = tpu.matmul %9, %8, %cst {dimension_numbers = #tpu.dot_dimension_numbers<[1], [0], [0], [1], [0, 0, 1, 1], [], []>} : vector<20x280xf32>, vector<280x110xf32>, vector<20x110xf32> -> vector<20x110xf32>
      %c1_i32_8 = arith.constant 1 : i32
      %11 = arith.addi %4, %c1_i32_8 : i32
      %c56_i32_9 = arith.constant 56 : i32
      %12 = arith.muli %11, %c56_i32_9 : i32
      %13 = tpu.assume_multiple %12, 8 : i32
      %14 = arith.index_cast %13 : i32 to index
      %c0_10 = arith.constant 0 : index
      %15 = vector.load %arg6[%14, %c0_10] : memref<6160x110xf32, #tpu.memory_space<vmem>>, vector<280x110xf32>
      %c0_11 = arith.constant 0 : index
      %c0_12 = arith.constant 0 : index
      %16 = vector.load %arg2[%c0_11, %c0_12] : memref<20x280xf32, #tpu.memory_space<vmem>>, vector<20x280xf32>
      %cst_13 = arith.constant dense<0.000000e+00> : vector<20x110xf32>
      %17 = tpu.matmul %16, %15, %cst_13 {dimension_numbers = #tpu.dot_dimension_numbers<[1], [0], [0], [1], [0, 0, 1, 1], [], []>} : vector<20x280xf32>, vector<280x110xf32>, vector<20x110xf32> -> vector<20x110xf32>
      %18 = arith.maximumf %10, %17 : vector<20x110xf32>
      %c109_i32 = arith.constant 109 : i32
      %19 = tpu.dynamic_rotate %18 by %c109_i32 dim 1 : vector<20x110xf32>, i32 -> vector<20x110xf32>
      %20 = arith.maximumf %18, %19 : vector<20x110xf32>
      %c0_14 = arith.constant 0 : index
      %c0_15 = arith.constant 0 : index
      %21 = vector.load %arg4[%c0_14, %c0_15] : memref<110x53xf32, #tpu.memory_space<vmem>>, vector<110x53xf32>
      %cst_16 = arith.constant dense<0.000000e+00> : vector<20x53xf32>
      %22 = tpu.matmul %20, %21, %cst_16 {dimension_numbers = #tpu.dot_dimension_numbers<[1], [0], [0], [1], [0, 0, 1, 1], [], []>} : vector<20x110xf32>, vector<110x53xf32>, vector<20x53xf32> -> vector<20x53xf32>
      %c0_17 = arith.constant 0 : index
      %c0_18 = arith.constant 0 : index
      %23 = vector.load %arg3[%c0_17, %c0_18] : memref<20x1xf32, #tpu.memory_space<vmem>>, vector<20x1xf32>
      %24 = vector.broadcast %23 : vector<20x1xf32> to vector<20x53xf32>
      %25 = arith.addf %22, %24 : vector<20x53xf32>
      %cst_19 = arith.constant 0.000000e+00 : f32
      %26 = vector.broadcast %cst_19 : f32 to vector<20x53xf32>
      %27 = arith.maximumf %25, %26 : vector<20x53xf32>
      %28 = vector.shape_cast %27 : vector<20x53xf32> to vector<1x20x53xf32>
      %c0_20 = arith.constant 0 : index
      %29 = arith.index_cast %3 : i32 to index
      %c0_21 = arith.constant 0 : index
      %c0_22 = arith.constant 0 : index
      %30 = vector.load %arg5[%c0_20, %29, %c0_21, %c0_22] : memref<1x53x20x53xf32, #tpu.memory_space<vmem>>, vector<1x1x20x53xf32>
      %31 = vector.shape_cast %30 : vector<1x1x20x53xf32> to vector<1x20x53xf32>
      %32 = vector.shape_cast %28 : vector<1x20x53xf32> to vector<1x1x20x53xf32>
      tpu.vector_store %arg5[%c0_20, %29, %c0_21, %c0_22], %32 {strides = array<i32>} : memref<1x53x20x53xf32, #tpu.memory_space<vmem>>, vector<1x1x20x53xf32>,
    }
    %c53_i32_3 = arith.constant 53 : i32
    return
  }
  func.func @transform_0(%arg0: i32) -> (i32, i32, i32, i32) {
    %c0_i32 = arith.constant 0 : i32
    %c0_i32_0 = arith.constant 0 : i32
    %c0_i32_1 = arith.constant 0 : i32
    %c0_i32_2 = arith.constant 0 : i32
    return %arg0, %c0_i32, %c0_i32_0, %c0_i32_1 : i32, i32, i32, i32
  }
  func.func @transform_1(%arg0: i32) -> (i32, i32) {
    %c0_i32 = arith.constant 0 : i32
    %c0_i32_0 = arith.constant 0 : i32
    %c0_i32_1 = arith.constant 0 : i32
    return %c0_i32, %c0_i32_0 : i32, i32
  }
  func.func @transform_2(%arg0: i32) -> (i32, i32) {
    %c0_i32 = arith.constant 0 : i32
    %c0_i32_0 = arith.constant 0 : i32
    %c0_i32_1 = arith.constant 0 : i32
    return %c0_i32, %c0_i32_0 : i32, i32
  }
  func.func @transform_3(%arg0: i32) -> (i32, i32) {
    %c0_i32 = arith.constant 0 : i32
    %c0_i32_0 = arith.constant 0 : i32
    %c0_i32_1 = arith.constant 0 : i32
    return %c0_i32, %c0_i32_0 : i32, i32
  }
  func.func @transform_4(%arg0: i32) -> (i32, i32, i32, i32) {
    %c0_i32 = arith.constant 0 : i32
    %c0_i32_0 = arith.constant 0 : i32
    %c0_i32_1 = arith.constant 0 : i32
    %c0_i32_2 = arith.constant 0 : i32
    return %arg0, %c0_i32, %c0_i32_0, %c0_i32_1 : i32, i32, i32, i32
  }
}

module attributes {stable_mosaic.version = 11 : i64} {
  func.func @kernel(%arg0: i32, %arg1: memref<1x224x3x224xf32, #tpu.memory_space<vmem>>, %arg2: memref<10x80xf32, #tpu.memory_space<vmem>>, %arg3: memref<10x1xf32, #tpu.memory_space<vmem>>, %arg4: memref<224x110xf32, #tpu.memory_space<vmem>>, %arg5: memref<1x110x10x110xf32, #tpu.memory_space<vmem>>, %arg6: memref<3584x224xf32, #tpu.memory_space<vmem>>) attributes {dimension_semantics = [#tpu.dimension_semantics<parallel>], iteration_bounds = array<i64: 2>, scalar_prefetch = 0 : i64, scratch_operands = 1 : i64, tpu.core_type = #tpu.core_type<tc>, window_params = [{transform_indices = @transform_0, window_bounds = array<i64: 1, 224, 3, 224>}, {pipeline_mode = #tpu.pipeline_mode<synchronous>, transform_indices = @transform_1, window_bounds = array<i64: 10, 80>}, {pipeline_mode = #tpu.pipeline_mode<synchronous>, transform_indices = @transform_2, window_bounds = array<i64: 10, 1>}, {pipeline_mode = #tpu.pipeline_mode<synchronous>, transform_indices = @transform_3, window_bounds = array<i64: 224, 110>}, {transform_indices = @transform_4, window_bounds = array<i64: 1, 110, 10, 110>}]} {
    %c0_i32 = arith.constant 0 : i32
    %c224_i32 = arith.constant 224 : i32
    %0 = arith.addi %c0_i32, %c224_i32 : i32
    %c1_i32 = arith.constant 1 : i32
    scf.for %arg7 = %c0_i32 to %0 step %c1_i32  : i32 {
      %c1_i32_4 = arith.constant 1 : i32
      %2 = arith.muli %arg7, %c1_i32_4 : i32
      %c0_i32_5 = arith.constant 0 : i32
      %3 = arith.addi %c0_i32_5, %2 : i32
      %c0 = arith.constant 0 : index
      %4 = arith.index_cast %3 : i32 to index
      %c0_6 = arith.constant 0 : index
      %c0_7 = arith.constant 0 : index
      %5 = vector.load %arg1[%c0, %4, %c0_6, %c0_7] : memref<1x224x3x224xf32, #tpu.memory_space<vmem>>, vector<1x1x3x224xf32>
      %6 = vector.shape_cast %5 : vector<1x1x3x224xf32> to vector<1x3x224xf32>
      %7 = vector.shape_cast %6 : vector<1x3x224xf32> to vector<3x224xf32>
      %c223_i32 = arith.constant 223 : i32
      %8 = tpu.dynamic_rotate %7 by %c223_i32 dim 1 : vector<3x224xf32>, i32 -> vector<3x224xf32>
      %c222_i32 = arith.constant 222 : i32
      %9 = tpu.dynamic_rotate %7 by %c222_i32 dim 1 : vector<3x224xf32>, i32 -> vector<3x224xf32>
      %c221_i32 = arith.constant 221 : i32
      %10 = tpu.dynamic_rotate %7 by %c221_i32 dim 1 : vector<3x224xf32>, i32 -> vector<3x224xf32>
      %c220_i32 = arith.constant 220 : i32
      %11 = tpu.dynamic_rotate %7 by %c220_i32 dim 1 : vector<3x224xf32>, i32 -> vector<3x224xf32>
      %cst = arith.constant 0.000000e+00 : f32
      %12 = vector.broadcast %cst : f32 to vector<1x224xf32>
      %13 = tpu.concatenate %7, %8, %9, %10, %11, %12 in 0 : vector<3x224xf32>, vector<3x224xf32>, vector<3x224xf32>, vector<3x224xf32>, vector<3x224xf32>, vector<1x224xf32> -> vector<16x224xf32>
      %c16_i32 = arith.constant 16 : i32
      %14 = arith.muli %3, %c16_i32 : i32
      %15 = tpu.assume_multiple %14, 8 : i32
      %16 = arith.index_cast %15 : i32 to index
      %c0_8 = arith.constant 0 : index
      %17 = vector.load %arg6[%16, %c0_8] : memref<3584x224xf32, #tpu.memory_space<vmem>>, vector<16x224xf32>
      tpu.vector_store %arg6[%16, %c0_8], %13 {strides = array<i32>} : memref<3584x224xf32, #tpu.memory_space<vmem>>, vector<16x224xf32>,
    }
    %c224_i32_0 = arith.constant 224 : i32
    %c0_i32_1 = arith.constant 0 : i32
    %c110_i32 = arith.constant 110 : i32
    %1 = arith.addi %c0_i32_1, %c110_i32 : i32
    %c1_i32_2 = arith.constant 1 : i32
    scf.for %arg7 = %c0_i32_1 to %1 step %c1_i32_2  : i32 {
      %c1_i32_4 = arith.constant 1 : i32
      %2 = arith.muli %arg7, %c1_i32_4 : i32
      %c0_i32_5 = arith.constant 0 : i32
      %3 = arith.addi %c0_i32_5, %2 : i32
      %c2_i32 = arith.constant 2 : i32
      %4 = arith.muli %c2_i32, %3 : i32
      %c16_i32 = arith.constant 16 : i32
      %5 = arith.muli %4, %c16_i32 : i32
      %6 = tpu.assume_multiple %5, 8 : i32
      %7 = arith.index_cast %6 : i32 to index
      %c0 = arith.constant 0 : index
      %8 = vector.load %arg6[%7, %c0] : memref<3584x224xf32, #tpu.memory_space<vmem>>, vector<80x224xf32>
      %c0_6 = arith.constant 0 : index
      %c0_7 = arith.constant 0 : index
      %9 = vector.load %arg2[%c0_6, %c0_7] : memref<10x80xf32, #tpu.memory_space<vmem>>, vector<10x80xf32>
      %cst = arith.constant dense<0.000000e+00> : vector<10x224xf32>
      %10 = tpu.matmul %9, %8, %cst {dimension_numbers = #tpu.dot_dimension_numbers<[1], [0], [0], [1], [0, 0, 1, 1], [], []>} : vector<10x80xf32>, vector<80x224xf32>, vector<10x224xf32> -> vector<10x224xf32>
      %c1_i32_8 = arith.constant 1 : i32
      %11 = arith.addi %4, %c1_i32_8 : i32
      %c16_i32_9 = arith.constant 16 : i32
      %12 = arith.muli %11, %c16_i32_9 : i32
      %13 = tpu.assume_multiple %12, 8 : i32
      %14 = arith.index_cast %13 : i32 to index
      %c0_10 = arith.constant 0 : index
      %15 = vector.load %arg6[%14, %c0_10] : memref<3584x224xf32, #tpu.memory_space<vmem>>, vector<80x224xf32>
      %c0_11 = arith.constant 0 : index
      %c0_12 = arith.constant 0 : index
      %16 = vector.load %arg2[%c0_11, %c0_12] : memref<10x80xf32, #tpu.memory_space<vmem>>, vector<10x80xf32>
      %cst_13 = arith.constant dense<0.000000e+00> : vector<10x224xf32>
      %17 = tpu.matmul %16, %15, %cst_13 {dimension_numbers = #tpu.dot_dimension_numbers<[1], [0], [0], [1], [0, 0, 1, 1], [], []>} : vector<10x80xf32>, vector<80x224xf32>, vector<10x224xf32> -> vector<10x224xf32>
      %18 = arith.maximumf %10, %17 : vector<10x224xf32>
      %c223_i32 = arith.constant 223 : i32
      %19 = tpu.dynamic_rotate %18 by %c223_i32 dim 1 : vector<10x224xf32>, i32 -> vector<10x224xf32>
      %20 = arith.maximumf %18, %19 : vector<10x224xf32>
      %c0_14 = arith.constant 0 : index
      %c0_15 = arith.constant 0 : index
      %21 = vector.load %arg4[%c0_14, %c0_15] : memref<224x110xf32, #tpu.memory_space<vmem>>, vector<224x110xf32>
      %cst_16 = arith.constant dense<0.000000e+00> : vector<10x110xf32>
      %22 = tpu.matmul %20, %21, %cst_16 {dimension_numbers = #tpu.dot_dimension_numbers<[1], [0], [0], [1], [0, 0, 1, 1], [], []>} : vector<10x224xf32>, vector<224x110xf32>, vector<10x110xf32> -> vector<10x110xf32>
      %c0_17 = arith.constant 0 : index
      %c0_18 = arith.constant 0 : index
      %23 = vector.load %arg3[%c0_17, %c0_18] : memref<10x1xf32, #tpu.memory_space<vmem>>, vector<10x1xf32>
      %24 = vector.broadcast %23 : vector<10x1xf32> to vector<10x110xf32>
      %25 = arith.addf %22, %24 : vector<10x110xf32>
      %cst_19 = arith.constant 0.000000e+00 : f32
      %26 = vector.broadcast %cst_19 : f32 to vector<10x110xf32>
      %27 = arith.maximumf %25, %26 : vector<10x110xf32>
      %28 = vector.shape_cast %27 : vector<10x110xf32> to vector<1x10x110xf32>
      %c0_20 = arith.constant 0 : index
      %29 = arith.index_cast %3 : i32 to index
      %c0_21 = arith.constant 0 : index
      %c0_22 = arith.constant 0 : index
      %30 = vector.load %arg5[%c0_20, %29, %c0_21, %c0_22] : memref<1x110x10x110xf32, #tpu.memory_space<vmem>>, vector<1x1x10x110xf32>
      %31 = vector.shape_cast %30 : vector<1x1x10x110xf32> to vector<1x10x110xf32>
      %32 = vector.shape_cast %28 : vector<1x10x110xf32> to vector<1x1x10x110xf32>
      tpu.vector_store %arg5[%c0_20, %29, %c0_21, %c0_22], %32 {strides = array<i32>} : memref<1x110x10x110xf32, #tpu.memory_space<vmem>>, vector<1x1x10x110xf32>,
    }
    %c110_i32_3 = arith.constant 110 : i32
    return
  }
  func.func @transform_0(%arg0: i32) -> (i32, i32, i32, i32) {
    %c0_i32 = arith.constant 0 : i32
    %c0_i32_0 = arith.constant 0 : i32
    %c0_i32_1 = arith.constant 0 : i32
    %c0_i32_2 = arith.constant 0 : i32
    return %arg0, %c0_i32, %c0_i32_0, %c0_i32_1 : i32, i32, i32, i32
  }
  func.func @transform_1(%arg0: i32) -> (i32, i32) {
    %c0_i32 = arith.constant 0 : i32
    %c0_i32_0 = arith.constant 0 : i32
    %c0_i32_1 = arith.constant 0 : i32
    return %c0_i32, %c0_i32_0 : i32, i32
  }
  func.func @transform_2(%arg0: i32) -> (i32, i32) {
    %c0_i32 = arith.constant 0 : i32
    %c0_i32_0 = arith.constant 0 : i32
    %c0_i32_1 = arith.constant 0 : i32
    return %c0_i32, %c0_i32_0 : i32, i32
  }
  func.func @transform_3(%arg0: i32) -> (i32, i32) {
    %c0_i32 = arith.constant 0 : i32
    %c0_i32_0 = arith.constant 0 : i32
    %c0_i32_1 = arith.constant 0 : i32
    return %c0_i32, %c0_i32_0 : i32, i32
  }
  func.func @transform_4(%arg0: i32) -> (i32, i32, i32, i32) {
    %c0_i32 = arith.constant 0 : i32
    %c0_i32_0 = arith.constant 0 : i32
    %c0_i32_1 = arith.constant 0 : i32
    %c0_i32_2 = arith.constant 0 : i32
    return %arg0, %c0_i32, %c0_i32_0, %c0_i32_1 : i32, i32, i32, i32
  }
}

module attributes {stable_mosaic.version = 11 : i64} {
  func.func @kernel(%arg0: i32, %arg1: memref<2x8192xf32, #tpu.memory_space<vmem>>, %arg2: memref<8192x50xf32, #tpu.memory_space<vmem>>, %arg3: memref<1x50xf32, #tpu.memory_space<vmem>>, %arg4: memref<50x10xf32, #tpu.memory_space<vmem>>, %arg5: memref<1x10xf32, #tpu.memory_space<vmem>>, %arg6: memref<2x10xf32, #tpu.memory_space<vmem>>, %arg7: memref<2x50xf32, #tpu.memory_space<vmem>>) attributes {dimension_semantics = [#tpu.dimension_semantics<arbitrary>], iteration_bounds = array<i64: 7>, scalar_prefetch = 0 : i64, scratch_operands = 1 : i64, tpu.core_type = #tpu.core_type<tc>, window_params = [{transform_indices = @transform_0, window_bounds = array<i64: 2, 8192>}, {transform_indices = @transform_1, window_bounds = array<i64: 8192, 50>}, {pipeline_mode = #tpu.pipeline_mode<synchronous>, transform_indices = @transform_2, window_bounds = array<i64: 1, 50>}, {pipeline_mode = #tpu.pipeline_mode<synchronous>, transform_indices = @transform_3, window_bounds = array<i64: 50, 10>}, {pipeline_mode = #tpu.pipeline_mode<synchronous>, transform_indices = @transform_4, window_bounds = array<i64: 1, 10>}, {pipeline_mode = #tpu.pipeline_mode<synchronous>, transform_indices = @transform_5, window_bounds = array<i64: 2, 10>}]} {
    %c0_i32 = arith.constant 0 : i32
    %0 = arith.cmpi eq, %arg0, %c0_i32 : i32
    %1 = arith.extui %0 : i1 to i32
    %c0_i32_0 = arith.constant 0 : i32
    %2 = arith.cmpi ne, %1, %c0_i32_0 : i32
    scf.if %2 {
      %cst_9 = arith.constant 0.000000e+00 : f32
      %12 = vector.broadcast %cst_9 : f32 to vector<2x50xf32>
      %c0_10 = arith.constant 0 : index
      %c0_11 = arith.constant 0 : index
      %13 = vector.load %arg7[%c0_10, %c0_11] : memref<2x50xf32, #tpu.memory_space<vmem>>, vector<2x50xf32>
      tpu.vector_store %arg7[%c0_10, %c0_11], %12 {strides = array<i32>} : memref<2x50xf32, #tpu.memory_space<vmem>>, vector<2x50xf32>,
    } else {
    }
    %c0 = arith.constant 0 : index
    %c0_1 = arith.constant 0 : index
    %3 = vector.load %arg7[%c0, %c0_1] : memref<2x50xf32, #tpu.memory_space<vmem>>, vector<2x50xf32>
    %c0_2 = arith.constant 0 : index
    %c0_3 = arith.constant 0 : index
    %4 = vector.load %arg1[%c0_2, %c0_3] : memref<2x8192xf32, #tpu.memory_space<vmem>>, vector<2x8192xf32>
    %c0_4 = arith.constant 0 : index
    %c0_5 = arith.constant 0 : index
    %5 = vector.load %arg2[%c0_4, %c0_5] : memref<8192x50xf32, #tpu.memory_space<vmem>>, vector<8192x50xf32>
    %cst = arith.constant dense<0.000000e+00> : vector<2x50xf32>
    %6 = tpu.matmul %4, %5, %cst {dimension_numbers = #tpu.dot_dimension_numbers<[1], [0], [0], [1], [0, 0, 1, 1], [], []>} : vector<2x8192xf32>, vector<8192x50xf32>, vector<2x50xf32> -> vector<2x50xf32>
    %7 = arith.addf %3, %6 : vector<2x50xf32>
    %c0_6 = arith.constant 0 : index
    %c0_7 = arith.constant 0 : index
    %8 = vector.load %arg7[%c0_6, %c0_7] : memref<2x50xf32, #tpu.memory_space<vmem>>, vector<2x50xf32>
    tpu.vector_store %arg7[%c0_6, %c0_7], %7 {strides = array<i32>} : memref<2x50xf32, #tpu.memory_space<vmem>>, vector<2x50xf32>,
    %c6_i32 = arith.constant 6 : i32
    %9 = arith.cmpi eq, %arg0, %c6_i32 : i32
    %10 = arith.extui %9 : i1 to i32
    %c0_i32_8 = arith.constant 0 : i32
    %11 = arith.cmpi ne, %10, %c0_i32_8 : i32
    scf.if %11 {
      %c0_9 = arith.constant 0 : index
      %c0_10 = arith.constant 0 : index
      %12 = vector.load %arg7[%c0_9, %c0_10] : memref<2x50xf32, #tpu.memory_space<vmem>>, vector<2x50xf32>
      %c0_11 = arith.constant 0 : index
      %c0_12 = arith.constant 0 : index
      %13 = vector.load %arg3[%c0_11, %c0_12] : memref<1x50xf32, #tpu.memory_space<vmem>>, vector<1x50xf32>
      %14 = vector.broadcast %13 : vector<1x50xf32> to vector<2x50xf32>
      %15 = arith.addf %12, %14 : vector<2x50xf32>
      %cst_13 = arith.constant 0.000000e+00 : f32
      %16 = vector.broadcast %cst_13 : f32 to vector<2x50xf32>
      %17 = arith.maximumf %15, %16 : vector<2x50xf32>
      %c0_14 = arith.constant 0 : index
      %c0_15 = arith.constant 0 : index
      %18 = vector.load %arg4[%c0_14, %c0_15] : memref<50x10xf32, #tpu.memory_space<vmem>>, vector<50x10xf32>
      %cst_16 = arith.constant dense<0.000000e+00> : vector<2x10xf32>
      %19 = tpu.matmul %17, %18, %cst_16 {dimension_numbers = #tpu.dot_dimension_numbers<[1], [0], [0], [1], [0, 0, 1, 1], [], []>} : vector<2x50xf32>, vector<50x10xf32>, vector<2x10xf32> -> vector<2x10xf32>
      %c0_17 = arith.constant 0 : index
      %c0_18 = arith.constant 0 : index
      %20 = vector.load %arg5[%c0_17, %c0_18] : memref<1x10xf32, #tpu.memory_space<vmem>>, vector<1x10xf32>
      %21 = vector.broadcast %20 : vector<1x10xf32> to vector<2x10xf32>
      %22 = arith.addf %19, %21 : vector<2x10xf32>
      %cst_19 = arith.constant dense<0xFF800000> : vector<2xf32>
      %23 = vector.multi_reduction <maximumf>, %22, %cst_19 [1] : vector<2x10xf32> to vector<2xf32>
      %24 = vector.shape_cast %23 : vector<2xf32> to vector<2x1xf32>
      %25 = vector.broadcast %24 : vector<2x1xf32> to vector<2x10xf32>
      %26 = arith.subf %22, %25 : vector<2x10xf32>
      %27 = math.exp %26 : vector<2x10xf32>
      %cst_20 = arith.constant dense<0.000000e+00> : vector<2xf32>
      %28 = vector.multi_reduction <add>, %27, %cst_20 [1] : vector<2x10xf32> to vector<2xf32>
      %29 = vector.shape_cast %28 : vector<2xf32> to vector<2x1xf32>
      %30 = math.log %29 : vector<2x1xf32>
      %31 = arith.addf %24, %30 : vector<2x1xf32>
      %32 = vector.broadcast %31 : vector<2x1xf32> to vector<2x10xf32>
      %33 = arith.subf %22, %32 : vector<2x10xf32>
      %c0_21 = arith.constant 0 : index
      %c0_22 = arith.constant 0 : index
      %34 = vector.load %arg6[%c0_21, %c0_22] : memref<2x10xf32, #tpu.memory_space<vmem>>, vector<2x10xf32>
      tpu.vector_store %arg6[%c0_21, %c0_22], %33 {strides = array<i32>} : memref<2x10xf32, #tpu.memory_space<vmem>>, vector<2x10xf32>,
    } else {
    }
    return
  }
  func.func @transform_0(%arg0: i32) -> (i32, i32) {
    %c0_i32 = arith.constant 0 : i32
    %c0_i32_0 = arith.constant 0 : i32
    return %c0_i32, %arg0 : i32, i32
  }
  func.func @transform_1(%arg0: i32) -> (i32, i32) {
    %c0_i32 = arith.constant 0 : i32
    %c0_i32_0 = arith.constant 0 : i32
    return %arg0, %c0_i32 : i32, i32
  }
  func.func @transform_2(%arg0: i32) -> (i32, i32) {
    %c0_i32 = arith.constant 0 : i32
    %c0_i32_0 = arith.constant 0 : i32
    %c0_i32_1 = arith.constant 0 : i32
    return %c0_i32, %c0_i32_0 : i32, i32
  }
  func.func @transform_3(%arg0: i32) -> (i32, i32) {
    %c0_i32 = arith.constant 0 : i32
    %c0_i32_0 = arith.constant 0 : i32
    %c0_i32_1 = arith.constant 0 : i32
    return %c0_i32, %c0_i32_0 : i32, i32
  }
  func.func @transform_4(%arg0: i32) -> (i32, i32) {
    %c0_i32 = arith.constant 0 : i32
    %c0_i32_0 = arith.constant 0 : i32
    %c0_i32_1 = arith.constant 0 : i32
    return %c0_i32, %c0_i32_0 : i32, i32
  }
  func.func @transform_5(%arg0: i32) -> (i32, i32) {
    %c0_i32 = arith.constant 0 : i32
    %c0_i32_0 = arith.constant 0 : i32
    %c0_i32_1 = arith.constant 0 : i32
    return %c0_i32, %c0_i32_0 : i32, i32
  }
}

</mosaic_0001>

<bundles_post_ra>
// kernel: net_forward.3
= control target key start
LH: loop header
LB: loop body
LE: loop exit
PB: predicated region body
PF: predicated region fallthrough
CT: control target
= control target key end

     0   :  { %s959_s15 = smov 0   ;;  %s1200_s0 = inlined_call_operand.vmem [shape: f32[2,224,3,224], index: 0, kind: input, shape index: {}]   ;;  %s1201_s1 = inlined_call_operand.vmem [shape: f32[10,80], index: 1, kind: input, shape index: {}]   ;;  %s1202_s2 = inlined_call_operand.vmem [shape: f32[10,1], index: 2, kind: input, shape index: {}]   ;;  %s1203_s3 = inlined_call_operand.vmem [shape: f32[224,110], index: 3, kind: input, shape index: {}]   ;;  %s1204_s4 = inlined_call_operand.vmem [shape: f32[2,110,10,110], index: 4, kind: output, shape index: {}]  }
   0x1 LB: > { %s744_s16 = sadd.s32 4294967295, %s914_s15   ;;  %p748_p0 = scmp.ge.s32.totalorder %s914_s15, 1  ;;  %s914_s15 = sphi %s959_s15, %s14_s15  }
   0x2   : > { %p162_p1 = scmp.lt.s32.totalorder %s914_s15, 3 }
   0x4   : > { %p163_p2 = pnand %p748_p0, %p162_p1 }
   0x5   : > { %p188_p3 = scmp.lt.s32.totalorder (!%p163_p2), %s744_s16, 1  ;;  %s977_s25 = smov (!%p163_p2), 0  }
   0x6   : > { %166 = sbr.rel (%p163_p2) target bundleno = 984 (0x3d8), region = 36 }
   0xd   : > { %s1206_s16 = smov (!%p188_p3, %s744_s16), 1 }
   0xe   : > { %s861_s17 = smul.u32 1792, %s1206_s16 }
   0xf   : > { %s862_s18 = smul.u32 1760, %s1206_s16 }
  0x10   : > { %s970_s21 = scalar_lea.vmem %s1200_s0, %s861_s17 }
  0x11   : > { %s975_s24 = scalar_lea.vmem %s1204_s4, %s862_s18 }
  0x12 LB: >> { %s772_s26 = sshll.u32 %s918_s25, 3  ;;  %s924_s28 = smov 96   ;;  %vm211_vm0 = vcmask 1048320   ;;  %vm222_vm1 = vcmask 1039360   ;;  %vm256_vm2 = vcmask 1042432   ;;  %vm242_vm3 = vcmask 1022976   ;;  %s918_s25 = sphi %s977_s25, %s203_s25  }
  0x13   : >> { %s206_s27 = scalar_lea.vmem %s970_s21, %s772_s26  ;;  %s925_s29 = smov 125   ;;  %vm232_vm4 = vcmask 1031168   ;;  %vm259_vm5 = vcmask 1045504   ;;  %vm262_vm6 = vcmask 1040384   ;;  %vm278_vm7 = vcmask 785408  }
  0x14   : >> { %v207_v0 = vld [vmem:[%s206_s27] sm:$0x77]  ;;  %s926_s30 = smov 126   ;;  %s927_s5 = smov 127   ;;  %vm252_vm8 = vcmask 1014784   ;;  %vm265_vm9 = vcmask 1043456  }
  0x15   : >> { %212 = vrot.lane.b32.xlu0 %v207_v0, %s924_s28  ;;  %v236_v1 = vrot.slane %v207_v0, 7  ;;  %v226_v2 = vrot.slane %v207_v0, 2  ;;  %v216_v3 = vrot.slane %v207_v0, 5  ;;  %v209_v4 = vcombine.high %v207_v0, %v207_v0  ;;  %s928_s6 = smov 124   ;;  %s753_s7 = sshll.u32 %s918_s25, 4 }
  0x16   : >> { %v246_v9 = vrot.slane %v207_v0, 4  ;;  %s272_s8 = sshra.s32 %s753_s7, 3  ;;  %vm268_vm10 = vcmask 1046528   ;;  %s203_s25 = sadd.s32 1, %s918_s25  }
  0x17   : >> { %238 = vrot.lane.b32.xlu1 %v236_v1, %s925_s29  ;;  %s773_s9 = sshll.u32 %s272_s8, 4  ;;  %p200_p4 = scmp.ge.s32.totalorder %s203_s25, 224  }
  0x18   : >> { %s276_s10 = scalar_lea.vmem [#allocation2], %s773_s9  ;;  %s996_s11 = smov (%p200_p4), 0  }
  0x19   : >> { %228 = vrot.lane.b32.xlu0 %v226_v2, %s926_s30 }
  0x1b   : >> { %218 = vrot.lane.b32.xlu1 %v216_v3, %s927_s5 }
  0x87   : >> { %v213_v5 = vpop.permute.xlu0 %212 }
  0x88   : >> { %v214_v6 = vsel %vm211_vm0, %v213_v5, %v209_v4 }
  0x89   : >> { %v237_v7 = vrot.slane %v214_v6, 7  ;;  %v227_v8 = vrot.slane %v214_v6, 2  ;;  %v217_v10 = vrot.slane %v214_v6, 5  ;;  %v247_v11 = vrot.slane %v214_v6, 4  ;;  %v239_v12 = vpop.permute.xlu1 %238 }
  0x8b   : >> { %240 = vrot.lane.b32.xlu0 %v237_v7, %s925_s29  ;;  %230 = vrot.lane.b32.xlu1 %v227_v8, %s926_s30  ;;  %v229_v13 = vpop.permute.xlu0 %228 }
  0x8d   : >> { %v219_v14 = vpop.permute.xlu1 %218 }
  0x8f   : >> { %220 = vrot.lane.b32.xlu0 %v217_v10, %s927_s5  ;;  %248 = vrot.lane.b32.xlu1 %v246_v9, %s928_s6 }
  0x93   : >> { %250 = vrot.lane.b32.xlu0 %v247_v11, %s928_s6 }
  0xfd   : >> { %v241_v15 = vpop.permute.xlu0 %240  ;;  %v231_v16 = vpop.permute.xlu1 %230 }
  0xfe   : >> { %v243_v20 = vsel %vm242_vm3, %v239_v12, %v241_v15  ;;  %v233_v21 = vsel %vm232_vm4, %v229_v13, %v231_v16  ;;  %v264_v26 = vsel %vm262_vm6, %v231_v16, %v241_v15 }
  0xff   : >> { %v263_v28 = vsel %vm262_vm6, %v233_v21, %v243_v20 }
 0x101   : >> { %v221_v17 = vpop.permute.xlu0 %220  ;;  %v249_v24 = vpop.permute.xlu1 %248 }
 0x102   : >> { %v223_v18 = vsel %vm222_vm1, %v219_v14, %v221_v17  ;;  %v258_v19 = vsel %vm256_vm2, %v209_v4, %v221_v17 }
 0x103   : >> { %v257_v22 = vsel %vm256_vm2, %v207_v0, %v223_v18  ;;  %v261_v23 = vsel %vm259_vm5, %v258_v19, %v231_v16  ;;  %202 = sbr.rel (!%p200_p4) target bundleno = 18 (0x12), region = 85 }
 0x104   : >> { %v260_v25 = vsel %vm259_vm5, %v257_v22, %v233_v21  ;;  %279 = vst.msk [vmem:[%s276_s10 + $0x8] sm:$0xff] %vm278_vm7, %v261_v23 }
 0x105   : >> { %277 = vst [vmem:[%s276_s10] sm:$0xff] %v260_v25  ;;  %v251_v27 = vpop.permute.xlu0 %250 }
 0x106   : >> { %v253_v29 = vsel %vm252_vm8, %v249_v24, %v251_v27  ;;  %v267_v30 = vsel %vm265_vm9, %v264_v26, %v251_v27 }
 0x107   : >> { %v266_v31 = vsel %vm265_vm9, %v263_v28, %v253_v29  ;;  %v270_v32 = vsel %vm268_vm10, %v267_v30, 0.0 }
 0x108   : >> { %v269_v33 = vsel %vm268_vm10, %v266_v31, 0.0  ;;  %281 = vst.msk [vmem:[%s276_s10 + $0x18] sm:$0xff] %vm278_vm7, %v270_v32 }
 0x109   : >> { %280 = vst [vmem:[%s276_s10 + $0x10] sm:$0xff] %v269_v33 }
 0x10a LB: >> { %v929_v34 = vmov 0.0   ;;  %s757_s12 = sshll.u32 %s922_s11, 5  ;;  %v315_v8 = vld [vmem:[%s1201_s1] sm:$0xff]  ;;  %vm317_vm11 = vcmask 654336   ;;  %v316_v16 = vld [vmem:[%s1201_s1 + $0x8] sm:$0x3]  ;;  %s922_s11 = sphi %s996_s11, %s287_s11  }
 0x10b   : >> { %388 = vmatprep.mubr.f32.mxu1 %v929_v34  ;;  %s290_s13 = sshra.s32 %s757_s12, 3  ;;  %s776_s17 = sadd.s32 16, %s757_s12  ;;  %vm665_vm12 = vcmask 900096   ;;  %vm667_vm13 = vcmask 893952  }
 0x10c   : >> { %s774_s14 = sshll.u32 %s290_s13, 4  ;;  %s403_s18 = sshra.s32 %s776_s17, 3 }
 0x10d   : >> { %s1003_s16 = scalar_lea.vmem [#allocation2], %s774_s14  ;;  %s777_s19 = sshll.u32 %s403_s18, 4 }
 0x10e   : >> { %s1025_s20 = scalar_lea.vmem [#allocation2], %s777_s19  ;;  %s931_s13 = smov 127  }
 0x10f   : >> { %s932_s14 = smov 96  }
 0x110   : >> { %v296_v35 = vld [vmem:[%s1003_s16 + $0x8] sm:$0xff]  ;;  %v298_v36 = vld [vmem:[%s1003_s16 + $0x18] sm:$0xff]  ;;  %v295_v37 = vld [vmem:[%s1003_s16] sm:$0xff] }
 0x111   : >> { %v779_v38 = vpack.c.bf16 %v298_v36, %v296_v35  ;;  %v297_v39 = vld [vmem:[%s1003_s16 + $0x10] sm:$0xff]  ;;  %v300_v40 = vld [vmem:[%s1003_s16 + $0x28] sm:$0xff]  ;;  %v302_v41 = vld [vmem:[%s1003_s16 + $0x38] sm:$0xff] }
 0x112   : >> { %v781_v42 = vpack.c.bf16 %v297_v39, %v295_v37  ;;  %v783_v43 = vpack.c.bf16 %v302_v41, %v300_v40  ;;  %v299_v44 = vld [vmem:[%s1003_s16 + $0x20] sm:$0xff]  ;;  %v301_v45 = vld [vmem:[%s1003_s16 + $0x30] sm:$0xff]  ;;  %v304_v46 = vld [vmem:[%s1003_s16 + $0x48] sm:$0xff]  ;;  %v930_v41 = vmov 0.0|0.0  }
 0x113   : >> { %780 = vmatprep.subr.bf16.mxu1 %v779_v38  ;;  %v306_v47 = vld [vmem:[%s1003_s16 + $0x58] sm:$0xff]  ;;  %v785_v48 = vpack.c.bf16 %v301_v45, %v299_v44  ;;  %v303_v50 = vld [vmem:[%s1003_s16 + $0x40] sm:$0xff]  ;;  %v305_v51 = vld [vmem:[%s1003_s16 + $0x50] sm:$0xff]  ;;  %819 = vmatprep.subr.bf16.mxu0 %v930_v41 }
 0x114   : >> { %782 = vmatpush1.bf16.msra.mxu1 %v781_v42  ;;  %v787_v49 = vpack.c.bf16 %v306_v47, %v304_v46  ;;  %v308_v52 = vld [vmem:[%s1003_s16 + $0x68] sm:$0xff]  ;;  %v310_v53 = vld [vmem:[%s1003_s16 + $0x78] sm:$0xff]  ;;  %v789_v54 = vpack.c.bf16 %v305_v51, %v303_v50  ;;  %v307_v56 = vld [vmem:[%s1003_s16 + $0x60] sm:$0xff] }
 0x115   : >> { %784 = vmatprep.subr.bf16.mxu1 %v783_v43  ;;  %v791_v55 = vpack.c.bf16 %v310_v53, %v308_v52  ;;  %v309_v57 = vld [vmem:[%s1003_s16 + $0x70] sm:$0xff]  ;;  %v312_v58 = vld [vmem:[%s1003_s16 + $0x88] sm:$0xff]  ;;  %v314_v59 = vld [vmem:[%s1003_s16 + $0x98] sm:$0xff] }
 0x116   : >> { %v793_v60 = vpack.c.bf16 %v309_v57, %v307_v56  ;;  %v795_v61 = vpack.c.bf16 %v314_v59, %v312_v58  ;;  %v311_v62 = vld [vmem:[%s1003_s16 + $0x80] sm:$0xff]  ;;  %v313_v63 = vld [vmem:[%s1003_s16 + $0x90] sm:$0xff]  ;;  %v409_v0 = vld [vmem:[%s1025_s20 + $0x8] sm:$0xff] }
 0x117   : >> { %v411_v1 = vld [vmem:[%s1025_s20 + $0x18] sm:$0xff]  ;;  %v797_v2 = vpack.c.bf16 %v313_v63, %v311_v62  ;;  %v408_v4 = vld [vmem:[%s1025_s20] sm:$0xff]  ;;  %v410_v5 = vld [vmem:[%s1025_s20 + $0x10] sm:$0xff] }
 0x118   : >> { %786 = vmatpush1.bf16.msra.mxu1 %v785_v48  ;;  %v799_v3 = vpack.c.bf16 %v411_v1, %v409_v0  ;;  %v413_v6 = vld [vmem:[%s1025_s20 + $0x28] sm:$0xff]  ;;  %v415_v7 = vld [vmem:[%s1025_s20 + $0x38] sm:$0xff]  ;;  %v801_v9 = vpack.c.bf16 %v410_v5, %v408_v4  ;;  %v412_v11 = vld [vmem:[%s1025_s20 + $0x20] sm:$0xff] }
 0x119   : >> { %788 = vmatprep.subr.bf16.mxu1 %v787_v49  ;;  %v803_v10 = vpack.c.bf16 %v415_v7, %v413_v6  ;;  %v414_v12 = vld [vmem:[%s1025_s20 + $0x30] sm:$0xff]  ;;  %v417_v13 = vld [vmem:[%s1025_s20 + $0x48] sm:$0xff]  ;;  %v419_v14 = vld [vmem:[%s1025_s20 + $0x58] sm:$0xff] }
 0x11a   : >> { %v805_v15 = vpack.c.bf16 %v414_v12, %v412_v11  ;;  %v807_v17 = vpack.c.bf16 %v419_v14, %v417_v13  ;;  %v416_v18 = vld [vmem:[%s1025_s20 + $0x40] sm:$0xff]  ;;  %v418_v19 = vld [vmem:[%s1025_s20 + $0x50] sm:$0xff]  ;;  %v421_v20 = vld [vmem:[%s1025_s20 + $0x68] sm:$0xff] }
 0x11b   : >> { %v423_v21 = vld [vmem:[%s1025_s20 + $0x78] sm:$0xff]  ;;  %v809_v22 = vpack.c.bf16 %v418_v19, %v416_v18  ;;  %v420_v24 = vld [vmem:[%s1025_s20 + $0x60] sm:$0xff]  ;;  %v422_v25 = vld [vmem:[%s1025_s20 + $0x70] sm:$0xff] }
 0x11c   : >> { %790 = vmatpush1.bf16.msra.mxu1 %v789_v54  ;;  %v811_v23 = vpack.c.bf16 %v423_v21, %v421_v20  ;;  %v425_v26 = vld [vmem:[%s1025_s20 + $0x88] sm:$0xff]  ;;  %v427_v27 = vld [vmem:[%s1025_s20 + $0x98] sm:$0xff]  ;;  %v813_v28 = vpack.c.bf16 %v422_v25, %v420_v24  ;;  %v424_v30 = vld [vmem:[%s1025_s20 + $0x80] sm:$0xff]  ;;  %v933_v25 = vmov 0  }
 0x11d   : >> { %792 = vmatprep.subr.bf16.mxu1 %v791_v55  ;;  %v815_v29 = vpack.c.bf16 %v427_v27, %v425_v26  ;;  %v426_v31 = vld [vmem:[%s1025_s20 + $0x90] sm:$0xff]  ;;  %v539_v38 = vld [vmem:[%s1203_s3] sm:$0xff]  ;;  %v540_v39 = vld [vmem:[%s1203_s3 + $0x8] sm:$0xff]  ;;  %898 = vset.pattern.permute.xlu0 %v933_v25 }
 0x11e   : >> { %v817_v32 = vpack.c.bf16 %v426_v31, %v424_v30  ;;  %v541_v40 = vld [vmem:[%s1203_s3 + $0x10] sm:$0xff]  ;;  %v542_v42 = vld [vmem:[%s1203_s3 + $0x18] sm:$0xff]  ;;  %v543_v47 = vld [vmem:[%s1203_s3 + $0x20] sm:$0xff]  ;;  %899 = vset.pattern.permute.xlu1 %v933_v25 }
 0x11f   : >> { %v823_v44 = vpack.c.bf16 %v542_v42, %v541_v40  ;;  %v544_v48 = vld [vmem:[%s1203_s3 + $0x28] sm:$0xff]  ;;  %v545_v54 = vld [vmem:[%s1203_s3 + $0x30] sm:$0xff]  ;;  %v546_v55 = vld [vmem:[%s1203_s3 + $0x38] sm:$0xff] }
 0x120   : >> { %794 = vmatpush1.bf16.msra.mxu1 %v793_v60  ;;  %v826_v51 = vpack.c.bf16 %v544_v48, %v543_v47  ;;  %v829_v57 = vpack.c.bf16 %v546_v55, %v545_v54  ;;  %v547_v58 = vld [vmem:[%s1203_s3 + $0x40] sm:$0xff]  ;;  %v548_v59 = vld [vmem:[%s1203_s3 + $0x48] sm:$0xff]  ;;  %v550_v62 = vld [vmem:[%s1203_s3 + $0x58] sm:$0xff] }
 0x121   : >> { %796 = vmatprep.subr.bf16.mxu1 %v795_v61  ;;  %v832_v60 = vpack.c.bf16 %v548_v59, %v547_v58  ;;  %v549_v61 = vld [vmem:[%s1203_s3 + $0x50] sm:$0xff]  ;;  %v551_v0 = vld [vmem:[%s1203_s3 + $0x60] sm:$0xff]  ;;  %v552_v1 = vld [vmem:[%s1203_s3 + $0x68] sm:$0xff] }
 0x122   : >> { %v835_v63 = vpack.c.bf16 %v550_v62, %v549_v61  ;;  %v554_v4 = vld [vmem:[%s1203_s3 + $0x78] sm:$0xff]  ;;  %v555_v6 = vld [vmem:[%s1203_s3 + $0x80] sm:$0xff]  ;;  %v556_v7 = vld [vmem:[%s1203_s3 + $0x88] sm:$0xff] }
 0x123   : >> { %v559_v12 = vld [vmem:[%s1203_s3 + $0xa0] sm:$0xff]  ;;  %v560_v13 = vld [vmem:[%s1203_s3 + $0xa8] sm:$0xff]  ;;  %v565_v21 = vld [vmem:[%s1203_s3 + $0xd0] sm:$0xff] }
 0x124   : >> { %798 = vmatpush1.bf16.msra.mxu1 %v797_v2  ;;  %v838_v2 = vpack.c.bf16 %v552_v1, %v551_v0  ;;  %v850_v14 = vpack.c.bf16 %v560_v13, %v559_v12  ;;  %v563_v18 = vld [vmem:[%s1203_s3 + $0xc0] sm:$0xff]  ;;  %v564_v19 = vld [vmem:[%s1203_s3 + $0xc8] sm:$0xff] }
 0x125   : >> { %800 = vmatprep.subr.bf16.mxu1 %v799_v3  ;;  %v553_v3 = vld [vmem:[%s1203_s3 + $0x70] sm:$0xff]  ;;  %v856_v20 = vpack.c.bf16 %v564_v19, %v563_v18  ;;  %v567_v24 = vld [vmem:[%s1202_s2] sm:$0xff]  ;;  %v568_v30 = vld [vmem:[%s1202_s2 + $0x8] sm:$0x3] }
 0x126   : >> { %v841_v5 = vpack.c.bf16 %v554_v4, %v553_v3 }
 0x127   : >> { %760 = vmatmul.mubr.msk.f32.vlgmr.msra.gmra.mrb[0].mxu1 %vm317_vm11, %v315_v8 }
 0x128   : >> { %802 = vmatpush1.bf16.msra.mxu1 %v801_v9  ;;  %394 = vmatprep.mubr.f32.mxu1 %v929_v34  ;;  %v557_v9 = vld [vmem:[%s1203_s3 + $0x90] sm:$0xff] }
 0x129   : >> { %804 = vmatprep.subr.bf16.mxu1 %v803_v10  ;;  %v558_v10 = vld [vmem:[%s1203_s3 + $0x98] sm:$0xff] }
 0x12a   : >> { %v847_v11 = vpack.c.bf16 %v558_v10, %v557_v9 }
 0x12b   : >> { %761 = vmatmul.mubr.msk.f32.gmra.mrb[2].mxu1 %vm317_vm11, %v316_v16 }
 0x12c   : >> { %806 = vmatpush1.bf16.msra.mxu1 %v805_v15  ;;  %492 = vmatprep.mubr.f32.mxu1 %v929_v34  ;;  %v561_v15 = vld [vmem:[%s1203_s3 + $0xb0] sm:$0xff] }
 0x12d   : >> { %808 = vmatprep.subr.bf16.mxu1 %v807_v17 }
 0x130   : >> { %810 = vmatpush1.bf16.msra.mxu1 %v809_v22  ;;  %v566_v22 = vld [vmem:[%s1203_s3 + $0xd8] sm:$0xff] }
 0x131   : >> { %812 = vmatprep.subr.bf16.mxu1 %v811_v23  ;;  %v859_v23 = vpack.c.bf16 %v566_v22, %v565_v21 }
 0x134   : >> { %814 = vmatpush1.bf16.msra.mxu1 %v813_v28 }
 0x135   : >> { %816 = vmatprep.subr.bf16.mxu1 %v815_v29 }
 0x138   : >> { %818 = vmatpush1.bf16.msra.mxu1 %v817_v32 }
 0x13b   : >> { %765 = vmatmul.mubr.msk.f32.vlgmr.msra.gmra.mrb[4].mxu1 %vm317_vm11, %v315_v8  ;;  %v844_v8 = vpack.c.bf16 %v556_v7, %v555_v6 }
 0x13c   : >> { %498 = vmatprep.mubr.f32.mxu1 %v929_v34  ;;  %v820_v34 = vpack.c.bf16 %v540_v39, %v539_v38 }
 0x13e   : >> { %821 = vmatpush1.bf16.msra.mxu0 %v820_v34 }
 0x13f   : >> { %766 = vmatmul.mubr.msk.f32.gmra.mrb[6].mxu1 %vm317_vm11, %v316_v16  ;;  %822 = vmatprep.subr.bf16.mxu0 %v930_v41  ;;  %v562_v16 = vld [vmem:[%s1203_s3 + $0xb8] sm:$0xff] }
 0x140   : >> { %v853_v17 = vpack.c.bf16 %v562_v16, %v561_v15 }
 0x142   : >> { %824 = vmatpush1.bf16.msra.mxu0 %v823_v44 }
 0x143   : >> { %825 = vmatprep.subr.bf16.mxu0 %v930_v41 }
 0x146   : >> { %827 = vmatpush1.bf16.msra.mxu0 %v826_v51 }
 0x147   : >> { %828 = vmatprep.subr.bf16.mxu0 %v930_v41 }
 0x14a   : >> { %830 = vmatpush1.bf16.msra.mxu0 %v829_v57 }
 0x14b   : >> { %831 = vmatprep.subr.bf16.mxu0 %v930_v41 }
 0x14e   : >> { %833 = vmatpush1.bf16.msra.mxu0 %v832_v60 }
 0x14f   : >> { %834 = vmatprep.subr.bf16.mxu0 %v930_v41 }
 0x152   : >> { %836 = vmatpush1.bf16.msra.mxu0 %v835_v63 }
 0x153   : >> { %837 = vmatprep.subr.bf16.mxu0 %v930_v41 }
 0x156   : >> { %839 = vmatpush1.bf16.msra.mxu0 %v838_v2 }
 0x157   : >> { %840 = vmatprep.subr.bf16.mxu0 %v930_v41 }
 0x15a   : >> { %842 = vmatpush1.bf16.msra.mxu0 %v841_v5 }
 0x15b   : >> { %843 = vmatprep.subr.bf16.mxu0 %v930_v41 }
 0x15e   : >> { %845 = vmatpush1.bf16.msra.mxu0 %v844_v8 }
 0x15f   : >> { %846 = vmatprep.subr.bf16.mxu0 %v930_v41 }
 0x162   : >> { %848 = vmatpush1.bf16.msra.mxu0 %v847_v11 }
 0x163   : >> { %849 = vmatprep.subr.bf16.mxu0 %v930_v41 }
 0x166   : >> { %851 = vmatpush1.bf16.msra.mxu0 %v850_v14 }
 0x167   : >> { %852 = vmatprep.subr.bf16.mxu0 %v930_v41 }
 0x16a   : >> { %854 = vmatpush1.bf16.msra.mxu0 %v853_v17 }
 0x16b   : >> { %855 = vmatprep.subr.bf16.mxu0 %v930_v41 }
 0x16e   : >> { %857 = vmatpush1.bf16.msra.mxu0 %v856_v20 }
 0x16f   : >> { %858 = vmatprep.subr.bf16.mxu0 %v930_v41 }
 0x172   : >> { %860 = vmatpush1.bf16.msra.mxu0 %v859_v23 }
 0x1fa   : >> { %v390_v33 = vpop.f32.mrb[0].mxu1 }
 0x1fb   : >> { %v392_v35 = vpop.f32.mrb[1].mxu1 }
 0x1fe   : >> { %v396_v36 = vpop.f32.mrb[2].mxu1 }
 0x1ff   : >> { %v398_v37 = vpop.f32.mrb[3].mxu1 }
 0x20e   : >> { %v494_v43 = vpop.f32.mrb[4].mxu1 }
 0x20f   : >> { %v1073_v45 = vmax.f32 %v390_v33, %v494_v43  ;;  %v496_v46 = vpop.f32.mrb[5].mxu1 }
 0x210   : >> { %v1082_v49 = vmax.f32 %v392_v35, %v496_v46 }
 0x211   : >> { %520 = vrot.lane.b32.xlu1 %v1073_v45, %s931_s13  ;;  %510 = vrot.lane.b32.xlu0 %v1073_v45, %s932_s14 }
 0x212   : >> { %v500_v50 = vpop.f32.mrb[6].mxu1 }
 0x213   : >> { %v1087_v52 = vmax.f32 %v396_v36, %v500_v50  ;;  %v502_v53 = vpop.f32.mrb[7].mxu1 }
 0x214   : >> { %v1096_v56 = vmax.f32 %v398_v37, %v502_v53 }
 0x215   : >> { %512 = vrot.lane.b32.xlu0 %v1087_v52, %s932_s14 }
 0x219   : >> { %524 = vrot.lane.b32.xlu0 %v1087_v52, %s931_s13 }
 0x21d   : >> { %571 = vperm.xlu0 %898, %v567_v24  }
 0x283   : >> { %v511_v26 = vpop.permute.xlu0 %510  ;;  %v521_v31 = vpop.permute.xlu1 %520 }
 0x284   : >> { %v514_v27 = vsel %vm211_vm0, %v511_v26, %v1082_v49 }
 0x285   : >> { %522 = vrot.lane.b32.xlu1 %v514_v27, %s931_s13 }
 0x287   : >> { %v513_v28 = vpop.permute.xlu0 %512 }
 0x288   : >> { %v515_v29 = vsel %vm211_vm0, %v513_v28, %v1096_v56 }
 0x289   : >> { %526 = vrot.lane.b32.xlu1 %v515_v29, %s931_s13  ;;  %s769_s13 = sshll.u32 %s922_s11, 4  ;;  %s287_s11 = sadd.s32 1, %s922_s11  }
 0x28a   : >> { %s664_s20 = scalar_lea.vmem %s975_s24, %s769_s13  ;;  %p284_p5 = scmp.ge.s32.totalorder %s287_s11, 110  }
 0x28b   : >> { %v525_v37 = vpop.permute.xlu0 %524 }
 0x28d   : >> { %576 = vperm.xlu1 %899, %v568_v30  }
 0x29c   : >> { %v572_v34 = vpop.permute.xlu0 %571 }
 0x2f7   : >> { %v523_v32 = vpop.permute.xlu1 %522 }
 0x2f8   : >> { %v529_v33 = vsel %vm222_vm1, %v521_v31, %v523_v32  ;;  %v536_v35 = vmax.f32 %v1082_v49, %v523_v32 }
 0x2f9   : >> { %v535_v36 = vmax.f32 %v1073_v45, %v529_v33 }
 0x2fa   : >> { %767 = vmatprep.mubr.msk.f32.mxu0 %vm278_vm7, %v536_v35 }
 0x2fb   : >> { %651 = vmatmul.mubr.f32.vlgmr.msra.gmra.mrb[0].mxu0 %v535_v36  ;;  %v527_v38 = vpop.permute.xlu1 %526 }
 0x2fc   : >> { %v530_v39 = vsel %vm222_vm1, %v525_v37, %v527_v38  ;;  %v538_v40 = vmax.f32 %v1096_v56, %v527_v38 }
 0x2fd   : >> { %v537_v41 = vmax.f32 %v1087_v52, %v530_v39 }
 0x2fe   : >> { %768 = vmatprep.mubr.msk.f32.mxu0 %vm278_vm7, %v538_v40 }
 0x2ff   : >> { %656 = vmatmul.mubr.f32.gmra.mrb[2].mxu0 %v537_v41 }
 0x30c   : >> { %v577_v45 = vpop.permute.xlu1 %576 }
 0x3ce   : >> { %v652_v42 = vpop.f32.mrb[0].mxu0 }
 0x3cf   : >> { %v653_v43 = vadd.f32 %v652_v42, %v572_v34  ;;  %v654_v44 = vpop.f32.mrb[1].mxu0 }
 0x3d1   : >> { %v661_v46 = vmax.f32 %v653_v43, 0.0  ;;  %286 = sbr.rel (!%p284_p5) target bundleno = 266 (0x10a), region = 96 }
 0x3d2   : >> { %v657_v47 = vpop.f32.mrb[2].mxu0 }
 0x3d3   : >> { %666 = vst.msk [vmem:[%s664_s20] sm:$0xff] %vm665_vm12, %v661_v46  ;;  %v658_v48 = vadd.f32 %v657_v47, %v577_v45  ;;  %v659_v49 = vpop.f32.mrb[3].mxu0 }
 0x3d5   : >> { %v662_v50 = vmax.f32 %v658_v48, 0.0 }
 0x3d7   : >> { %668 = vst.msk [vmem:[%s664_s20 + $0x8] sm:$0x3] %vm667_vm13, %v662_v50 }
 0x3d8 PF: > { %s14_s15 = sadd.s32 1, %s914_s15  }
 0x3d9   : > { %p11_p6 = scmp.ge.s32.totalorder %s14_s15, 4  }
 0x3db   :  { %13 = sbr.rel (!%p11_p6) target bundleno = 1 (0x1), region = 107 }

// kernel: net_forward.4
= control target key start
LH: loop header
LB: loop body
LE: loop exit
PB: predicated region body
PF: predicated region fallthrough
CT: control target
= control target key end

     0   :  { %s1372_s15 = smov 0   ;;  %s1661_s0 = inlined_call_operand.vmem [shape: f32[2,110,10,110], index: 0, kind: input, shape index: {}]   ;;  %s1662_s1 = inlined_call_operand.vmem [shape: f32[20,280], index: 1, kind: input, shape index: {}]   ;;  %s1663_s2 = inlined_call_operand.vmem [shape: f32[20,1], index: 2, kind: input, shape index: {}]   ;;  %s1664_s3 = inlined_call_operand.vmem [shape: f32[110,53], index: 3, kind: input, shape index: {}]   ;;  %s1665_s4 = inlined_call_operand.vmem [shape: f32[2,53,20,53], index: 4, kind: output, shape index: {}]  }
   0x1 LB: > { %s944_s16 = sadd.s32 4294967295, %s1325_s15   ;;  %p948_p0 = scmp.ge.s32.totalorder %s1325_s15, 1  ;;  %s1325_s15 = sphi %s1372_s15, %s14_s15  }
   0x2   : > { %p162_p1 = scmp.lt.s32.totalorder %s1325_s15, 3 }
   0x4   : > { %p163_p2 = pnand %p948_p0, %p162_p1 }
   0x5   : > { %p188_p3 = scmp.lt.s32.totalorder (!%p163_p2), %s944_s16, 1  ;;  %s1390_s25 = smov (!%p163_p2), 0  }
   0x6   : > { %166 = sbr.rel (%p163_p2) target bundleno = 1240 (0x4d8), region = 36 }
   0xd   : > { %s1667_s16 = smov (!%p188_p3, %s944_s16), 1 }
   0xe   : > { %s1271_s17 = smul.u32 1760, %s1667_s16 }
   0xf   : > { %s1272_s18 = smul.u32 1272, %s1667_s16 }
  0x10   : > { %s1383_s21 = scalar_lea.vmem %s1661_s0, %s1271_s17 }
  0x11   : > { %s1388_s24 = scalar_lea.vmem %s1665_s4, %s1272_s18 }
  0x12 LB: >> { %s951_s26 = sshll.u32 %s1329_s25, 4  ;;  %s263_s27 = smul.u32 56, %s1329_s25  ;;  %vm265_vm0 = vcmask 900096   ;;  %vm208_vm1 = vcmask 1048432   ;;  %vm223_vm2 = vcmask 1041408   ;;  %vm233_vm3 = vcmask 1043456   ;;  %s1329_s25 = sphi %s1390_s25, %s203_s25  }
  0x13   : >> { %s205_s28 = scalar_lea.vmem %s1383_s21, %s951_s26  ;;  %s1335_s29 = smov 110   ;;  %vm243_vm4 = vcmask 1045504  }
  0x14   : >> { %v206_v0 = vld [vmem:[%s205_s28] sm:$0xff]  ;;  %s1398_s30 = scalar_lea.vmem [#allocation2], %s263_s27  ;;  %v207_v1 = vld [vmem:[%s205_s28 + $0x8] sm:$0x3]  ;;  %s1336_s5 = smov 127  }
  0x15   : >> { %209 = vrot.lane.b32.xlu0 %v206_v0, %s1335_s29  ;;  %266 = vst.msk [vmem:[%s1398_s30] sm:$0xff] %vm265_vm0, %v206_v0  ;;  %s1337_s6 = smov 124   ;;  %s1338_s7 = smov 126  }
  0x16   : >> { %s1339_s8 = smov 125   ;;  %s203_s25 = sadd.s32 1, %s1329_s25  }
  0x17   : >> { %p200_p4 = scmp.ge.s32.totalorder %s203_s25, 110  }
  0x18   : > { %s1428_s9 = smov (%p200_p4), 0  }
  0x19   : >> { %212 = vrot.lane.b32.xlu0 %v207_v1, %s1335_s29 }
  0x87   : >> { %v210_v2 = vpop.permute.xlu0 %209 }
  0x88   : >> { %v211_v3 = vsel %vm208_vm1, %v210_v2, %v206_v0 }
  0x89   : >> { %215 = vrot.lane.b32.xlu1 %v211_v3, %s1335_s29 }
  0x8b   : >> { %v213_v4 = vpop.permute.xlu0 %212 }
  0x8c   : >> { %v214_v5 = vsel %vm208_vm1, %v213_v4, %v207_v1 }
  0x8d   : >> { %217 = vrot.lane.b32.xlu1 %v214_v5, %s1335_s29 }
  0xfb   : >> { %v216_v6 = vpop.permute.xlu1 %215 }
  0xfc   : >> { %v219_v7 = vsel %vm208_vm1, %v216_v6, %v206_v0 }
  0xfd   : >> { %v224_v8 = vrot.slane %v219_v7, 6  ;;  %v234_v12 = vrot.slane %v219_v7, 4  ;;  %v244_v15 = vrot.slane %v219_v7, 2 }
  0xff   : >> { %227 = vrot.lane.b32.xlu0 %v224_v8, %s1336_s5  ;;  %v218_v9 = vpop.permute.xlu1 %217 }
 0x100   : >> { %v220_v10 = vsel %vm208_vm1, %v218_v9, %v207_v1 }
 0x101   : >> { %v225_v11 = vrot.slane %v220_v10, 6  ;;  %255 = vrot.lane.b32.xlu1 %v220_v10, %s1337_s6  ;;  %v235_v14 = vrot.slane %v220_v10, 4  ;;  %v245_v16 = vrot.slane %v220_v10, 2 }
 0x103   : >> { %237 = vrot.lane.b32.xlu0 %v234_v12, %s1338_s7  ;;  %v226_v13 = vsel %vm223_vm2, %v224_v8, %v225_v11  ;;  %v236_v17 = vsel %vm233_vm3, %v234_v12, %v235_v14  ;;  %v246_v18 = vsel %vm243_vm4, %v244_v15, %v245_v16 }
 0x105   : >> { %229 = vrot.lane.b32.xlu1 %v226_v13, %s1336_s5 }
 0x107   : >> { %247 = vrot.lane.b32.xlu0 %v244_v15, %s1339_s8 }
 0x109   : >> { %239 = vrot.lane.b32.xlu1 %v236_v17, %s1338_s7 }
 0x10b   : >> { %249 = vrot.lane.b32.xlu0 %v246_v18, %s1339_s8 }
 0x10d   : >> { %253 = vrot.lane.b32.xlu1 %v219_v7, %s1337_s6 }
 0x171   : >> { %v228_v19 = vpop.permute.xlu0 %227 }
 0x172   : >> { %v259_v20 = vsel %vm223_vm2, %v207_v1, %v228_v19 }
 0x173   : >> { %267 = vst.msk [vmem:[%s1398_s30 + $0x8] sm:$0xff] %vm265_vm0, %v259_v20  ;;  %v256_v21 = vpop.permute.xlu1 %255 }
 0x174   : >> { %v262_v22 = vsel %vm223_vm2, %v256_v21, 0.0 }
 0x175   : >> { %272 = vst.msk [vmem:[%s1398_s30 + $0x30] sm:$0xff] %vm265_vm0, %v262_v22  ;;  %v238_v23 = vpop.permute.xlu0 %237 }
 0x177   : >> { %v230_v24 = vpop.permute.xlu1 %229 }
 0x178   : >> { %v260_v25 = vsel %vm233_vm3, %v230_v24, %v238_v23 }
 0x179   : >> { %268 = vst.msk [vmem:[%s1398_s30 + $0x10] sm:$0xff] %vm265_vm0, %v260_v25  ;;  %v248_v26 = vpop.permute.xlu0 %247 }
 0x17a   : > { %202 = sbr.rel (!%p200_p4) target bundleno = 18 (0x12), region = 85 }
 0x17b   : >> { %v240_v27 = vpop.permute.xlu1 %239 }
 0x17c   : >> { %v261_v28 = vsel %vm243_vm4, %v240_v27, %v248_v26 }
 0x17d   : >> { %269 = vst.msk [vmem:[%s1398_s30 + $0x18] sm:$0xff] %vm265_vm0, %v261_v28  ;;  %v250_v29 = vpop.permute.xlu0 %249 }
 0x17e   : >> { %270 = vst.msk [vmem:[%s1398_s30 + $0x20] sm:$0xff] %vm265_vm0, %v250_v29 }
 0x17f   : >> { %v254_v30 = vpop.permute.xlu1 %253 }
 0x180   : >> { %271 = vst.msk [vmem:[%s1398_s30 + $0x28] sm:$0xff] %vm265_vm0, %v254_v30 }
 0x181 LB: >> { %v318_v31 = vld [vmem:[%s1662_s1 + $0x8] sm:$0xff]  ;;  %s280_s12 = smul.u32 112, %s1333_s9  ;;  %vm1342_vm5 = vmmov 0   ;;  %vm326_vm6 = vcmask 195584   ;;  %s1343_s6 = smov 110   ;;  %vm1344_vm7 = vmmov 1   ;;  %s1333_s9 = sphi %s1428_s9, %s278_s9  }
 0x182   : >> { %400 = vmatprep.mubr.f32.mxu0 %v318_v31  ;;  %598 = vmatprep.mubr.f32.mxu1 %v318_v31  ;;  %vm1269_vm8 = vmpackc.low %vm243_vm4, %vm1344_vm7  ;;  %s860_s21 = smul.u32 24, %s1333_s9  ;;  %vm862_vm9 = vcmask 433152   ;;  %vm865_vm10 = vcmask 429056   ;;  %s278_s9 = sadd.s32 1, %s1333_s9  }
 0x183   : >> { %s1437_s13 = scalar_lea.vmem [#allocation2], %s280_s12  ;;  %p275_p5 = scmp.ge.s32.totalorder %s278_s9, 53  }
 0x184   : >> { %s861_s22 = scalar_lea.vmem %s1388_s24, %s860_s21 }
 0x187   : >> { %v1440_v32 = vld [vmem:[%s1437_s13 + $0x80] sm:$0xff]  ;;  %v1443_v33 = vld [vmem:[%s1437_s13 + $0x88] sm:$0xff]  ;;  %v1450_v37 = vld [vmem:[%s1437_s13 + $0x90] sm:$0xff] }
 0x188   : >> { %v282_v34 = vld [vmem:[%s1437_s13] sm:$0xff]  ;;  %v1179_v35 = vpack.c.bf16 %v1443_v33, %v1440_v32  ;;  %v283_v36 = vld [vmem:[%s1437_s13 + $0x8] sm:$0xff]  ;;  %v1453_v38 = vld [vmem:[%s1437_s13 + $0x98] sm:$0xff]  ;;  %v1236_v31 = vpack.c.bf16 %v1450_v37, %v1443_v33  ;;  %v1340_v33 = vmov 0.0|0.0  }
 0x189   : >> { %v1181_v39 = vpack.c.bf16 %v283_v36, %v282_v34  ;;  %v1183_v40 = vpack.c.bf16 %v1453_v38, %v1450_v37  ;;  %v284_v41 = vld [vmem:[%s1437_s13 + $0x10] sm:$0xff]  ;;  %v285_v42 = vld [vmem:[%s1437_s13 + $0x18] sm:$0xff]  ;;  %v1460_v43 = vld [vmem:[%s1437_s13 + $0xa0] sm:$0xff] }
 0x18a   : >> { %1180 = vmatprep.subr.bf16.mxu0 %v1179_v35  ;;  %v1463_v44 = vld [vmem:[%s1437_s13 + $0xa8] sm:$0xff]  ;;  %v1185_v45 = vpack.c.bf16 %v285_v42, %v284_v41  ;;  %v286_v46 = vld [vmem:[%s1437_s13 + $0x20] sm:$0xff]  ;;  %v1468_v48 = vld [vmem:[%s1437_s13 + $0xb0] sm:$0xff] }
 0x18b   : >> { %1182 = vmatpush3.bf16.msra.mxu0 %v1181_v39  ;;  %v287_v47 = vld [vmem:[%s1437_s13 + $0x28] sm:$0xff]  ;;  %v1187_v49 = vpack.c.bf16 %v1463_v44, %v1460_v43  ;;  %v305_v50 = vld [vmem:[%s1437_s13 + $0xb8] sm:$0xff]  ;;  %v306_v52 = vld [vmem:[%s1437_s13 + $0xc0] sm:$0xff] }
 0x18c   : >> { %1184 = vmatprep.subr.bf16.mxu0 %v1183_v40  ;;  %v289_v51 = vld [vmem:[%s1437_s13 + $0x38] sm:$0xff]  ;;  %v307_v53 = vld [vmem:[%s1437_s13 + $0xc8] sm:$0xff]  ;;  %v290_v54 = vld [vmem:[%s1437_s13 + $0x40] sm:$0xff]  ;;  %v1214_v56 = vpack.c.bf16 %v306_v52, %v305_v50  ;;  %v1189_v59 = vpack.c.bf16 %v287_v47, %v286_v46  ;;  %v1191_v62 = vpack.c.bf16 %v305_v50, %v1468_v48 }
 0x18d   : >> { %v308_v55 = vld [vmem:[%s1437_s13 + $0xd0] sm:$0xff]  ;;  %v1216_v57 = vpack.c.bf16 %v290_v54, %v289_v51  ;;  %v291_v60 = vld [vmem:[%s1437_s13 + $0x48] sm:$0xff]  ;;  %v309_v0 = vld [vmem:[%s1437_s13 + $0xd8] sm:$0xff]  ;;  %v1195_v7 = vpack.c.bf16 %v307_v53, %v306_v52 }
 0x18e   : >> { %v1218_v58 = vpack.c.bf16 %v308_v55, %v307_v53  ;;  %v292_v61 = vld [vmem:[%s1437_s13 + $0x50] sm:$0xff]  ;;  %1215 = vmatprep.subr.bf16.mxu1 %v1214_v56  ;;  %v310_v1 = vld [vmem:[%s1437_s13 + $0xe0] sm:$0xff]  ;;  %v293_v5 = vld [vmem:[%s1437_s13 + $0x58] sm:$0xff]  ;;  %v1197_v13 = vpack.c.bf16 %v291_v60, %v290_v54  ;;  %v1199_v16 = vpack.c.bf16 %v309_v0, %v308_v55 }
 0x18f   : >> { %1186 = vmatpush3.bf16.msra.mxu0 %v1185_v45  ;;  %v288_v63 = vld [vmem:[%s1437_s13 + $0x30] sm:$0xff]  ;;  %1217 = vmatpush3.bf16.msra.mxu1 %v1216_v57  ;;  %v1220_v2 = vpack.c.bf16 %v292_v61, %v291_v60  ;;  %v1222_v3 = vpack.c.bf16 %v310_v1, %v309_v0  ;;  %v294_v6 = vld [vmem:[%s1437_s13 + $0x60] sm:$0xff]  ;;  %v311_v8 = vld [vmem:[%s1437_s13 + $0xe8] sm:$0xff]  ;;  %v1201_v22 = vpack.c.bf16 %v293_v5, %v292_v61 }
 0x190   : >> { %1188 = vmatprep.subr.bf16.mxu0 %v1187_v49  ;;  %1219 = vmatprep.subr.bf16.mxu1 %v1218_v58  ;;  %v1193_v4 = vpack.c.bf16 %v289_v51, %v288_v63  ;;  %v312_v9 = vld [vmem:[%s1437_s13 + $0xf0] sm:$0xff]  ;;  %v1224_v10 = vpack.c.bf16 %v294_v6, %v293_v5  ;;  %v314_v12 = vld [vmem:[%s1437_s13 + $0x100] sm:$0xff]  ;;  %v295_v14 = vld [vmem:[%s1437_s13 + $0x68] sm:$0xff]  ;;  %v1203_v24 = vpack.c.bf16 %v311_v8, %v310_v1 }
 0x191   : >> { %v1226_v11 = vpack.c.bf16 %v312_v9, %v311_v8  ;;  %v296_v15 = vld [vmem:[%s1437_s13 + $0x70] sm:$0xff]  ;;  %v313_v17 = vld [vmem:[%s1437_s13 + $0xf8] sm:$0xff]  ;;  %v315_v20 = vld [vmem:[%s1437_s13 + $0x108] sm:$0xff]  ;;  %v1205_v29 = vpack.c.bf16 %v295_v14, %v294_v6  ;;  %v1244_v45 = vpack.c.bf16 %v1468_v48, %v1463_v44 }
 0x192   : >> { %v1228_v18 = vpack.c.bf16 %v296_v15, %v295_v14  ;;  %v1230_v19 = vpack.c.bf16 %v314_v12, %v313_v17  ;;  %v316_v21 = vld [vmem:[%s1437_s13 + $0x110] sm:$0xff]  ;;  %v297_v23 = vld [vmem:[%s1437_s13 + $0x78] sm:$0xff]  ;;  %v986_v28 = vld [vmem:[%s1437_s13 + $0x120] sm:$0xff]  ;;  %v1207_v30 = vpack.c.bf16 %v313_v17, %v312_v9  ;;  %v1212_v42 = vpack.c.bf16 %v315_v20, %v314_v12 }
 0x193   : >> { %1190 = vmatpush3.bf16.msra.mxu0 %v1189_v59  ;;  %1221 = vmatpush3.bf16.msra.mxu1 %v1220_v2  ;;  %v1232_v25 = vpack.c.bf16 %v1440_v32, %v297_v23  ;;  %v1234_v26 = vpack.c.bf16 %v316_v21, %v315_v20  ;;  %v985_v27 = vld [vmem:[%s1437_s13 + $0x118] sm:$0xff]  ;;  %v987_v35 = vld [vmem:[%s1437_s13 + $0x128] sm:$0xff]  ;;  %v988_v36 = vld [vmem:[%s1437_s13 + $0x130] sm:$0xff]  ;;  %v1209_v39 = vpack.c.bf16 %v297_v23, %v296_v15 }
 0x194   : >> { %1192 = vmatprep.subr.bf16.mxu0 %v1191_v62  ;;  %1223 = vmatprep.subr.bf16.mxu1 %v1222_v3  ;;  %v1238_v34 = vpack.c.bf16 %v986_v28, %v985_v27  ;;  %v1240_v32 = vpack.c.bf16 %v1460_v43, %v1453_v38  ;;  %v1242_v40 = vpack.c.bf16 %v988_v36, %v987_v35  ;;  %v317_v41 = vld [vmem:[%s1662_s1] sm:$0xff]  ;;  %v320_v38 = vld [vmem:[%s1662_s1 + $0x18] sm:$0xff]  ;;  %v1341_v43 = vmov 0.0   ;;  %v323_v44 = vld [vmem:[%s1662_s1 + $0x30] sm:$0xf] }
 0x195   : >> { %v321_v37 = vld [vmem:[%s1662_s1 + $0x20] sm:$0xff]  ;;  %v324_v46 = vld [vmem:[%s1662_s1 + $0x38] sm:$0xf]  ;;  %v319_v49 = vld [vmem:[%s1662_s1 + $0x10] sm:$0xff] }
 0x196   : >> { %v989_v47 = vld [vmem:[%s1437_s13 + $0x138] sm:$0xff]  ;;  %v990_v48 = vld [vmem:[%s1437_s13 + $0x140] sm:$0xff]  ;;  %v322_v51 = vld [vmem:[%s1662_s1 + $0x28] sm:$0xff] }
 0x197   : >> { %1194 = vmatpush3.bf16.msra.mxu0 %v1193_v4  ;;  %1225 = vmatpush3.bf16.msra.mxu1 %v1224_v10  ;;  %v1247_v50 = vpack.c.bf16 %v990_v48, %v989_v47  ;;  %v991_v52 = vld [vmem:[%s1437_s13 + $0x148] sm:$0xff]  ;;  %v325_v53 = vld [vmem:[%s1662_s1 + $0x40] sm:$0xf]  ;;  %v734_v35 = vld [vmem:[%s1664_s3 + $0x18] sm:$0xff]  ;;  %s1346_s13 = smov 127  }
 0x198   : >> { %1196 = vmatprep.subr.bf16.mxu0 %v1195_v7  ;;  %1227 = vmatprep.subr.bf16.mxu1 %v1226_v11 }
 0x19b   : >> { %1198 = vmatpush3.bf16.msra.mxu0 %v1197_v13  ;;  %1229 = vmatpush3.bf16.msra.mxu1 %v1228_v18 }
 0x19c   : >> { %1200 = vmatprep.subr.bf16.mxu0 %v1199_v16  ;;  %1231 = vmatprep.subr.bf16.mxu1 %v1230_v19 }
 0x19f   : >> { %1202 = vmatpush3.bf16.msra.mxu0 %v1201_v22  ;;  %1233 = vmatpush3.bf16.msra.mxu1 %v1232_v25 }
 0x1a0   : >> { %1204 = vmatprep.subr.bf16.mxu0 %v1203_v24  ;;  %1235 = vmatprep.subr.bf16.mxu1 %v1234_v26 }
 0x1a3   : >> { %1206 = vmatpush3.bf16.msra.mxu0 %v1205_v29  ;;  %1237 = vmatpush3.bf16.msra.mxu1 %v1236_v31  ;;  %v731_v29 = vld [vmem:[%s1664_s3] sm:$0xff]  ;;  %v733_v31 = vld [vmem:[%s1664_s3 + $0x10] sm:$0xff] }
 0x1a4   : >> { %1208 = vmatprep.subr.bf16.mxu0 %v1207_v30  ;;  %1239 = vmatprep.subr.bf16.mxu1 %v1238_v34  ;;  %v732_v30 = vld [vmem:[%s1664_s3 + $0x8] sm:$0xff] }
 0x1a5   : >> { %v1250_v34 = vpack.c.bf16 %v732_v30, %v731_v29 }
 0x1a7   : >> { %1210 = vmatpush3.bf16.msra.mxu0 %v1209_v39  ;;  %1241 = vmatpush3.bf16.msra.mxu1 %v1240_v32  ;;  %v1253_v32 = vpack.c.bf16 %v734_v35, %v733_v31 }
 0x1a8   : >> { %1211 = vmatprep.subr.bf16.mxu0 %v1340_v33  ;;  %1243 = vmatprep.subr.bf16.mxu1 %v1242_v40  ;;  %v735_v40 = vld [vmem:[%s1664_s3 + $0x20] sm:$0xff] }
 0x1aa   : >> { %401 = vmatmul.mubr.f32.vlgmr.msra.gmra.mrb[0].mxu0 %v317_v41 }
 0x1ab   : >> { %1213 = vmatpush3.bf16.msra.mxu0 %v1212_v42  ;;  %405 = vmatprep.mubr.f32.mxu0 %v321_v37 }
 0x1ac   : >> { %1116 = vmatprep.subr.mxu0 %v1341_v43  ;;  %1245 = vmatpush3.bf16.msra.mxu1 %v1244_v45 }
 0x1ad   : >> { %1249 = vmatprep.subr.bf16.mxu1 %v1340_v33 }
 0x1ae   : >> { %406 = vmatmul.mubr.f32.gmra.mrb[2].mxu0 %v320_v38 }
 0x1af   : >> { %410 = vmatprep.mubr.f32.mxu0 %v324_v46  ;;  %1117 = vmatpush3.msra.mxu0 %v316_v21 }
 0x1b0   : >> { %1246 = vmatprep.subr.bf16.mxu0 %v1340_v33  ;;  %599 = vmatmul.mubr.f32.vlgmr.msra.gmra.mrb[0].mxu1 %v317_v41  ;;  %v736_v41 = vld [vmem:[%s1664_s3 + $0x28] sm:$0xff] }
 0x1b1   : >> { %603 = vmatprep.mubr.f32.mxu1 %v321_v37  ;;  %1251 = vmatpush3.bf16.msra.mxu1 %v1250_v34  ;;  %v1256_v45 = vpack.c.bf16 %v736_v41, %v735_v40 }
 0x1b2   : >> { %411 = vmatmul.mubr.f32.gmra.mrb[4].mxu0 %v323_v44  ;;  %1252 = vmatprep.subr.bf16.mxu1 %v1340_v33 }
 0x1b3   : >> { %1118 = vmatprep.mubr.msk.f32.mxu0 %vm1342_vm5, %v1341_v43 }
 0x1b4   : >> { %604 = vmatmul.mubr.f32.gmra.mrb[2].mxu1 %v320_v38  ;;  %v737_v38 = vld [vmem:[%s1664_s3 + $0x30] sm:$0xff] }
 0x1b5   : >> { %608 = vmatprep.mubr.f32.mxu1 %v324_v46  ;;  %1254 = vmatpush3.bf16.msra.mxu1 %v1253_v32  ;;  %v738_v46 = vld [vmem:[%s1664_s3 + $0x38] sm:$0xff] }
 0x1b6   : >> { %1119 = vmatmul.mubr.msk.f32.vlgmr.msra.gmra.mrb[6].mxu0 %vm326_vm6, %v319_v49  ;;  %1255 = vmatprep.subr.bf16.mxu1 %v1340_v33  ;;  %v1259_v48 = vpack.c.bf16 %v738_v46, %v737_v38 }
 0x1b7   : >> { %1248 = vmatpush3.bf16.msra.mxu0 %v1247_v50  ;;  %1121 = vmatprep.mubr.msk.f32.mxu0 %vm1342_vm5, %v1341_v43  ;;  %v740_v50 = vld [vmem:[%s1664_s3 + $0x48] sm:$0xff] }
 0x1b8   : >> { %1131 = vmatprep.subr.mxu0 %v1341_v43  ;;  %609 = vmatmul.mubr.f32.gmra.mrb[4].mxu1 %v323_v44 }
 0x1b9   : >> { %1170 = vmatprep.mubr.msk.f32.mxu1 %vm1342_vm5, %v1341_v43  ;;  %1257 = vmatpush3.bf16.msra.mxu1 %v1256_v45 }
 0x1ba   : >> { %1122 = vmatmul.mubr.msk.f32.gmra.mrb[8].mxu0 %vm326_vm6, %v322_v51  ;;  %1258 = vmatprep.subr.bf16.mxu1 %v1340_v33 }
 0x1bb   : >> { %1124 = vmatprep.mubr.msk.f32.mxu0 %vm1342_vm5, %v1341_v43  ;;  %1132 = vmatpush3.msra.mxu0 %v991_v52  ;;  %v741_v52 = vld [vmem:[%s1664_s3 + $0x50] sm:$0xff] }
 0x1bd   : >> { %1260 = vmatpush3.bf16.msra.mxu1 %v1259_v48 }
 0x1be   : >> { %1125 = vmatmul.mubr.msk.f32.gmra.mrb[10].mxu0 %vm326_vm6, %v325_v53  ;;  %1261 = vmatprep.subr.bf16.mxu1 %v1340_v33 }
 0x1bf   : >> { %1133 = vmatprep.mubr.msk.f32.mxu0 %vm1342_vm5, %v1341_v43 }
 0x1c2   : >> { %1134 = vmatmul.mubr.msk.f32.vlgmr.msra.gmra.mrb[12].mxu0 %vm326_vm6, %v319_v49  ;;  %v739_v49 = vld [vmem:[%s1664_s3 + $0x40] sm:$0xff] }
 0x1c3   : >> { %1136 = vmatprep.mubr.msk.f32.mxu0 %vm1342_vm5, %v1341_v43 }
 0x1c6   : >> { %1137 = vmatmul.mubr.msk.f32.gmra.mrb[14].mxu0 %vm326_vm6, %v322_v51  ;;  %v1262_v51 = vpack.c.bf16 %v740_v50, %v739_v49 }
 0x1c7   : >> { %1139 = vmatprep.mubr.msk.f32.mxu0 %vm1342_vm5, %v1341_v43 }
 0x1c8   : >> { %1263 = vmatpush3.bf16.msra.mxu1 %v1262_v51 }
 0x1c9   : >> { %1264 = vmatprep.subr.bf16.mxu1 %v1340_v33 }
 0x1ca   : >> { %1140 = vmatmul.mubr.msk.f32.gmra.mrb[16].mxu0 %vm326_vm6, %v325_v53  ;;  %v742_v53 = vld [vmem:[%s1664_s3 + $0x58] sm:$0xff] }
 0x27d   : >> { %v1033_v54 = vpop.f32.mrb[0].mxu0 }
 0x27e   : >> { %v1034_v55 = vpop.f32.mrb[1].mxu0 }
 0x27f   : >> { %v1035_v56 = vadd.f32 %v1034_v55, %v1033_v54  ;;  %v1265_v54 = vpack.c.bf16 %v742_v53, %v741_v52  ;;  %v743_v55 = vld [vmem:[%s1664_s3 + $0x60] sm:$0xff] }
 0x281   : >> { %v1036_v57 = vpop.f32.mrb[2].mxu0  ;;  %1266 = vmatpush3.bf16.msra.mxu1 %v1265_v54 }
 0x282   : >> { %v1037_v58 = vpop.f32.mrb[3].mxu0  ;;  %1267 = vmatprep.subr.bf16.mxu1 %v1340_v33  ;;  %v745_v33 = vld [vmem:[%s1663_s2] sm:$0xff] }
 0x283   : >> { %v1038_v59 = vadd.f32 %v1037_v58, %v1036_v57  ;;  %v1080_v60 = vpop.f32.mrb[0].mxu1 }
 0x284   : >> { %v1081_v61 = vpop.f32.mrb[1].mxu1 }
 0x285   : >> { %v1039_v62 = vpop.f32.mrb[4].mxu0  ;;  %v1082_v63 = vadd.f32 %v1081_v61, %v1080_v60 }
 0x286   : >> { %v1040_v0 = vpop.f32.mrb[5].mxu0 }
 0x287   : >> { %v1041_v1 = vadd.f32 %v1040_v0, %v1039_v62  ;;  %v1083_v2 = vpop.f32.mrb[2].mxu1 }
 0x288   : >> { %v1084_v3 = vpop.f32.mrb[3].mxu1 }
 0x289   : >> { %v482_v4 = vpop.f32.mrb[6].mxu0  ;;  %v1085_v5 = vadd.f32 %v1084_v3, %v1083_v2  ;;  %v747_v2 = vld [vmem:[%s1663_s2 + $0x10] sm:$0xf] }
 0x28a   : >> { %v483_v6 = vadd.f32 %v1035_v56, %v482_v4  ;;  %v1120_v7 = vpop.f32.mrb[7].mxu0  ;;  %v744_v56 = vld [vmem:[%s1664_s3 + $0x68] sm:$0x3f] }
 0x28b   : >> { %v1086_v8 = vpop.f32.mrb[4].mxu1  ;;  %v1268_v57 = vpack.c.bf16 %v744_v56, %v743_v55 }
 0x28c   : >> { %v1087_v9 = vpop.f32.mrb[5].mxu1 }
 0x28d   : >> { %v487_v10 = vpop.f32.mrb[8].mxu0  ;;  %v1088_v11 = vadd.f32 %v1087_v9, %v1086_v8  ;;  %1270 = vmatpush3.bf16.msk.msra.mxu1 %vm1269_vm8, %v1268_v57 }
 0x28e   : >> { %v488_v12 = vadd.f32 %v1038_v59, %v487_v10  ;;  %v1123_v13 = vpop.f32.mrb[9].mxu0  ;;  %v1345_v59 = vmov 0  }
 0x28f   : >> { %1309 = vset.pattern.permute.xlu1 %v1345_v59  ;;  %1310 = vset.pattern.permute.xlu0 %v1345_v59 }
 0x291   : >> { %v492_v14 = vpop.f32.mrb[10].mxu0 }
 0x292   : >> { %v493_v15 = vadd.f32 %v1041_v1, %v492_v14  ;;  %v1126_v16 = vpop.f32.mrb[11].mxu0  ;;  %v746_v1 = vld [vmem:[%s1663_s2 + $0x8] sm:$0xff] }
 0x295   : >> { %v680_v17 = vpop.f32.mrb[12].mxu0 }
 0x296   : >> { %v681_v18 = vadd.f32 %v1082_v63, %v680_v17  ;;  %v1135_v19 = vpop.f32.mrb[13].mxu0 }
 0x298   : >> { %v1558_v20 = vmax.f32 %v483_v6, %v681_v18 }
 0x299   : >> { %v685_v21 = vpop.f32.mrb[14].mxu0 }
 0x29a   : >> { %v686_v22 = vadd.f32 %v1085_v5, %v685_v21  ;;  %v1138_v23 = vpop.f32.mrb[15].mxu0  ;;  %698 = vrot.lane.b32.xlu0 %v1558_v20, %s1343_s6 }
 0x29c   : >> { %v1562_v24 = vmax.f32 %v488_v12, %v686_v22 }
 0x29d   : >> { %v690_v25 = vpop.f32.mrb[16].mxu0 }
 0x29e   : >> { %v691_v26 = vadd.f32 %v1088_v11, %v690_v25  ;;  %v1141_v27 = vpop.f32.mrb[17].mxu0  ;;  %701 = vrot.lane.b32.xlu0 %v1562_v24, %s1343_s6 }
 0x2a0   : >> { %v1566_v28 = vmax.f32 %v493_v15, %v691_v26 }
 0x2a2   : >> { %704 = vrot.lane.b32.xlu1 %v1566_v28, %s1343_s6 }
 0x30c   : >> { %v699_v36 = vpop.permute.xlu0 %698 }
 0x30d   : >> { %v700_v39 = vsel %vm208_vm1, %v699_v36, %v1558_v20 }
 0x30e   : >> { %707 = vrot.lane.b32.xlu1 %v700_v39, %s1343_s6 }
 0x310   : >> { %v702_v42 = vpop.permute.xlu0 %701 }
 0x311   : >> { %v703_v37 = vsel %vm208_vm1, %v702_v42, %v1562_v24 }
 0x312   : >> { %709 = vrot.lane.b32.xlu0 %v703_v37, %s1343_s6 }
 0x314   : >> { %v705_v44 = vpop.permute.xlu1 %704 }
 0x315   : >> { %v706_v47 = vsel %vm208_vm1, %v705_v44, %v1566_v28 }
 0x316   : >> { %711 = vrot.lane.b32.xlu1 %v706_v47, %s1343_s6 }
 0x380   : >> { %v708_v58 = vpop.permute.xlu1 %707 }
 0x381   : >> { %v713_v60 = vsel %vm208_vm1, %v708_v58, %v1558_v20 }
 0x382   : >> { %719 = vrot.lane.b32.xlu0 %v713_v60, %s1346_s13 }
 0x384   : >> { %v710_v61 = vpop.permute.xlu0 %709 }
 0x385   : >> { %v714_v62 = vsel %vm208_vm1, %v710_v61, %v1562_v24 }
 0x386   : >> { %721 = vrot.lane.b32.xlu1 %v714_v62, %s1346_s13 }
 0x388   : >> { %v712_v63 = vpop.permute.xlu1 %711 }
 0x389   : >> { %v715_v0 = vsel %vm208_vm1, %v712_v63, %v1566_v28 }
 0x38a   : >> { %723 = vrot.lane.b32.xlu0 %v715_v0, %s1346_s13  ;;  %750 = vperm.xlu1 %1309, %v745_v33  }
 0x38e   : >> { %755 = vperm.xlu0 %1310, %v746_v1   ;;  %760 = vperm.xlu1 %1309, %v747_v2  }
 0x3f4   : >> { %v720_v3 = vpop.permute.xlu0 %719 }
 0x3f5   : >> { %v728_v4 = vmax.f32 %v1558_v20, %v720_v3 }
 0x3f7   : >> { %1171 = vmatmul.mubr.msk.f32.vlgmr.msra.gmra.mrb[6].mxu1 %vm265_vm0, %v728_v4 }
 0x3f8   : >> { %v722_v5 = vpop.permute.xlu1 %721  ;;  %1173 = vmatprep.mubr.msk.f32.mxu1 %vm1342_vm5, %v1341_v43 }
 0x3f9   : >> { %v729_v6 = vmax.f32 %v1562_v24, %v722_v5 }
 0x3fb   : >> { %1174 = vmatmul.mubr.msk.f32.gmra.mrb[8].mxu1 %vm265_vm0, %v729_v6 }
 0x3fc   : >> { %v724_v7 = vpop.permute.xlu0 %723  ;;  %1176 = vmatprep.mubr.msk.f32.mxu1 %vm1342_vm5, %v1341_v43 }
 0x3fd   : >> { %v730_v8 = vmax.f32 %v1566_v28, %v724_v7 }
 0x3ff   : >> { %1177 = vmatmul.mubr.msk.f32.gmra.mrb[10].mxu1 %vm265_vm0, %v730_v8 }
 0x409   : >> { %v751_v9 = vpop.permute.xlu1 %750 }
 0x40d   : >> { %v756_v13 = vpop.permute.xlu0 %755  ;;  %v761_v19 = vpop.permute.xlu1 %760 }
 0x4ca   : >> { %v843_v10 = vpop.f32.mrb[6].mxu1 }
 0x4cb   : >> { %v844_v11 = vadd.f32 %v843_v10, %v751_v9  ;;  %v1172_v12 = vpop.f32.mrb[7].mxu1 }
 0x4cd   : >> { %v857_v14 = vmax.f32 %v844_v11, 0.0 }
 0x4ce   : >> { %v848_v15 = vpop.f32.mrb[8].mxu1 }
 0x4cf   : >> { %863 = vst.msk [vmem:[%s861_s22] sm:$0xff] %vm862_vm9, %v857_v14  ;;  %v849_v16 = vadd.f32 %v848_v15, %v756_v13  ;;  %v1175_v17 = vpop.f32.mrb[9].mxu1 }
 0x4d1   : >> { %v858_v18 = vmax.f32 %v849_v16, 0.0  ;;  %277 = sbr.rel (!%p275_p5) target bundleno = 385 (0x181), region = 96 }
 0x4d2   : >> { %v853_v43 = vpop.f32.mrb[10].mxu1 }
 0x4d3   : >> { %864 = vst.msk [vmem:[%s861_s22 + $0x8] sm:$0xff] %vm862_vm9, %v858_v18  ;;  %v854_v20 = vadd.f32 %v853_v43, %v761_v19  ;;  %v1178_v21 = vpop.f32.mrb[11].mxu1 }
 0x4d5   : >> { %v859_v22 = vmax.f32 %v854_v20, 0.0 }
 0x4d7   : >> { %866 = vst.msk [vmem:[%s861_s22 + $0x10] sm:$0xf] %vm865_vm10, %v859_v22 }
 0x4d8 PF: > { %s14_s15 = sadd.s32 1, %s1325_s15  }
 0x4d9   : > { %p11_p6 = scmp.ge.s32.totalorder %s14_s15, 4  }
 0x4db   :  { %13 = sbr.rel (!%p11_p6) target bundleno = 1 (0x1), region = 107 }

// kernel: net_forward.5
= control target key start
LH: loop header
LB: loop body
LE: loop exit
PB: predicated region body
PF: predicated region fallthrough
CT: control target
= control target key end

     0   :  { %10 = vsyncpa [#allocation4], 0  ;;  %s6366_s18 = smov 0   ;;  %s7694_s0 = inlined_call_operand.vmem [shape: f32[2,57344], index: 0, kind: input, shape index: {}]   ;;  %s7695_s1 = inlined_call_operand.vmem [shape: f32[57344,50], index: 1, kind: input, shape index: {}]   ;;  %s7696_s2 = inlined_call_operand.vmem [shape: f32[1,50], index: 2, kind: input, shape index: {}]   ;;  %s7697_s3 = inlined_call_operand.vmem [shape: f32[50,10], index: 3, kind: input, shape index: {}]   ;;  %s7698_s4 = inlined_call_operand.vmem [shape: f32[1,10], index: 4, kind: input, shape index: {}]   ;;  %s7699_s5 = inlined_call_operand.hbm [shape: f32[2,10], index: 5, kind: output, shape index: {}]  }
   0x1 LB: > { %s6372_s19 = sadd.s32 4294967295, %s6328_s18   ;;  %p4059_p0 = scmp.ge.s32.totalorder %s6328_s18, 1  ;;  %s6328_s18 = sphi %s6366_s18, %s16_s18  }
   0x2   : > { %p195_p1 = scmp.lt.s32.totalorder %s6328_s18, 8 }
   0x4   : > { %p196_p2 = pnand %p4059_p0, %p195_p1 }
   0x5   : > { %s4060_s20 = sshll.u32 (!%p196_p2), %s6372_s19, 6  ;;  %s4062_s21 = sshll.u32 (!%p196_p2), %s6372_s19, 10 }
   0x6   : > { %199 = sbr.rel (%p196_p2) target bundleno = 1330 (0x532), region = 40  ;;  %p224_p3 = scmp.lt.s32.totalorder (!%p196_p2), %s4060_s20, 447 }
   0x7   : > { %p230_p4 = scmp.lt.s32.totalorder (!%p196_p2), %s4062_s21, 7167  ;;  %p4064_p5 = scmp.ne.s32.totalorder (!%p196_p2), %s6372_s19, 0 }
   0xd   : > { %s7701_s20 = smov (!%p224_p3, %s4060_s20), 447  ;;  %s7703_s21 = smov (!%p230_p4, %s4062_s21), 7167 }
   0xe   : > { %s4061_s22 = sshll.u32 %s7701_s20, 1  ;;  %s4063_s26 = sshll.u32 %s7703_s21, 3  ;;  %vm239_vm0 = vcmask (!%p4064_p5), 402432   ;;  %v6330_v0 = vmov (!%p4064_p5), 0.0  }
   0xf   : > { %s6381_s25 = scalar_lea.vmem %s7694_s0, %s4061_s22  ;;  %s6386_s29 = scalar_lea.vmem %s7695_s1, %s4063_s26  ;;  %240 = vst.msk [vmem:[#allocation2] sm:$0x3] (!%p4064_p5), %vm239_vm0, %v6330_v0 }
  0x10   : > { %238 = sbr.rel (%p4064_p5) target bundleno = 23 (0x17), region = 44 }
  0x17 PF: > { %v274_v1 = vld [vmem:[%s6386_s29 + $0x80] sm:$0xff]  ;;  %v275_v2 = vld [vmem:[%s6386_s29 + $0x88] sm:$0xff]  ;;  %v276_v12 = vld [vmem:[%s6386_s29 + $0x90] sm:$0xff]  ;;  %v6331_v48 = vmov 1983009808   ;;  %v1302_v50 = vlaneseq  ;;  %vm3875_vm1 = vcmask 402432  }
  0x18   : > { %v306_v3 = vld [vmem:[%s6386_s29 + $0x180] sm:$0xff]  ;;  %v5219_v4 = vpack.c.bf16 %v275_v2, %v274_v1  ;;  %v307_v5 = vld [vmem:[%s6386_s29 + $0x188] sm:$0xff]  ;;  %v277_v14 = vld [vmem:[%s6386_s29 + $0x98] sm:$0xff]  ;;  %v1300_v49 = vunpack.c.l.s4 %v6331_v48  ;;  %p4065_p6 = scmp.ne.s32.totalorder %s6372_s19, 6 }
  0x19   : > { %v258_v6 = vld [vmem:[%s6386_s29] sm:$0xff]  ;;  %v259_v7 = vld [vmem:[%s6386_s29 + $0x8] sm:$0xff]  ;;  %v5251_v8 = vpack.c.bf16 %v307_v5, %v306_v3  ;;  %v308_v15 = vld [vmem:[%s6386_s29 + $0x190] sm:$0xff]  ;;  %v5223_v17 = vpack.c.bf16 %v277_v14, %v276_v12  ;;  %v1303_v1 = vshrl.u32 %v1302_v50, 7  ;;  %vm6333_vm2 = vmmov (!%p4065_p6), 0  }
  0x1a   : > { %v5221_v9 = vpack.c.bf16 %v259_v7, %v258_v6  ;;  %v290_v10 = vld [vmem:[%s6386_s29 + $0x100] sm:$0xff]  ;;  %v291_v11 = vld [vmem:[%s6386_s29 + $0x108] sm:$0xff]  ;;  %5220 = vmatprep.subr.bf16.mxu0 %v5219_v4  ;;  %v309_v16 = vld [vmem:[%s6386_s29 + $0x198] sm:$0xff]  ;;  %v1301_v0 = vunpack.c.0.s8 %v1300_v49  ;;  %vm3909_vm3 = vcmask (!%p4065_p6), 1041408   ;;  %vm3905_vm4 = vcmask (!%p4065_p6), 408576  }
  0x1b   : > { %v5253_v13 = vpack.c.bf16 %v291_v11, %v290_v10  ;;  %5252 = vmatprep.subr.bf16.mxu1 %v5251_v8  ;;  %v5255_v18 = vpack.c.bf16 %v309_v16, %v308_v15  ;;  %v260_v19 = vld [vmem:[%s6386_s29 + $0x10] sm:$0xff]  ;;  %v261_v20 = vld [vmem:[%s6386_s29 + $0x18] sm:$0xff]  ;;  %v278_v24 = vld [vmem:[%s6386_s29 + $0xa0] sm:$0xff]  ;;  %vm3983_vm5 = vcmask (!%p4065_p6), 74752  }
  0x1c   : > { %5222 = vmatpush3.bf16.msra.mxu0 %v5221_v9  ;;  %v292_v21 = vld [vmem:[%s6386_s29 + $0x110] sm:$0xff]  ;;  %v5225_v22 = vpack.c.bf16 %v261_v20, %v260_v19  ;;  %v293_v23 = vld [vmem:[%s6386_s29 + $0x118] sm:$0xff]  ;;  %v279_v25 = vld [vmem:[%s6386_s29 + $0xa8] sm:$0xff]  ;;  %v6439_v14 = vsub.s32 %v1301_v0, %v1303_v1 }
  0x1d   : > { %5254 = vmatpush3.bf16.msra.mxu1 %v5253_v13  ;;  %5224 = vmatprep.subr.bf16.mxu0 %v5223_v17  ;;  %v5257_v26 = vpack.c.bf16 %v293_v23, %v292_v21  ;;  %v5227_v27 = vpack.c.bf16 %v279_v25, %v278_v24  ;;  %v310_v28 = vld [vmem:[%s6386_s29 + $0x1a0] sm:$0xff]  ;;  %v311_v29 = vld [vmem:[%s6386_s29 + $0x1a8] sm:$0xff]  ;;  %v280_v36 = vld [vmem:[%s6386_s29 + $0xb0] sm:$0xff] }
  0x1e   : > { %5256 = vmatprep.subr.bf16.mxu1 %v5255_v18  ;;  %v262_v30 = vld [vmem:[%s6386_s29 + $0x20] sm:$0xff]  ;;  %v5259_v31 = vpack.c.bf16 %v311_v29, %v310_v28  ;;  %v263_v32 = vld [vmem:[%s6386_s29 + $0x28] sm:$0xff]  ;;  %v281_v37 = vld [vmem:[%s6386_s29 + $0xb8] sm:$0xff] }
  0x1f   : > { %v294_v33 = vld [vmem:[%s6386_s29 + $0x120] sm:$0xff]  ;;  %v295_v34 = vld [vmem:[%s6386_s29 + $0x128] sm:$0xff]  ;;  %v5229_v35 = vpack.c.bf16 %v263_v32, %v262_v30  ;;  %v312_v38 = vld [vmem:[%s6386_s29 + $0x1b0] sm:$0xff]  ;;  %v5231_v40 = vpack.c.bf16 %v281_v37, %v280_v36 }
  0x20   : > { %5226 = vmatpush3.bf16.msra.mxu0 %v5225_v22  ;;  %v5261_v39 = vpack.c.bf16 %v295_v34, %v294_v33  ;;  %v313_v41 = vld [vmem:[%s6386_s29 + $0x1b8] sm:$0xff]  ;;  %v264_v42 = vld [vmem:[%s6386_s29 + $0x30] sm:$0xff]  ;;  %v282_v47 = vld [vmem:[%s6386_s29 + $0xc0] sm:$0xff] }
  0x21   : > { %5258 = vmatpush3.bf16.msra.mxu1 %v5257_v26  ;;  %5228 = vmatprep.subr.bf16.mxu0 %v5227_v27  ;;  %v265_v43 = vld [vmem:[%s6386_s29 + $0x38] sm:$0xff]  ;;  %v5263_v44 = vpack.c.bf16 %v313_v41, %v312_v38  ;;  %v296_v45 = vld [vmem:[%s6386_s29 + $0x130] sm:$0xff]  ;;  %v283_v51 = vld [vmem:[%s6386_s29 + $0xc8] sm:$0xff] }
  0x22   : > { %5260 = vmatprep.subr.bf16.mxu1 %v5259_v31  ;;  %v297_v46 = vld [vmem:[%s6386_s29 + $0x138] sm:$0xff]  ;;  %v314_v52 = vld [vmem:[%s6386_s29 + $0x1c0] sm:$0xff]  ;;  %v315_v53 = vld [vmem:[%s6386_s29 + $0x1c8] sm:$0xff]  ;;  %v5233_v54 = vpack.c.bf16 %v265_v43, %v264_v42  ;;  %v5235_v56 = vpack.c.bf16 %v283_v51, %v282_v47 }
  0x23   : > { %v5265_v55 = vpack.c.bf16 %v297_v46, %v296_v45  ;;  %v266_v57 = vld [vmem:[%s6386_s29 + $0x40] sm:$0xff]  ;;  %v267_v58 = vld [vmem:[%s6386_s29 + $0x48] sm:$0xff]  ;;  %v5267_v60 = vpack.c.bf16 %v315_v53, %v314_v52  ;;  %v284_v62 = vld [vmem:[%s6386_s29 + $0xd0] sm:$0xff] }
  0x24   : > { %5230 = vmatpush3.bf16.msra.mxu0 %v5229_v35  ;;  %v298_v59 = vld [vmem:[%s6386_s29 + $0x140] sm:$0xff]  ;;  %v299_v61 = vld [vmem:[%s6386_s29 + $0x148] sm:$0xff]  ;;  %v285_v63 = vld [vmem:[%s6386_s29 + $0xd8] sm:$0xff]  ;;  %v5237_v4 = vpack.c.bf16 %v267_v58, %v266_v57 }
  0x25   : > { %5262 = vmatpush3.bf16.msra.mxu1 %v5261_v39  ;;  %5232 = vmatprep.subr.bf16.mxu0 %v5231_v40  ;;  %v316_v2 = vld [vmem:[%s6386_s29 + $0x1d0] sm:$0xff]  ;;  %v317_v3 = vld [vmem:[%s6386_s29 + $0x1d8] sm:$0xff]  ;;  %v5269_v5 = vpack.c.bf16 %v299_v61, %v298_v59  ;;  %v5239_v6 = vpack.c.bf16 %v285_v63, %v284_v62  ;;  %v286_v12 = vld [vmem:[%s6386_s29 + $0xe0] sm:$0xff] }
  0x26   : > { %5264 = vmatprep.subr.bf16.mxu1 %v5263_v44  ;;  %v268_v7 = vld [vmem:[%s6386_s29 + $0x50] sm:$0xff]  ;;  %v269_v8 = vld [vmem:[%s6386_s29 + $0x58] sm:$0xff]  ;;  %v5271_v10 = vpack.c.bf16 %v317_v3, %v316_v2  ;;  %v287_v13 = vld [vmem:[%s6386_s29 + $0xe8] sm:$0xff] }
  0x27   : > { %v300_v9 = vld [vmem:[%s6386_s29 + $0x150] sm:$0xff]  ;;  %v301_v11 = vld [vmem:[%s6386_s29 + $0x158] sm:$0xff]  ;;  %v318_v15 = vld [vmem:[%s6386_s29 + $0x1e0] sm:$0xff]  ;;  %v5241_v17 = vpack.c.bf16 %v269_v8, %v268_v7  ;;  %v5243_v20 = vpack.c.bf16 %v287_v13, %v286_v12 }
  0x28   : > { %5234 = vmatpush3.bf16.msra.mxu0 %v5233_v54  ;;  %v319_v16 = vld [vmem:[%s6386_s29 + $0x1e8] sm:$0xff]  ;;  %v270_v18 = vld [vmem:[%s6386_s29 + $0x60] sm:$0xff]  ;;  %v5273_v19 = vpack.c.bf16 %v301_v11, %v300_v9  ;;  %v288_v26 = vld [vmem:[%s6386_s29 + $0xf0] sm:$0xff] }
  0x29   : > { %5266 = vmatpush3.bf16.msra.mxu1 %v5265_v55  ;;  %5236 = vmatprep.subr.bf16.mxu0 %v5235_v56  ;;  %v271_v21 = vld [vmem:[%s6386_s29 + $0x68] sm:$0xff]  ;;  %v302_v22 = vld [vmem:[%s6386_s29 + $0x160] sm:$0xff]  ;;  %v5275_v24 = vpack.c.bf16 %v319_v16, %v318_v15  ;;  %v289_v27 = vld [vmem:[%s6386_s29 + $0xf8] sm:$0xff] }
  0x2a   : > { %5268 = vmatprep.subr.bf16.mxu1 %v5267_v60  ;;  %v242_v23 = vld [vmem:[%s6381_s25] sm:$0xff]  ;;  %v303_v25 = vld [vmem:[%s6386_s29 + $0x168] sm:$0xff]  ;;  %v320_v30 = vld [vmem:[%s6386_s29 + $0x1f0] sm:$0xff]  ;;  %v5245_v32 = vpack.c.bf16 %v271_v21, %v270_v18  ;;  %v5247_v36 = vpack.c.bf16 %v289_v27, %v288_v26 }
  0x2b   : > { %v1305_v28 = vrot.slane %v242_v23, %v6439_v14  ;;  %v1298_v29 = vcombine.high %v242_v23, %v242_v23  ;;  %v321_v31 = vld [vmem:[%s6386_s29 + $0x1f8] sm:$0xff]  ;;  %v5277_v35 = vpack.c.bf16 %v303_v25, %v302_v22  ;;  %v272_v37 = vld [vmem:[%s6386_s29 + $0x70] sm:$0xff]  ;;  %v338_v43 = vld [vmem:[%s6386_s29 + $0x280] sm:$0xff] }
  0x2c   : > { %5238 = vmatpush3.bf16.msra.mxu0 %v5237_v4  ;;  %v273_v38 = vld [vmem:[%s6386_s29 + $0x78] sm:$0xff]  ;;  %v304_v39 = vld [vmem:[%s6386_s29 + $0x170] sm:$0xff]  ;;  %v5279_v40 = vpack.c.bf16 %v321_v31, %v320_v30  ;;  %v339_v44 = vld [vmem:[%s6386_s29 + $0x288] sm:$0xff] }
  0x2d   : > { %5270 = vmatpush3.bf16.msra.mxu1 %v5269_v5  ;;  %5240 = vmatprep.subr.bf16.mxu0 %v5239_v6  ;;  %v1313_v33 = vcombine.high %v1305_v28, %v1305_v28  ;;  %v1312_v34 = vrot.slane %v1298_v29, %v6439_v14  ;;  %v305_v41 = vld [vmem:[%s6386_s29 + $0x178] sm:$0xff]  ;;  %v370_v45 = vld [vmem:[%s6386_s29 + $0x380] sm:$0xff]  ;;  %v371_v46 = vld [vmem:[%s6386_s29 + $0x388] sm:$0xff]  ;;  %v5249_v47 = vpack.c.bf16 %v273_v38, %v272_v37 }
  0x2e   : > { %5272 = vmatprep.subr.bf16.mxu1 %v5271_v10  ;;  %v5281_v48 = vpack.c.bf16 %v305_v41, %v304_v39  ;;  %v5283_v49 = vpack.c.bf16 %v339_v44, %v338_v43  ;;  %v322_v50 = vld [vmem:[%s6386_s29 + $0x200] sm:$0xff]  ;;  %v323_v51 = vld [vmem:[%s6386_s29 + $0x208] sm:$0xff]  ;;  %v5315_v53 = vpack.c.bf16 %v371_v46, %v370_v45  ;;  %v340_v55 = vld [vmem:[%s6386_s29 + $0x290] sm:$0xff] }
  0x2f   : > { %1698 = vmatprep.mubr.f32.mxu0 %v1313_v33  ;;  %v1314_v42 = vcombine.high %v1312_v34, %v1312_v34  ;;  %v354_v52 = vld [vmem:[%s6386_s29 + $0x300] sm:$0xff]  ;;  %v355_v54 = vld [vmem:[%s6386_s29 + $0x308] sm:$0xff]  ;;  %v341_v56 = vld [vmem:[%s6386_s29 + $0x298] sm:$0xff]  ;;  %v5285_v59 = vpack.c.bf16 %v323_v51, %v322_v50 }
  0x30   : > { %5242 = vmatpush3.bf16.msra.mxu0 %v5241_v17  ;;  %v372_v57 = vld [vmem:[%s6386_s29 + $0x390] sm:$0xff]  ;;  %v373_v58 = vld [vmem:[%s6386_s29 + $0x398] sm:$0xff]  ;;  %v5317_v60 = vpack.c.bf16 %v355_v54, %v354_v52  ;;  %v5287_v61 = vpack.c.bf16 %v341_v56, %v340_v55  ;;  %v342_v3 = vld [vmem:[%s6386_s29 + $0x2a0] sm:$0xff] }
  0x31   : > { %5274 = vmatpush3.bf16.msra.mxu1 %v5273_v19  ;;  %5244 = vmatprep.subr.bf16.mxu0 %v5243_v20  ;;  %v324_v62 = vld [vmem:[%s6386_s29 + $0x210] sm:$0xff]  ;;  %v325_v63 = vld [vmem:[%s6386_s29 + $0x218] sm:$0xff]  ;;  %v5319_v1 = vpack.c.bf16 %v373_v58, %v372_v57  ;;  %v343_v4 = vld [vmem:[%s6386_s29 + $0x2a8] sm:$0xff] }
  0x32   : > { %5276 = vmatprep.subr.bf16.mxu1 %v5275_v24  ;;  %1768 = vmatprep.mubr.f32.mxu1 %v1314_v42  ;;  %v356_v0 = vld [vmem:[%s6386_s29 + $0x310] sm:$0xff]  ;;  %v357_v2 = vld [vmem:[%s6386_s29 + $0x318] sm:$0xff]  ;;  %v374_v5 = vld [vmem:[%s6386_s29 + $0x3a0] sm:$0xff]  ;;  %v5289_v7 = vpack.c.bf16 %v325_v63, %v324_v62  ;;  %v5291_v9 = vpack.c.bf16 %v343_v4, %v342_v3 }
  0x33   : > { %v375_v6 = vld [vmem:[%s6386_s29 + $0x3a8] sm:$0xff]  ;;  %v5321_v8 = vpack.c.bf16 %v357_v2, %v356_v0  ;;  %v326_v10 = vld [vmem:[%s6386_s29 + $0x220] sm:$0xff]  ;;  %v344_v16 = vld [vmem:[%s6386_s29 + $0x2b0] sm:$0xff] }
  0x34   : > { %5246 = vmatpush3.bf16.msra.mxu0 %v5245_v32  ;;  %v327_v11 = vld [vmem:[%s6386_s29 + $0x228] sm:$0xff]  ;;  %v358_v12 = vld [vmem:[%s6386_s29 + $0x320] sm:$0xff]  ;;  %v5323_v13 = vpack.c.bf16 %v375_v6, %v374_v5  ;;  %v345_v17 = vld [vmem:[%s6386_s29 + $0x2b8] sm:$0xff] }
  0x35   : > { %5278 = vmatpush3.bf16.msra.mxu1 %v5277_v35  ;;  %5248 = vmatprep.subr.bf16.mxu0 %v5247_v36  ;;  %v359_v15 = vld [vmem:[%s6386_s29 + $0x328] sm:$0xff]  ;;  %v376_v18 = vld [vmem:[%s6386_s29 + $0x3b0] sm:$0xff]  ;;  %v377_v19 = vld [vmem:[%s6386_s29 + $0x3b8] sm:$0xff]  ;;  %v5293_v20 = vpack.c.bf16 %v327_v11, %v326_v10  ;;  %v5295_v22 = vpack.c.bf16 %v345_v17, %v344_v16 }
  0x36   : > { %5280 = vmatprep.subr.bf16.mxu1 %v5279_v40  ;;  %v5325_v21 = vpack.c.bf16 %v359_v15, %v358_v12  ;;  %v328_v23 = vld [vmem:[%s6386_s29 + $0x230] sm:$0xff]  ;;  %v329_v24 = vld [vmem:[%s6386_s29 + $0x238] sm:$0xff]  ;;  %v5327_v26 = vpack.c.bf16 %v377_v19, %v376_v18  ;;  %v347_v29 = vld [vmem:[%s6386_s29 + $0x2c8] sm:$0xff] }
  0x37   : > { %v360_v25 = vld [vmem:[%s6386_s29 + $0x330] sm:$0xff]  ;;  %v361_v27 = vld [vmem:[%s6386_s29 + $0x338] sm:$0xff]  ;;  %v378_v30 = vld [vmem:[%s6386_s29 + $0x3c0] sm:$0xff]  ;;  %v5297_v33 = vpack.c.bf16 %v329_v24, %v328_v23 }
  0x38   : > { %5250 = vmatpush3.bf16.msra.mxu0 %v5249_v47  ;;  %v379_v31 = vld [vmem:[%s6386_s29 + $0x3c8] sm:$0xff]  ;;  %v5329_v36 = vpack.c.bf16 %v361_v27, %v360_v25  ;;  %v330_v38 = vld [vmem:[%s6386_s29 + $0x240] sm:$0xff]  ;;  %v348_v43 = vld [vmem:[%s6386_s29 + $0x2d0] sm:$0xff] }
  0x39   : > { %5282 = vmatpush3.bf16.msra.mxu1 %v5281_v48  ;;  %5284 = vmatprep.subr.bf16.mxu0 %v5283_v49  ;;  %v243_v32 = vld [vmem:[%s6381_s25 + $0x8] sm:$0xff]  ;;  %v362_v40 = vld [vmem:[%s6386_s29 + $0x340] sm:$0xff]  ;;  %v5331_v41 = vpack.c.bf16 %v379_v31, %v378_v30  ;;  %v349_v44 = vld [vmem:[%s6386_s29 + $0x2d8] sm:$0xff] }
  0x3a   : > { %5316 = vmatprep.subr.bf16.mxu1 %v5315_v53  ;;  %v1315_v35 = vcombine.high %v243_v32, %v243_v32  ;;  %v331_v39 = vld [vmem:[%s6386_s29 + $0x248] sm:$0xff]  ;;  %v380_v47 = vld [vmem:[%s6386_s29 + $0x3d0] sm:$0xff]  ;;  %v381_v48 = vld [vmem:[%s6386_s29 + $0x3d8] sm:$0xff]  ;;  %v5303_v52 = vpack.c.bf16 %v349_v44, %v348_v43 }
  0x3b   : > { %1699 = vmatmul.mubr.f32.vlgmr.msra.gmra.mrb[0].mxu0 %v1305_v28  ;;  %v346_v28 = vld [vmem:[%s6386_s29 + $0x2c0] sm:$0xff]  ;;  %v363_v42 = vld [vmem:[%s6386_s29 + $0x348] sm:$0xff]  ;;  %v5301_v49 = vpack.c.bf16 %v331_v39, %v330_v38  ;;  %v332_v53 = vld [vmem:[%s6386_s29 + $0x250] sm:$0xff]  ;;  %v5335_v56 = vpack.c.bf16 %v381_v48, %v380_v47 }
  0x3c   : > { %1769 = vmatmul.mubr.f32.vlgmr.msra.gmra.mrb[0].mxu1 %v1312_v34  ;;  %5286 = vmatpush3.bf16.msra.mxu0 %v5285_v59  ;;  %v6496_v34 = vrot.slane %v243_v32, %v6439_v14  ;;  %v5299_v37 = vpack.c.bf16 %v347_v29, %v346_v28  ;;  %v6507_v46 = vrot.slane %v1315_v35, %v6439_v14  ;;  %v333_v54 = vld [vmem:[%s6386_s29 + $0x258] sm:$0xff]  ;;  %v364_v55 = vld [vmem:[%s6386_s29 + $0x350] sm:$0xff]  ;;  %v350_v58 = vld [vmem:[%s6386_s29 + $0x2e0] sm:$0xff] }
  0x3d   : > { %5318 = vmatpush3.bf16.msra.mxu1 %v5317_v60  ;;  %5288 = vmatprep.subr.bf16.mxu0 %v5287_v61  ;;  %v5333_v51 = vpack.c.bf16 %v363_v42, %v362_v40  ;;  %v365_v57 = vld [vmem:[%s6386_s29 + $0x358] sm:$0xff]  ;;  %v351_v59 = vld [vmem:[%s6386_s29 + $0x2e8] sm:$0xff]  ;;  %v382_v60 = vld [vmem:[%s6386_s29 + $0x3e0] sm:$0xff]  ;;  %v5305_v62 = vpack.c.bf16 %v333_v54, %v332_v53 }
  0x3e   : > { %5320 = vmatprep.subr.bf16.mxu1 %v5319_v1  ;;  %v1330_v45 = vcombine.high %v6496_v34, %v6496_v34  ;;  %v1331_v50 = vcombine.high %v6507_v46, %v6507_v46  ;;  %v383_v61 = vld [vmem:[%s6386_s29 + $0x3e8] sm:$0xff]  ;;  %v5337_v63 = vpack.c.bf16 %v365_v57, %v364_v55  ;;  %v5307_v0 = vpack.c.bf16 %v351_v59, %v350_v58  ;;  %v334_v1 = vld [vmem:[%s6386_s29 + $0x260] sm:$0xff]  ;;  %v352_v6 = vld [vmem:[%s6386_s29 + $0x2f0] sm:$0xff] }
  0x3f   : > { %v335_v2 = vld [vmem:[%s6386_s29 + $0x268] sm:$0xff]  ;;  %v366_v3 = vld [vmem:[%s6386_s29 + $0x360] sm:$0xff]  ;;  %v5339_v4 = vpack.c.bf16 %v383_v61, %v382_v60  ;;  %v337_v15 = vld [vmem:[%s6386_s29 + $0x278] sm:$0xff] }
  0x40   : > { %5290 = vmatpush3.bf16.msra.mxu0 %v5289_v7  ;;  %1838 = vmatprep.mubr.f32.mxu0 %v1330_v45  ;;  %v367_v5 = vld [vmem:[%s6386_s29 + $0x368] sm:$0xff]  ;;  %v353_v7 = vld [vmem:[%s6386_s29 + $0x2f8] sm:$0xff]  ;;  %v5309_v10 = vpack.c.bf16 %v335_v2, %v334_v1  ;;  %v368_v16 = vld [vmem:[%s6386_s29 + $0x370] sm:$0xff] }
  0x41   : > { %5322 = vmatpush3.bf16.msra.mxu1 %v5321_v8  ;;  %5292 = vmatprep.subr.bf16.mxu0 %v5291_v9  ;;  %v384_v8 = vld [vmem:[%s6386_s29 + $0x3f0] sm:$0xff]  ;;  %v385_v9 = vld [vmem:[%s6386_s29 + $0x3f8] sm:$0xff]  ;;  %v5341_v11 = vpack.c.bf16 %v367_v5, %v366_v3  ;;  %v5311_v12 = vpack.c.bf16 %v353_v7, %v352_v6  ;;  %v402_v19 = vld [vmem:[%s6386_s29 + $0x480] sm:$0xff] }
  0x42   : > { %5324 = vmatprep.subr.bf16.mxu1 %v5323_v13  ;;  %1908 = vmatprep.mubr.f32.mxu1 %v1331_v50  ;;  %v336_v13 = vld [vmem:[%s6386_s29 + $0x270] sm:$0xff]  ;;  %v5343_v17 = vpack.c.bf16 %v385_v9, %v384_v8  ;;  %v369_v18 = vld [vmem:[%s6386_s29 + $0x378] sm:$0xff]  ;;  %v386_v24 = vld [vmem:[%s6386_s29 + $0x400] sm:$0xff] }
  0x43   : > { %v5313_v23 = vpack.c.bf16 %v337_v15, %v336_v13  ;;  %v5345_v25 = vpack.c.bf16 %v369_v18, %v368_v16  ;;  %v387_v27 = vld [vmem:[%s6386_s29 + $0x408] sm:$0xff]  ;;  %v418_v28 = vld [vmem:[%s6386_s29 + $0x500] sm:$0xff]  ;;  %v404_v31 = vld [vmem:[%s6386_s29 + $0x490] sm:$0xff] }
  0x44   : > { %5294 = vmatpush3.bf16.msra.mxu0 %v5293_v20  ;;  %v403_v20 = vld [vmem:[%s6386_s29 + $0x488] sm:$0xff]  ;;  %v405_v32 = vld [vmem:[%s6386_s29 + $0x498] sm:$0xff]  ;;  %v244_v38 = vld [vmem:[%s6381_s25 + $0x10] sm:$0xff] }
  0x45   : > { %5326 = vmatpush3.bf16.msra.mxu1 %v5325_v21  ;;  %5296 = vmatprep.subr.bf16.mxu0 %v5295_v22  ;;  %v434_v21 = vld [vmem:[%s6386_s29 + $0x580] sm:$0xff]  ;;  %v435_v22 = vld [vmem:[%s6386_s29 + $0x588] sm:$0xff]  ;;  %v437_v35 = vld [vmem:[%s6386_s29 + $0x598] sm:$0xff]  ;;  %v5351_v39 = vpack.c.bf16 %v405_v32, %v404_v31  ;;  %v6550_v43 = vrot.slane %v244_v38, %v6439_v14  ;;  %v1332_v44 = vcombine.high %v244_v38, %v244_v38 }
  0x46   : > { %5328 = vmatprep.subr.bf16.mxu1 %v5327_v26  ;;  %v5347_v26 = vpack.c.bf16 %v403_v20, %v402_v19  ;;  %v419_v29 = vld [vmem:[%s6386_s29 + $0x508] sm:$0xff]  ;;  %v5379_v30 = vpack.c.bf16 %v435_v22, %v434_v21  ;;  %v388_v40 = vld [vmem:[%s6386_s29 + $0x410] sm:$0xff]  ;;  %v421_v47 = vld [vmem:[%s6386_s29 + $0x518] sm:$0xff] }
  0x47   : > { %v420_v42 = vld [vmem:[%s6386_s29 + $0x510] sm:$0xff]  ;;  %v406_v48 = vld [vmem:[%s6386_s29 + $0x4a0] sm:$0xff]  ;;  %v6561_v53 = vrot.slane %v1332_v44, %v6439_v14  ;;  %v391_v57 = vld [vmem:[%s6386_s29 + $0x428] sm:$0xff] }
  0x48   : > { %5298 = vmatpush3.bf16.msra.mxu0 %v5297_v33  ;;  %v436_v33 = vld [vmem:[%s6386_s29 + $0x590] sm:$0xff]  ;;  %v438_v50 = vld [vmem:[%s6386_s29 + $0x5a0] sm:$0xff]  ;;  %v423_v61 = vld [vmem:[%s6386_s29 + $0x528] sm:$0xff] }
  0x49   : > { %5330 = vmatpush3.bf16.msra.mxu1 %v5329_v36  ;;  %5300 = vmatprep.subr.bf16.mxu0 %v5299_v37  ;;  %v5349_v36 = vpack.c.bf16 %v387_v27, %v386_v24  ;;  %v5381_v37 = vpack.c.bf16 %v419_v29, %v418_v28  ;;  %v5383_v45 = vpack.c.bf16 %v437_v35, %v436_v33  ;;  %v422_v58 = vld [vmem:[%s6386_s29 + $0x520] sm:$0xff]  ;;  %v393_v5 = vld [vmem:[%s6386_s29 + $0x438] sm:$0xff]  ;;  %v424_v6 = vld [vmem:[%s6386_s29 + $0x530] sm:$0xff] }
  0x4a   : > { %5332 = vmatprep.subr.bf16.mxu1 %v5331_v41  ;;  %v389_v41 = vld [vmem:[%s6386_s29 + $0x418] sm:$0xff]  ;;  %v1348_v59 = vcombine.high %v6561_v53, %v6561_v53  ;;  %v5389_v2 = vpack.c.bf16 %v423_v61, %v422_v58  ;;  %v410_v9 = vld [vmem:[%s6386_s29 + $0x4c0] sm:$0xff]  ;;  %v395_v18 = vld [vmem:[%s6386_s29 + $0x448] sm:$0xff] }
  0x4b   : > { %v5353_v54 = vpack.c.bf16 %v389_v41, %v388_v40  ;;  %v425_v8 = vld [vmem:[%s6386_s29 + $0x538] sm:$0xff]  ;;  %v426_v19 = vld [vmem:[%s6386_s29 + $0x540] sm:$0xff]  ;;  %v427_v21 = vld [vmem:[%s6386_s29 + $0x548] sm:$0xff] }
  0x4c   : > { %5302 = vmatpush3.bf16.msra.mxu0 %v5301_v49  ;;  %v407_v49 = vld [vmem:[%s6386_s29 + $0x4a8] sm:$0xff]  ;;  %v5393_v15 = vpack.c.bf16 %v425_v8, %v424_v6  ;;  %v412_v22 = vld [vmem:[%s6386_s29 + $0x4d0] sm:$0xff]  ;;  %v5397_v27 = vpack.c.bf16 %v427_v21, %v426_v19  ;;  %v429_v33 = vld [vmem:[%s6386_s29 + $0x558] sm:$0xff] }
  0x4d   : > { %5334 = vmatpush3.bf16.msra.mxu1 %v5333_v51  ;;  %5304 = vmatprep.subr.bf16.mxu0 %v5303_v52  ;;  %v439_v51 = vld [vmem:[%s6386_s29 + $0x5a8] sm:$0xff]  ;;  %v1347_v52 = vcombine.high %v6550_v43, %v6550_v43  ;;  %v5355_v55 = vpack.c.bf16 %v407_v49, %v406_v48  ;;  %v444_v24 = vld [vmem:[%s6386_s29 + $0x5d0] sm:$0xff]  ;;  %v414_v35 = vld [vmem:[%s6386_s29 + $0x4e0] sm:$0xff] }
  0x4e   : > { %5336 = vmatprep.subr.bf16.mxu1 %v5335_v56  ;;  %v390_v56 = vld [vmem:[%s6386_s29 + $0x420] sm:$0xff]  ;;  %v5387_v60 = vpack.c.bf16 %v439_v51, %v438_v50  ;;  %v396_v29 = vld [vmem:[%s6386_s29 + $0x450] sm:$0xff]  ;;  %v447_v38 = vld [vmem:[%s6386_s29 + $0x5e8] sm:$0xff] }
  0x4f   : > { %v5357_v1 = vpack.c.bf16 %v391_v57, %v390_v56  ;;  %v428_v31 = vld [vmem:[%s6386_s29 + $0x550] sm:$0xff]  ;;  %v399_v44 = vld [vmem:[%s6386_s29 + $0x468] sm:$0xff]  ;;  %v417_v50 = vld [vmem:[%s6386_s29 + $0x4f8] sm:$0xff] }
  0x50   : > { %5306 = vmatpush3.bf16.msra.mxu0 %v5305_v62  ;;  %v409_v62 = vld [vmem:[%s6386_s29 + $0x4b8] sm:$0xff]  ;;  %v5401_v40 = vpack.c.bf16 %v429_v33, %v428_v31  ;;  %v431_v48 = vld [vmem:[%s6386_s29 + $0x568] sm:$0xff]  ;;  %v416_v49 = vld [vmem:[%s6386_s29 + $0x4f0] sm:$0xff] }
  0x51   : > { %5338 = vmatpush3.bf16.msra.mxu1 %v5337_v63  ;;  %5308 = vmatprep.subr.bf16.mxu0 %v5307_v0  ;;  %v440_v63 = vld [vmem:[%s6386_s29 + $0x5b0] sm:$0xff]  ;;  %v441_v0 = vld [vmem:[%s6386_s29 + $0x5b8] sm:$0xff]  ;;  %v5375_v56 = vpack.c.bf16 %v417_v50, %v416_v49  ;;  %v451_v6 = vld [vmem:[%s6386_s29 + $0x608] sm:$0xff] }
  0x52   : > { %5340 = vmatprep.subr.bf16.mxu1 %v5339_v4  ;;  %v392_v4 = vld [vmem:[%s6386_s29 + $0x430] sm:$0xff]  ;;  %v5391_v7 = vpack.c.bf16 %v441_v0, %v440_v63  ;;  %v401_v58 = vld [vmem:[%s6386_s29 + $0x478] sm:$0xff]  ;;  %v498_v63 = vld [vmem:[%s6386_s29 + $0x780] sm:$0xff] }
  0x53   : > { %v5361_v13 = vpack.c.bf16 %v393_v5, %v392_v4  ;;  %v448_v51 = vld [vmem:[%s6386_s29 + $0x5f0] sm:$0xff]  ;;  %v433_v61 = vld [vmem:[%s6386_s29 + $0x578] sm:$0xff]  ;;  %v499_v0 = vld [vmem:[%s6386_s29 + $0x788] sm:$0xff] }
  0x54   : > { %5310 = vmatpush3.bf16.msra.mxu0 %v5309_v10  ;;  %v411_v10 = vld [vmem:[%s6386_s29 + $0x4c8] sm:$0xff]  ;;  %v400_v57 = vld [vmem:[%s6386_s29 + $0x470] sm:$0xff]  ;;  %v450_v5 = vld [vmem:[%s6386_s29 + $0x600] sm:$0xff]  ;;  %v5443_v8 = vpack.c.bf16 %v499_v0, %v498_v63 }
  0x55   : > { %5342 = vmatpush3.bf16.msra.mxu1 %v5341_v11  ;;  %5312 = vmatprep.subr.bf16.mxu0 %v5311_v12  ;;  %v442_v11 = vld [vmem:[%s6386_s29 + $0x5c0] sm:$0xff]  ;;  %v443_v12 = vld [vmem:[%s6386_s29 + $0x5c8] sm:$0xff]  ;;  %v5363_v16 = vpack.c.bf16 %v411_v10, %v410_v9  ;;  %v468_v10 = vld [vmem:[%s6386_s29 + $0x690] sm:$0xff] }
  0x56   : > { %5344 = vmatprep.subr.bf16.mxu1 %v5343_v17  ;;  %v394_v17 = vld [vmem:[%s6386_s29 + $0x440] sm:$0xff]  ;;  %v5395_v20 = vpack.c.bf16 %v443_v12, %v442_v11  ;;  %v483_v9 = vld [vmem:[%s6386_s29 + $0x708] sm:$0xff]  ;;  %v469_v11 = vld [vmem:[%s6386_s29 + $0x698] sm:$0xff] }
  0x57   : > { %v5415_v19 = vpack.c.bf16 %v469_v11, %v468_v10  ;;  %v453_v21 = vld [vmem:[%s6386_s29 + $0x618] sm:$0xff]  ;;  %v488_v49 = vld [vmem:[%s6386_s29 + $0x730] sm:$0xff]  ;;  %v478_v11 = vld [vmem:[%s6386_s29 + $0x6e0] sm:$0xff] }
  0x58   : > { %5314 = vmatpush3.bf16.msra.mxu0 %v5313_v23  ;;  %v413_v23 = vld [vmem:[%s6386_s29 + $0x4d8] sm:$0xff]  ;;  %v476_v63 = vld [vmem:[%s6386_s29 + $0x6d0] sm:$0xff] }
  0x59   : > { %5346 = vmatpush3.bf16.msra.mxu1 %v5345_v25  ;;  %5348 = vmatprep.subr.bf16.mxu0 %v5347_v26  ;;  %v445_v25 = vld [vmem:[%s6386_s29 + $0x5d8] sm:$0xff]  ;;  %v5365_v26 = vpack.c.bf16 %v395_v18, %v394_v17  ;;  %v5367_v28 = vpack.c.bf16 %v413_v23, %v412_v22  ;;  %v5413_v17 = vpack.c.bf16 %v451_v6, %v450_v5  ;;  %v484_v22 = vld [vmem:[%s6386_s29 + $0x710] sm:$0xff] }
  0x5a   : > { %5380 = vmatprep.subr.bf16.mxu1 %v5379_v30  ;;  %v397_v30 = vld [vmem:[%s6386_s29 + $0x458] sm:$0xff]  ;;  %v5399_v32 = vpack.c.bf16 %v445_v25, %v444_v24  ;;  %v470_v25 = vld [vmem:[%s6386_s29 + $0x6a0] sm:$0xff]  ;;  %v460_v6 = vld [vmem:[%s6386_s29 + $0x650] sm:$0xff] }
  0x5b   : > { %1839 = vmatmul.mubr.f32.vlgmr.msra.gmra.mrb[2].mxu0 %v6496_v34  ;;  %v5385_v34 = vpack.c.bf16 %v421_v47, %v420_v42  ;;  %v398_v42 = vld [vmem:[%s6386_s29 + $0x460] sm:$0xff]  ;;  %v485_v24 = vld [vmem:[%s6386_s29 + $0x718] sm:$0xff] }
  0x5c   : > { %5350 = vmatpush3.bf16.msra.mxu0 %v5349_v36  ;;  %1909 = vmatmul.mubr.f32.vlgmr.msra.gmra.mrb[2].mxu1 %v6507_v46  ;;  %v408_v46 = vld [vmem:[%s6386_s29 + $0x4b0] sm:$0xff]  ;;  %v415_v36 = vld [vmem:[%s6386_s29 + $0x4e8] sm:$0xff]  ;;  %v477_v0 = vld [vmem:[%s6386_s29 + $0x6d8] sm:$0xff] }
  0x5d   : > { %5382 = vmatpush3.bf16.msra.mxu1 %v5381_v37  ;;  %5352 = vmatprep.subr.bf16.mxu0 %v5351_v39  ;;  %v5359_v3 = vpack.c.bf16 %v409_v62, %v408_v46  ;;  %v446_v37 = vld [vmem:[%s6386_s29 + $0x5e0] sm:$0xff]  ;;  %v5369_v39 = vpack.c.bf16 %v397_v30, %v396_v29  ;;  %v5371_v41 = vpack.c.bf16 %v415_v36, %v414_v35  ;;  %v467_v62 = vld [vmem:[%s6386_s29 + $0x688] sm:$0xff]  ;;  %v493_v10 = vld [vmem:[%s6386_s29 + $0x758] sm:$0xff] }
  0x5e   : > { %5384 = vmatprep.subr.bf16.mxu1 %v5383_v45  ;;  %1978 = vmatprep.mubr.f32.mxu0 %v1347_v52  ;;  %v430_v45 = vld [vmem:[%s6386_s29 + $0x560] sm:$0xff]  ;;  %v5403_v47 = vpack.c.bf16 %v447_v38, %v446_v37  ;;  %v449_v52 = vld [vmem:[%s6386_s29 + $0x5f8] sm:$0xff]  ;;  %v503_v29 = vld [vmem:[%s6386_s29 + $0x7a8] sm:$0xff]  ;;  %v5431_v5 = vpack.c.bf16 %v477_v0, %v476_v63 }
  0x5f   : > { %2048 = vmatprep.mubr.f32.mxu1 %v1348_v59  ;;  %v432_v59 = vld [vmem:[%s6386_s29 + $0x570] sm:$0xff]  ;;  %v466_v46 = vld [vmem:[%s6386_s29 + $0x680] sm:$0xff]  ;;  %v487_v38 = vld [vmem:[%s6386_s29 + $0x728] sm:$0xff] }
  0x60   : > { %5354 = vmatpush3.bf16.msra.mxu0 %v5353_v54  ;;  %v5373_v54 = vpack.c.bf16 %v399_v44, %v398_v42  ;;  %v5411_v4 = vpack.c.bf16 %v467_v62, %v466_v46  ;;  %v454_v35 = vld [vmem:[%s6386_s29 + $0x620] sm:$0xff]  ;;  %v491_v62 = vld [vmem:[%s6386_s29 + $0x748] sm:$0xff]  ;;  %v548_v63 = vld [vmem:[%s6386_s29 + $0x910] sm:$0xff] }
  0x61   : > { %5386 = vmatpush3.bf16.msra.mxu1 %v5385_v34  ;;  %5356 = vmatprep.subr.bf16.mxu0 %v5355_v55  ;;  %v245_v34 = vld [vmem:[%s6381_s25 + $0x18] sm:$0xff]  ;;  %v5405_v55 = vpack.c.bf16 %v431_v48, %v430_v45  ;;  %v486_v36 = vld [vmem:[%s6386_s29 + $0x720] sm:$0xff] }
  0x62   : > { %5388 = vmatprep.subr.bf16.mxu1 %v5387_v60  ;;  %v5407_v60 = vpack.c.bf16 %v449_v52, %v448_v51  ;;  %v6622_v12 = vrot.slane %v245_v34, %v6439_v14  ;;  %v5453_v44 = vpack.c.bf16 %v487_v38, %v486_v36  ;;  %v457_v48 = vld [vmem:[%s6386_s29 + $0x638] sm:$0xff]  ;;  %v474_v52 = vld [vmem:[%s6386_s29 + $0x6c0] sm:$0xff]  ;;  %v496_v36 = vld [vmem:[%s6386_s29 + $0x770] sm:$0xff] }
  0x63   : > { %v489_v51 = vld [vmem:[%s6386_s29 + $0x738] sm:$0xff] }
  0x64   : > { %5358 = vmatpush3.bf16.msra.mxu0 %v5357_v1  ;;  %v1349_v1 = vcombine.high %v245_v34, %v245_v34  ;;  %v506_v34 = vld [vmem:[%s6386_s29 + $0x7c0] sm:$0xff]  ;;  %v497_v38 = vld [vmem:[%s6386_s29 + $0x778] sm:$0xff] }
  0x65   : > { %5390 = vmatpush3.bf16.msra.mxu1 %v5389_v2  ;;  %5360 = vmatprep.subr.bf16.mxu0 %v5359_v3  ;;  %v5377_v2 = vpack.c.bf16 %v401_v58, %v400_v57  ;;  %v5409_v3 = vpack.c.bf16 %v433_v61, %v432_v59  ;;  %v5457_v57 = vpack.c.bf16 %v489_v51, %v488_v49  ;;  %v458_v59 = vld [vmem:[%s6386_s29 + $0x640] sm:$0xff]  ;;  %v515_v49 = vld [vmem:[%s6386_s29 + $0x808] sm:$0xff] }
  0x66   : > { %5392 = vmatprep.subr.bf16.mxu1 %v5391_v7  ;;  %v482_v7 = vld [vmem:[%s6386_s29 + $0x700] sm:$0xff] }
  0x67   : > { %v5445_v18 = vpack.c.bf16 %v483_v9, %v482_v7  ;;  %v490_v61 = vld [vmem:[%s6386_s29 + $0x740] sm:$0xff]  ;;  %v461_v7 = vld [vmem:[%s6386_s29 + $0x658] sm:$0xff] }
  0x68   : > { %5362 = vmatpush3.bf16.msra.mxu0 %v5361_v13  ;;  %v500_v13 = vld [vmem:[%s6386_s29 + $0x790] sm:$0xff] }
  0x69   : > { %5394 = vmatpush3.bf16.msra.mxu1 %v5393_v15  ;;  %5364 = vmatprep.subr.bf16.mxu0 %v5363_v16  ;;  %v501_v15 = vld [vmem:[%s6386_s29 + $0x798] sm:$0xff]  ;;  %v6627_v16 = vrot.slane %v1349_v1, %v6439_v14  ;;  %v508_v1 = vld [vmem:[%s6386_s29 + $0x7d0] sm:$0xff] }
  0x6a   : > { %5396 = vmatprep.subr.bf16.mxu1 %v5395_v20  ;;  %v452_v20 = vld [vmem:[%s6386_s29 + $0x610] sm:$0xff]  ;;  %v5447_v23 = vpack.c.bf16 %v501_v15, %v500_v13  ;;  %v479_v13 = vld [vmem:[%s6386_s29 + $0x6e8] sm:$0xff]  ;;  %v510_v15 = vld [vmem:[%s6386_s29 + $0x7e0] sm:$0xff] }
  0x6b   : > { %v1365_v30 = vcombine.high %v6627_v16, %v6627_v16  ;;  %v5417_v31 = vpack.c.bf16 %v453_v21, %v452_v20  ;;  %v5435_v20 = vpack.c.bf16 %v479_v13, %v478_v11  ;;  %v462_v21 = vld [vmem:[%s6386_s29 + $0x660] sm:$0xff] }
  0x6c   : > { %5366 = vmatpush3.bf16.msra.mxu0 %v5365_v26  ;;  %v471_v26 = vld [vmem:[%s6386_s29 + $0x6a8] sm:$0xff]  ;;  %v518_v11 = vld [vmem:[%s6386_s29 + $0x820] sm:$0xff] }
  0x6d   : > { %5398 = vmatpush3.bf16.msra.mxu1 %v5397_v27  ;;  %5368 = vmatprep.subr.bf16.mxu0 %v5367_v28  ;;  %v1364_v27 = vcombine.high %v6622_v12, %v6622_v12  ;;  %v502_v28 = vld [vmem:[%s6386_s29 + $0x7a0] sm:$0xff]  ;;  %v5419_v33 = vpack.c.bf16 %v471_v26, %v470_v25  ;;  %v495_v25 = vld [vmem:[%s6386_s29 + $0x768] sm:$0xff]  ;;  %v480_v26 = vld [vmem:[%s6386_s29 + $0x6f0] sm:$0xff] }
  0x6e   : > { %5400 = vmatprep.subr.bf16.mxu1 %v5399_v32  ;;  %v5449_v32 = vpack.c.bf16 %v485_v24, %v484_v22  ;;  %v5451_v37 = vpack.c.bf16 %v503_v29, %v502_v28  ;;  %v463_v22 = vld [vmem:[%s6386_s29 + $0x668] sm:$0xff]  ;;  %v512_v28 = vld [vmem:[%s6386_s29 + $0x7f0] sm:$0xff]  ;;  %v513_v29 = vld [vmem:[%s6386_s29 + $0x7f8] sm:$0xff] }
  0x6f   : > { %v550_v13 = vld [vmem:[%s6386_s29 + $0x920] sm:$0xff] }
  0x70   : > { %5370 = vmatpush3.bf16.msra.mxu0 %v5369_v39  ;;  %v472_v39 = vld [vmem:[%s6386_s29 + $0x6b0] sm:$0xff] }
  0x71   : > { %5402 = vmatpush3.bf16.msra.mxu1 %v5401_v40  ;;  %5372 = vmatprep.subr.bf16.mxu0 %v5371_v41  ;;  %v473_v40 = vld [vmem:[%s6386_s29 + $0x6b8] sm:$0xff] }
  0x72   : > { %5404 = vmatprep.subr.bf16.mxu1 %v5403_v47  ;;  %v505_v41 = vld [vmem:[%s6386_s29 + $0x7b8] sm:$0xff]  ;;  %v5423_v45 = vpack.c.bf16 %v473_v40, %v472_v39  ;;  %v456_v47 = vld [vmem:[%s6386_s29 + $0x630] sm:$0xff]  ;;  %v530_v39 = vld [vmem:[%s6386_s29 + $0x880] sm:$0xff] }
  0x73   : > { %v531_v40 = vld [vmem:[%s6386_s29 + $0x888] sm:$0xff] }
  0x74   : > { %5374 = vmatpush3.bf16.msra.mxu0 %v5373_v54  ;;  %v475_v54 = vld [vmem:[%s6386_s29 + $0x6c8] sm:$0xff] }
  0x75   : > { %5406 = vmatpush3.bf16.msra.mxu1 %v5405_v55  ;;  %5376 = vmatprep.subr.bf16.mxu0 %v5375_v56  ;;  %v507_v55 = vld [vmem:[%s6386_s29 + $0x7c8] sm:$0xff]  ;;  %v5425_v56 = vpack.c.bf16 %v457_v48, %v456_v47  ;;  %v5427_v58 = vpack.c.bf16 %v475_v54, %v474_v52  ;;  %v5475_v47 = vpack.c.bf16 %v531_v40, %v530_v39  ;;  %v514_v48 = vld [vmem:[%s6386_s29 + $0x800] sm:$0xff]  ;;  %v532_v54 = vld [vmem:[%s6386_s29 + $0x890] sm:$0xff] }
  0x76   : > { %5408 = vmatprep.subr.bf16.mxu1 %v5407_v60  ;;  %v459_v60 = vld [vmem:[%s6386_s29 + $0x648] sm:$0xff]  ;;  %v5459_v46 = vpack.c.bf16 %v507_v55, %v506_v34  ;;  %v533_v34 = vld [vmem:[%s6386_s29 + $0x898] sm:$0xff] }
  0x77   : > { %v547_v52 = vld [vmem:[%s6386_s29 + $0x908] sm:$0xff] }
  0x78   : > { %5378 = vmatpush3.bf16.msra.mxu0 %v5377_v2  ;;  %v509_v2 = vld [vmem:[%s6386_s29 + $0x7d8] sm:$0xff]  ;;  %v555_v40 = vld [vmem:[%s6386_s29 + $0x948] sm:$0xff] }
  0x79   : > { %5410 = vmatpush3.bf16.msra.mxu1 %v5409_v3  ;;  %5412 = vmatprep.subr.bf16.mxu0 %v5411_v4  ;;  %v5429_v3 = vpack.c.bf16 %v459_v60, %v458_v59  ;;  %v5461_v4 = vpack.c.bf16 %v491_v62, %v490_v61  ;;  %v5463_v9 = vpack.c.bf16 %v509_v2, %v508_v1  ;;  %v517_v62 = vld [vmem:[%s6386_s29 + $0x818] sm:$0xff]  ;;  %v534_v2 = vld [vmem:[%s6386_s29 + $0x8a0] sm:$0xff] }
  0x7a   : > { %5444 = vmatprep.subr.bf16.mxu1 %v5443_v8  ;;  %v492_v8 = vld [vmem:[%s6386_s29 + $0x750] sm:$0xff]  ;;  %v5477_v59 = vpack.c.bf16 %v515_v49, %v514_v48  ;;  %v5479_v61 = vpack.c.bf16 %v533_v34, %v532_v54  ;;  %v549_v1 = vld [vmem:[%s6386_s29 + $0x918] sm:$0xff]  ;;  %v542_v34 = vld [vmem:[%s6386_s29 + $0x8e0] sm:$0xff] }
  0x7b   : > { %1979 = vmatmul.mubr.f32.vlgmr.msra.gmra.mrb[4].mxu0 %v6550_v43  ;;  %v455_v43 = vld [vmem:[%s6386_s29 + $0x628] sm:$0xff]  ;;  %v524_v49 = vld [vmem:[%s6386_s29 + $0x850] sm:$0xff]  ;;  %v557_v54 = vld [vmem:[%s6386_s29 + $0x958] sm:$0xff] }
  0x7c   : > { %5414 = vmatpush3.bf16.msra.mxu0 %v5413_v17  ;;  %2049 = vmatmul.mubr.f32.vlgmr.msra.gmra.mrb[4].mxu1 %v6561_v53  ;;  %v504_v53 = vld [vmem:[%s6386_s29 + $0x7b0] sm:$0xff]  ;;  %v5421_v42 = vpack.c.bf16 %v455_v43, %v454_v35  ;;  %v511_v17 = vld [vmem:[%s6386_s29 + $0x7e8] sm:$0xff]  ;;  %v465_v43 = vld [vmem:[%s6386_s29 + $0x678] sm:$0xff] }
  0x7d   : > { %5446 = vmatpush3.bf16.msra.mxu1 %v5445_v18  ;;  %5416 = vmatprep.subr.bf16.mxu0 %v5415_v19  ;;  %v5455_v50 = vpack.c.bf16 %v505_v41, %v504_v53  ;;  %v5433_v18 = vpack.c.bf16 %v461_v7, %v460_v6  ;;  %v5465_v19 = vpack.c.bf16 %v493_v10, %v492_v8  ;;  %v464_v35 = vld [vmem:[%s6386_s29 + $0x670] sm:$0xff]  ;;  %v562_v53 = vld [vmem:[%s6386_s29 + $0x980] sm:$0xff]  ;;  %v563_v41 = vld [vmem:[%s6386_s29 + $0x988] sm:$0xff] }
  0x7e   : > { %5448 = vmatprep.subr.bf16.mxu1 %v5447_v23  ;;  %2118 = vmatprep.mubr.f32.mxu0 %v1364_v27  ;;  %v494_v23 = vld [vmem:[%s6386_s29 + $0x760] sm:$0xff]  ;;  %v5467_v24 = vpack.c.bf16 %v511_v17, %v510_v15  ;;  %v481_v27 = vld [vmem:[%s6386_s29 + $0x6f8] sm:$0xff]  ;;  %v5507_v51 = vpack.c.bf16 %v563_v41, %v562_v53  ;;  %v567_v6 = vld [vmem:[%s6386_s29 + $0x9a8] sm:$0xff] }
  0x7f   : > { %2188 = vmatprep.mubr.f32.mxu1 %v1365_v30  ;;  %v5437_v30 = vpack.c.bf16 %v463_v22, %v462_v21  ;;  %v551_v17 = vld [vmem:[%s6386_s29 + $0x928] sm:$0xff]  ;;  %v540_v53 = vld [vmem:[%s6386_s29 + $0x8d0] sm:$0xff]  ;;  %v541_v41 = vld [vmem:[%s6386_s29 + $0x8d8] sm:$0xff] }
  0x80   : > { %5418 = vmatpush3.bf16.msra.mxu0 %v5417_v31  ;;  %v246_v31 = vld [vmem:[%s6381_s25 + $0x20] sm:$0xff]  ;;  %v5517_v22 = vpack.c.bf16 %v551_v17, %v550_v13  ;;  %v5495_v48 = vpack.c.bf16 %v541_v41, %v540_v53  ;;  %v560_v13 = vld [vmem:[%s6386_s29 + $0x970] sm:$0xff]  ;;  %v561_v17 = vld [vmem:[%s6386_s29 + $0x978] sm:$0xff] }
  0x81   : > { %5450 = vmatpush3.bf16.msra.mxu1 %v5449_v32  ;;  %5420 = vmatprep.subr.bf16.mxu0 %v5419_v33  ;;  %v5469_v32 = vpack.c.bf16 %v495_v25, %v494_v23  ;;  %v5439_v33 = vpack.c.bf16 %v481_v27, %v480_v26  ;;  %v6699_v55 = vrot.slane %v246_v31, %v6439_v14  ;;  %v521_v25 = vld [vmem:[%s6386_s29 + $0x838] sm:$0xff]  ;;  %v552_v26 = vld [vmem:[%s6386_s29 + $0x930] sm:$0xff] }
  0x82   : > { %5452 = vmatprep.subr.bf16.mxu1 %v5451_v37  ;;  %v5471_v37 = vpack.c.bf16 %v513_v29, %v512_v28  ;;  %v553_v28 = vld [vmem:[%s6386_s29 + $0x938] sm:$0xff]  ;;  %v538_v29 = vld [vmem:[%s6386_s29 + $0x8c0] sm:$0xff]  ;;  %v612_v53 = vld [vmem:[%s6386_s29 + $0xb10] sm:$0xff] }
  0x84   : > { %5422 = vmatpush3.bf16.msra.mxu0 %v5421_v42  ;;  %v1366_v42 = vcombine.high %v246_v31, %v246_v31  ;;  %v570_v31 = vld [vmem:[%s6386_s29 + $0x9c0] sm:$0xff] }
  0x85   : > { %5454 = vmatpush3.bf16.msra.mxu1 %v5453_v44  ;;  %5424 = vmatprep.subr.bf16.mxu0 %v5423_v45  ;;  %v5441_v44 = vpack.c.bf16 %v465_v43, %v464_v35  ;;  %v5473_v45 = vpack.c.bf16 %v497_v38, %v496_v36  ;;  %v5521_v35 = vpack.c.bf16 %v553_v28, %v552_v26  ;;  %v522_v36 = vld [vmem:[%s6386_s29 + $0x840] sm:$0xff]  ;;  %v579_v26 = vld [vmem:[%s6386_s29 + $0xa08] sm:$0xff] }
  0x86   : > { %5456 = vmatprep.subr.bf16.mxu1 %v5455_v50  ;;  %v546_v50 = vld [vmem:[%s6386_s29 + $0x900] sm:$0xff] }
  0x87   : > { %v5509_v60 = vpack.c.bf16 %v547_v52, %v546_v50  ;;  %v554_v38 = vld [vmem:[%s6386_s29 + $0x940] sm:$0xff]  ;;  %v525_v50 = vld [vmem:[%s6386_s29 + $0x858] sm:$0xff] }
  0x88   : > { %5426 = vmatpush3.bf16.msra.mxu0 %v5425_v56  ;;  %v564_v56 = vld [vmem:[%s6386_s29 + $0x990] sm:$0xff] }
  0x89   : > { %5458 = vmatpush3.bf16.msra.mxu1 %v5457_v57  ;;  %5428 = vmatprep.subr.bf16.mxu0 %v5427_v58  ;;  %v565_v57 = vld [vmem:[%s6386_s29 + $0x998] sm:$0xff]  ;;  %v6704_v58 = vrot.slane %v1366_v42, %v6439_v14  ;;  %v572_v42 = vld [vmem:[%s6386_s29 + $0x9d0] sm:$0xff] }
  0x8a   : > { %5460 = vmatprep.subr.bf16.mxu1 %v5459_v46  ;;  %v516_v46 = vld [vmem:[%s6386_s29 + $0x810] sm:$0xff]  ;;  %v5511_v0 = vpack.c.bf16 %v565_v57, %v564_v56  ;;  %v543_v56 = vld [vmem:[%s6386_s29 + $0x8e8] sm:$0xff]  ;;  %v574_v57 = vld [vmem:[%s6386_s29 + $0x9e0] sm:$0xff] }
  0x8b   : > { %v1382_v7 = vcombine.high %v6704_v58, %v6704_v58  ;;  %v5481_v8 = vpack.c.bf16 %v517_v62, %v516_v46  ;;  %v5499_v46 = vpack.c.bf16 %v543_v56, %v542_v34  ;;  %v526_v62 = vld [vmem:[%s6386_s29 + $0x860] sm:$0xff] }
  0x8c   : > { %5430 = vmatpush3.bf16.msra.mxu0 %v5429_v3  ;;  %v535_v3 = vld [vmem:[%s6386_s29 + $0x8a8] sm:$0xff]  ;;  %v582_v34 = vld [vmem:[%s6386_s29 + $0xa20] sm:$0xff] }
  0x8d   : > { %5462 = vmatpush3.bf16.msra.mxu1 %v5461_v4  ;;  %5432 = vmatprep.subr.bf16.mxu0 %v5431_v5  ;;  %v1381_v4 = vcombine.high %v6699_v55, %v6699_v55  ;;  %v566_v5 = vld [vmem:[%s6386_s29 + $0x9a0] sm:$0xff]  ;;  %v5483_v10 = vpack.c.bf16 %v535_v3, %v534_v2  ;;  %v559_v2 = vld [vmem:[%s6386_s29 + $0x968] sm:$0xff]  ;;  %v544_v3 = vld [vmem:[%s6386_s29 + $0x8f0] sm:$0xff] }
  0x8e   : > { %5464 = vmatprep.subr.bf16.mxu1 %v5463_v9  ;;  %v5513_v9 = vpack.c.bf16 %v549_v1, %v548_v63  ;;  %v5515_v15 = vpack.c.bf16 %v567_v6, %v566_v5  ;;  %v527_v63 = vld [vmem:[%s6386_s29 + $0x868] sm:$0xff]  ;;  %v576_v5 = vld [vmem:[%s6386_s29 + $0x9f0] sm:$0xff]  ;;  %v577_v6 = vld [vmem:[%s6386_s29 + $0x9f8] sm:$0xff] }
  0x8f   : > { %v614_v56 = vld [vmem:[%s6386_s29 + $0xb20] sm:$0xff] }
  0x90   : > { %5434 = vmatpush3.bf16.msra.mxu0 %v5433_v18  ;;  %v536_v18 = vld [vmem:[%s6386_s29 + $0x8b0] sm:$0xff] }
  0x91   : > { %5466 = vmatpush3.bf16.msra.mxu1 %v5465_v19  ;;  %5436 = vmatprep.subr.bf16.mxu0 %v5435_v20  ;;  %v537_v19 = vld [vmem:[%s6386_s29 + $0x8b8] sm:$0xff] }
  0x92   : > { %5468 = vmatprep.subr.bf16.mxu1 %v5467_v24  ;;  %v569_v20 = vld [vmem:[%s6386_s29 + $0x9b8] sm:$0xff]  ;;  %v5487_v23 = vpack.c.bf16 %v537_v19, %v536_v18  ;;  %v520_v24 = vld [vmem:[%s6386_s29 + $0x830] sm:$0xff]  ;;  %v594_v18 = vld [vmem:[%s6386_s29 + $0xa80] sm:$0xff] }
  0x93   : > { %v595_v19 = vld [vmem:[%s6386_s29 + $0xa88] sm:$0xff] }
  0x94   : > { %5438 = vmatpush3.bf16.msra.mxu0 %v5437_v30  ;;  %v539_v30 = vld [vmem:[%s6386_s29 + $0x8c8] sm:$0xff] }
  0x95   : > { %5470 = vmatpush3.bf16.msra.mxu1 %v5469_v32  ;;  %5440 = vmatprep.subr.bf16.mxu0 %v5439_v33  ;;  %v571_v32 = vld [vmem:[%s6386_s29 + $0x9c8] sm:$0xff]  ;;  %v5489_v33 = vpack.c.bf16 %v521_v25, %v520_v24  ;;  %v5491_v43 = vpack.c.bf16 %v539_v30, %v538_v29  ;;  %v5539_v24 = vpack.c.bf16 %v595_v19, %v594_v18  ;;  %v578_v25 = vld [vmem:[%s6386_s29 + $0xa00] sm:$0xff]  ;;  %v596_v30 = vld [vmem:[%s6386_s29 + $0xa90] sm:$0xff] }
  0x96   : > { %5472 = vmatprep.subr.bf16.mxu1 %v5471_v37  ;;  %v523_v37 = vld [vmem:[%s6386_s29 + $0x848] sm:$0xff]  ;;  %v5523_v39 = vpack.c.bf16 %v571_v32, %v570_v31  ;;  %v597_v31 = vld [vmem:[%s6386_s29 + $0xa98] sm:$0xff] }
  0x97   : > { %v611_v29 = vld [vmem:[%s6386_s29 + $0xb08] sm:$0xff] }
  0x98   : > { %5442 = vmatpush3.bf16.msra.mxu0 %v5441_v44  ;;  %v573_v44 = vld [vmem:[%s6386_s29 + $0x9d8] sm:$0xff]  ;;  %v619_v19 = vld [vmem:[%s6386_s29 + $0xb48] sm:$0xff] }
  0x99   : > { %5474 = vmatpush3.bf16.msra.mxu1 %v5473_v45  ;;  %5476 = vmatprep.subr.bf16.mxu0 %v5475_v47  ;;  %v5493_v45 = vpack.c.bf16 %v523_v37, %v522_v36  ;;  %v5525_v47 = vpack.c.bf16 %v555_v40, %v554_v38  ;;  %v5527_v52 = vpack.c.bf16 %v573_v44, %v572_v42  ;;  %v581_v40 = vld [vmem:[%s6386_s29 + $0xa18] sm:$0xff]  ;;  %v598_v44 = vld [vmem:[%s6386_s29 + $0xaa0] sm:$0xff] }
  0x9a   : > { %5508 = vmatprep.subr.bf16.mxu1 %v5507_v51  ;;  %v556_v51 = vld [vmem:[%s6386_s29 + $0x950] sm:$0xff]  ;;  %v5541_v36 = vpack.c.bf16 %v579_v26, %v578_v25  ;;  %v5543_v38 = vpack.c.bf16 %v597_v31, %v596_v30  ;;  %v613_v42 = vld [vmem:[%s6386_s29 + $0xb18] sm:$0xff]  ;;  %v606_v31 = vld [vmem:[%s6386_s29 + $0xae0] sm:$0xff] }
  0x9b   : > { %2119 = vmatmul.mubr.f32.vlgmr.msra.gmra.mrb[6].mxu0 %v6622_v12  ;;  %v519_v12 = vld [vmem:[%s6386_s29 + $0x828] sm:$0xff]  ;;  %v588_v26 = vld [vmem:[%s6386_s29 + $0xa50] sm:$0xff]  ;;  %v621_v30 = vld [vmem:[%s6386_s29 + $0xb58] sm:$0xff] }
  0x9c   : > { %5478 = vmatpush3.bf16.msra.mxu0 %v5477_v59  ;;  %2189 = vmatmul.mubr.f32.vlgmr.msra.gmra.mrb[6].mxu1 %v6627_v16  ;;  %v568_v16 = vld [vmem:[%s6386_s29 + $0x9b0] sm:$0xff]  ;;  %v5485_v21 = vpack.c.bf16 %v519_v12, %v518_v11  ;;  %v575_v59 = vld [vmem:[%s6386_s29 + $0x9e8] sm:$0xff]  ;;  %v529_v12 = vld [vmem:[%s6386_s29 + $0x878] sm:$0xff] }
  0x9d   : > { %5510 = vmatpush3.bf16.msra.mxu1 %v5509_v60  ;;  %5480 = vmatprep.subr.bf16.mxu0 %v5479_v61  ;;  %v5519_v27 = vpack.c.bf16 %v569_v20, %v568_v16  ;;  %v5497_v60 = vpack.c.bf16 %v525_v50, %v524_v49  ;;  %v5529_v61 = vpack.c.bf16 %v557_v54, %v556_v51  ;;  %v528_v11 = vld [vmem:[%s6386_s29 + $0x870] sm:$0xff]  ;;  %v626_v16 = vld [vmem:[%s6386_s29 + $0xb80] sm:$0xff]  ;;  %v627_v20 = vld [vmem:[%s6386_s29 + $0xb88] sm:$0xff] }
  0x9e   : > { %5512 = vmatprep.subr.bf16.mxu1 %v5511_v0  ;;  %2258 = vmatprep.mubr.f32.mxu0 %v1381_v4  ;;  %v558_v0 = vld [vmem:[%s6386_s29 + $0x960] sm:$0xff]  ;;  %v5531_v1 = vpack.c.bf16 %v575_v59, %v574_v57  ;;  %v545_v4 = vld [vmem:[%s6386_s29 + $0x8f8] sm:$0xff]  ;;  %v5571_v28 = vpack.c.bf16 %v627_v20, %v626_v16  ;;  %v631_v49 = vld [vmem:[%s6386_s29 + $0xba8] sm:$0xff] }
  0x9f   : > { %2328 = vmatprep.mubr.f32.mxu1 %v1382_v7  ;;  %v5501_v7 = vpack.c.bf16 %v527_v63, %v526_v62  ;;  %v615_v59 = vld [vmem:[%s6386_s29 + $0xb28] sm:$0xff]  ;;  %v604_v16 = vld [vmem:[%s6386_s29 + $0xad0] sm:$0xff]  ;;  %v605_v20 = vld [vmem:[%s6386_s29 + $0xad8] sm:$0xff] }
  0xa0   : > { %5482 = vmatpush3.bf16.msra.mxu0 %v5481_v8  ;;  %v247_v8 = vld [vmem:[%s6381_s25 + $0x28] sm:$0xff]  ;;  %v5581_v63 = vpack.c.bf16 %v615_v59, %v614_v56  ;;  %v5559_v25 = vpack.c.bf16 %v605_v20, %v604_v16  ;;  %v624_v56 = vld [vmem:[%s6386_s29 + $0xb70] sm:$0xff]  ;;  %v625_v59 = vld [vmem:[%s6386_s29 + $0xb78] sm:$0xff] }
  0xa1   : > { %5514 = vmatpush3.bf16.msra.mxu1 %v5513_v9  ;;  %5484 = vmatprep.subr.bf16.mxu0 %v5483_v10  ;;  %v5533_v9 = vpack.c.bf16 %v559_v2, %v558_v0  ;;  %v5503_v10 = vpack.c.bf16 %v545_v4, %v544_v3  ;;  %v6776_v32 = vrot.slane %v247_v8, %v6439_v14  ;;  %v585_v2 = vld [vmem:[%s6386_s29 + $0xa38] sm:$0xff]  ;;  %v616_v3 = vld [vmem:[%s6386_s29 + $0xb30] sm:$0xff] }
  0xa2   : > { %5516 = vmatprep.subr.bf16.mxu1 %v5515_v15  ;;  %v5535_v15 = vpack.c.bf16 %v577_v6, %v576_v5  ;;  %v617_v5 = vld [vmem:[%s6386_s29 + $0xb38] sm:$0xff]  ;;  %v602_v6 = vld [vmem:[%s6386_s29 + $0xac0] sm:$0xff]  ;;  %v676_v16 = vld [vmem:[%s6386_s29 + $0xd10] sm:$0xff] }
  0xa4   : > { %5486 = vmatpush3.bf16.msra.mxu0 %v5485_v21  ;;  %v1383_v21 = vcombine.high %v247_v8, %v247_v8  ;;  %v634_v8 = vld [vmem:[%s6386_s29 + $0xbc0] sm:$0xff] }
  0xa5   : > { %5518 = vmatpush3.bf16.msra.mxu1 %v5517_v22  ;;  %5488 = vmatprep.subr.bf16.mxu0 %v5487_v23  ;;  %v5505_v22 = vpack.c.bf16 %v529_v12, %v528_v11  ;;  %v5537_v23 = vpack.c.bf16 %v561_v17, %v560_v13  ;;  %v5585_v11 = vpack.c.bf16 %v617_v5, %v616_v3  ;;  %v586_v13 = vld [vmem:[%s6386_s29 + $0xa40] sm:$0xff]  ;;  %v643_v3 = vld [vmem:[%s6386_s29 + $0xc08] sm:$0xff] }
  0xa6   : > { %5520 = vmatprep.subr.bf16.mxu1 %v5519_v27  ;;  %v610_v27 = vld [vmem:[%s6386_s29 + $0xb00] sm:$0xff] }
  0xa7   : > { %v5573_v37 = vpack.c.bf16 %v611_v29, %v610_v27  ;;  %v618_v17 = vld [vmem:[%s6386_s29 + $0xb40] sm:$0xff]  ;;  %v589_v27 = vld [vmem:[%s6386_s29 + $0xa58] sm:$0xff] }
  0xa8   : > { %5490 = vmatpush3.bf16.msra.mxu0 %v5489_v33  ;;  %v628_v33 = vld [vmem:[%s6386_s29 + $0xb90] sm:$0xff] }
  0xa9   : > { %5522 = vmatpush3.bf16.msra.mxu1 %v5521_v35  ;;  %5492 = vmatprep.subr.bf16.mxu0 %v5491_v43  ;;  %v629_v35 = vld [vmem:[%s6386_s29 + $0xb98] sm:$0xff]  ;;  %v6781_v43 = vrot.slane %v1383_v21, %v6439_v14  ;;  %v636_v21 = vld [vmem:[%s6386_s29 + $0xbd0] sm:$0xff] }
  0xaa   : > { %5524 = vmatprep.subr.bf16.mxu1 %v5523_v39  ;;  %v580_v39 = vld [vmem:[%s6386_s29 + $0xa10] sm:$0xff]  ;;  %v5575_v41 = vpack.c.bf16 %v629_v35, %v628_v33  ;;  %v607_v33 = vld [vmem:[%s6386_s29 + $0xae8] sm:$0xff]  ;;  %v638_v35 = vld [vmem:[%s6386_s29 + $0xbe0] sm:$0xff] }
  0xab   : > { %v1399_v50 = vcombine.high %v6781_v43, %v6781_v43  ;;  %v5545_v51 = vpack.c.bf16 %v581_v40, %v580_v39  ;;  %v5563_v39 = vpack.c.bf16 %v607_v33, %v606_v31  ;;  %v590_v40 = vld [vmem:[%s6386_s29 + $0xa60] sm:$0xff] }
  0xac   : > { %5494 = vmatpush3.bf16.msra.mxu0 %v5493_v45  ;;  %v599_v45 = vld [vmem:[%s6386_s29 + $0xaa8] sm:$0xff]  ;;  %v646_v31 = vld [vmem:[%s6386_s29 + $0xc20] sm:$0xff] }
  0xad   : > { %5526 = vmatpush3.bf16.msra.mxu1 %v5525_v47  ;;  %5496 = vmatprep.subr.bf16.mxu0 %v5495_v48  ;;  %v1398_v47 = vcombine.high %v6776_v32, %v6776_v32  ;;  %v630_v48 = vld [vmem:[%s6386_s29 + $0xba0] sm:$0xff]  ;;  %v5547_v54 = vpack.c.bf16 %v599_v45, %v598_v44  ;;  %v623_v44 = vld [vmem:[%s6386_s29 + $0xb68] sm:$0xff]  ;;  %v608_v45 = vld [vmem:[%s6386_s29 + $0xaf0] sm:$0xff] }
  0xae   : > { %5528 = vmatprep.subr.bf16.mxu1 %v5527_v52  ;;  %v5577_v52 = vpack.c.bf16 %v613_v42, %v612_v53  ;;  %v5579_v57 = vpack.c.bf16 %v631_v49, %v630_v48  ;;  %v591_v53 = vld [vmem:[%s6386_s29 + $0xa68] sm:$0xff]  ;;  %v640_v48 = vld [vmem:[%s6386_s29 + $0xbf0] sm:$0xff]  ;;  %v641_v49 = vld [vmem:[%s6386_s29 + $0xbf8] sm:$0xff] }
  0xaf   : > { %v678_v33 = vld [vmem:[%s6386_s29 + $0xd20] sm:$0xff] }
  0xb0   : > { %5498 = vmatpush3.bf16.msra.mxu0 %v5497_v60  ;;  %v600_v60 = vld [vmem:[%s6386_s29 + $0xab0] sm:$0xff] }
  0xb1   : > { %5530 = vmatpush3.bf16.msra.mxu1 %v5529_v61  ;;  %5500 = vmatprep.subr.bf16.mxu0 %v5499_v46  ;;  %v601_v61 = vld [vmem:[%s6386_s29 + $0xab8] sm:$0xff] }
  0xb2   : > { %5532 = vmatprep.subr.bf16.mxu1 %v5531_v1  ;;  %v633_v46 = vld [vmem:[%s6386_s29 + $0xbb8] sm:$0xff]  ;;  %v5551_v0 = vpack.c.bf16 %v601_v61, %v600_v60  ;;  %v584_v1 = vld [vmem:[%s6386_s29 + $0xa30] sm:$0xff]  ;;  %v658_v60 = vld [vmem:[%s6386_s29 + $0xc80] sm:$0xff] }
  0xb3   : > { %v659_v61 = vld [vmem:[%s6386_s29 + $0xc88] sm:$0xff] }
  0xb4   : > { %5502 = vmatpush3.bf16.msra.mxu0 %v5501_v7  ;;  %v603_v7 = vld [vmem:[%s6386_s29 + $0xac8] sm:$0xff] }
  0xb5   : > { %5534 = vmatpush3.bf16.msra.mxu1 %v5533_v9  ;;  %5504 = vmatprep.subr.bf16.mxu0 %v5503_v10  ;;  %v635_v9 = vld [vmem:[%s6386_s29 + $0xbc8] sm:$0xff]  ;;  %v5553_v10 = vpack.c.bf16 %v585_v2, %v584_v1  ;;  %v5555_v12 = vpack.c.bf16 %v603_v7, %v602_v6  ;;  %v5603_v1 = vpack.c.bf16 %v659_v61, %v658_v60  ;;  %v642_v2 = vld [vmem:[%s6386_s29 + $0xc00] sm:$0xff]  ;;  %v660_v7 = vld [vmem:[%s6386_s29 + $0xc90] sm:$0xff] }
  0xb6   : > { %5536 = vmatprep.subr.bf16.mxu1 %v5535_v15  ;;  %v587_v15 = vld [vmem:[%s6386_s29 + $0xa48] sm:$0xff]  ;;  %v5587_v18 = vpack.c.bf16 %v635_v9, %v634_v8  ;;  %v661_v8 = vld [vmem:[%s6386_s29 + $0xc98] sm:$0xff] }
  0xb7   : > { %v675_v6 = vld [vmem:[%s6386_s29 + $0xd08] sm:$0xff] }
  0xb8   : > { %5506 = vmatpush3.bf16.msra.mxu0 %v5505_v22  ;;  %v637_v22 = vld [vmem:[%s6386_s29 + $0xbd8] sm:$0xff]  ;;  %v683_v61 = vld [vmem:[%s6386_s29 + $0xd48] sm:$0xff] }
  0xb9   : > { %5538 = vmatpush3.bf16.msra.mxu1 %v5537_v23  ;;  %5540 = vmatprep.subr.bf16.mxu0 %v5539_v24  ;;  %v5557_v23 = vpack.c.bf16 %v587_v15, %v586_v13  ;;  %v5589_v24 = vpack.c.bf16 %v619_v19, %v618_v17  ;;  %v5591_v29 = vpack.c.bf16 %v637_v22, %v636_v21  ;;  %v645_v19 = vld [vmem:[%s6386_s29 + $0xc18] sm:$0xff]  ;;  %v662_v22 = vld [vmem:[%s6386_s29 + $0xca0] sm:$0xff] }
  0xba   : > { %5572 = vmatprep.subr.bf16.mxu1 %v5571_v28  ;;  %v620_v28 = vld [vmem:[%s6386_s29 + $0xb50] sm:$0xff]  ;;  %v5605_v13 = vpack.c.bf16 %v643_v3, %v642_v2  ;;  %v5607_v17 = vpack.c.bf16 %v661_v8, %v660_v7  ;;  %v677_v21 = vld [vmem:[%s6386_s29 + $0xd18] sm:$0xff]  ;;  %v670_v8 = vld [vmem:[%s6386_s29 + $0xce0] sm:$0xff] }
  0xbb   : > { %2259 = vmatmul.mubr.f32.vlgmr.msra.gmra.mrb[8].mxu0 %v6699_v55  ;;  %v583_v55 = vld [vmem:[%s6386_s29 + $0xa28] sm:$0xff]  ;;  %v652_v3 = vld [vmem:[%s6386_s29 + $0xc50] sm:$0xff]  ;;  %v685_v7 = vld [vmem:[%s6386_s29 + $0xd58] sm:$0xff] }
  0xbc   : > { %5542 = vmatpush3.bf16.msra.mxu0 %v5541_v36  ;;  %2329 = vmatmul.mubr.f32.vlgmr.msra.gmra.mrb[8].mxu1 %v6704_v58  ;;  %v632_v58 = vld [vmem:[%s6386_s29 + $0xbb0] sm:$0xff]  ;;  %v5549_v62 = vpack.c.bf16 %v583_v55, %v582_v34  ;;  %v639_v36 = vld [vmem:[%s6386_s29 + $0xbe8] sm:$0xff]  ;;  %v593_v55 = vld [vmem:[%s6386_s29 + $0xa78] sm:$0xff] }
  0xbd   : > { %5574 = vmatpush3.bf16.msra.mxu1 %v5573_v37  ;;  %5544 = vmatprep.subr.bf16.mxu0 %v5543_v38  ;;  %v5583_v4 = vpack.c.bf16 %v633_v46, %v632_v58  ;;  %v5561_v37 = vpack.c.bf16 %v589_v27, %v588_v26  ;;  %v5593_v38 = vpack.c.bf16 %v621_v30, %v620_v28  ;;  %v592_v34 = vld [vmem:[%s6386_s29 + $0xa70] sm:$0xff]  ;;  %v690_v58 = vld [vmem:[%s6386_s29 + $0xd80] sm:$0xff]  ;;  %v691_v46 = vld [vmem:[%s6386_s29 + $0xd88] sm:$0xff] }
  0xbe   : > { %5576 = vmatprep.subr.bf16.mxu1 %v5575_v41  ;;  %2398 = vmatprep.mubr.f32.mxu0 %v1398_v47  ;;  %v622_v41 = vld [vmem:[%s6386_s29 + $0xb60] sm:$0xff]  ;;  %v5595_v42 = vpack.c.bf16 %v639_v36, %v638_v35  ;;  %v609_v47 = vld [vmem:[%s6386_s29 + $0xaf8] sm:$0xff]  ;;  %v5635_v5 = vpack.c.bf16 %v691_v46, %v690_v58  ;;  %v695_v26 = vld [vmem:[%s6386_s29 + $0xda8] sm:$0xff] }
  0xbf   : > { %2468 = vmatprep.mubr.f32.mxu1 %v1399_v50  ;;  %v5565_v50 = vpack.c.bf16 %v591_v53, %v590_v40  ;;  %v679_v36 = vld [vmem:[%s6386_s29 + $0xd28] sm:$0xff]  ;;  %v668_v58 = vld [vmem:[%s6386_s29 + $0xcd0] sm:$0xff]  ;;  %v669_v46 = vld [vmem:[%s6386_s29 + $0xcd8] sm:$0xff] }
  0xc0   : > { %5546 = vmatpush3.bf16.msra.mxu0 %v5545_v51  ;;  %v248_v51 = vld [vmem:[%s6381_s25 + $0x30] sm:$0xff]  ;;  %v5645_v53 = vpack.c.bf16 %v679_v36, %v678_v33  ;;  %v5623_v2 = vpack.c.bf16 %v669_v46, %v668_v58  ;;  %v689_v36 = vld [vmem:[%s6386_s29 + $0xd78] sm:$0xff] }
  0xc1   : > { %5578 = vmatpush3.bf16.msra.mxu1 %v5577_v52  ;;  %5548 = vmatprep.subr.bf16.mxu0 %v5547_v54  ;;  %v5597_v52 = vpack.c.bf16 %v623_v44, %v622_v41  ;;  %v5567_v54 = vpack.c.bf16 %v609_v47, %v608_v45  ;;  %v6853_v9 = vrot.slane %v248_v51, %v6439_v14  ;;  %v649_v44 = vld [vmem:[%s6386_s29 + $0xc38] sm:$0xff]  ;;  %v680_v45 = vld [vmem:[%s6386_s29 + $0xd30] sm:$0xff] }
  0xc2   : > { %5580 = vmatprep.subr.bf16.mxu1 %v5579_v57  ;;  %v5599_v57 = vpack.c.bf16 %v641_v49, %v640_v48  ;;  %v681_v48 = vld [vmem:[%s6386_s29 + $0xd38] sm:$0xff]  ;;  %v666_v49 = vld [vmem:[%s6386_s29 + $0xcc0] sm:$0xff]  ;;  %v688_v33 = vld [vmem:[%s6386_s29 + $0xd70] sm:$0xff] }
  0xc3   : > { %v740_v58 = vld [vmem:[%s6386_s29 + $0xf10] sm:$0xff] }
  0xc4   : > { %5550 = vmatpush3.bf16.msra.mxu0 %v5549_v62  ;;  %v1400_v62 = vcombine.high %v248_v51, %v248_v51  ;;  %v698_v51 = vld [vmem:[%s6386_s29 + $0xdc0] sm:$0xff] }
  0xc5   : > { %5582 = vmatpush3.bf16.msra.mxu1 %v5581_v63  ;;  %5552 = vmatprep.subr.bf16.mxu0 %v5551_v0  ;;  %v5569_v63 = vpack.c.bf16 %v593_v55, %v592_v34  ;;  %v5601_v0 = vpack.c.bf16 %v625_v59, %v624_v56  ;;  %v5649_v34 = vpack.c.bf16 %v681_v48, %v680_v45  ;;  %v650_v56 = vld [vmem:[%s6386_s29 + $0xc40] sm:$0xff]  ;;  %v707_v45 = vld [vmem:[%s6386_s29 + $0xe08] sm:$0xff] }
  0xc6   : > { %5584 = vmatprep.subr.bf16.mxu1 %v5583_v4  ;;  %v674_v4 = vld [vmem:[%s6386_s29 + $0xd00] sm:$0xff] }
  0xc7   : > { %v5637_v15 = vpack.c.bf16 %v675_v6, %v674_v4  ;;  %v682_v59 = vld [vmem:[%s6386_s29 + $0xd40] sm:$0xff]  ;;  %v653_v4 = vld [vmem:[%s6386_s29 + $0xc58] sm:$0xff] }
  0xc8   : > { %5554 = vmatpush3.bf16.msra.mxu0 %v5553_v10  ;;  %v692_v10 = vld [vmem:[%s6386_s29 + $0xd90] sm:$0xff] }
  0xc9   : > { %5586 = vmatpush3.bf16.msra.mxu1 %v5585_v11  ;;  %5556 = vmatprep.subr.bf16.mxu0 %v5555_v12  ;;  %v693_v11 = vld [vmem:[%s6386_s29 + $0xd98] sm:$0xff]  ;;  %v6858_v12 = vrot.slane %v1400_v62, %v6439_v14  ;;  %v700_v62 = vld [vmem:[%s6386_s29 + $0xdd0] sm:$0xff] }
  0xca   : > { %5588 = vmatprep.subr.bf16.mxu1 %v5587_v18  ;;  %v644_v18 = vld [vmem:[%s6386_s29 + $0xc10] sm:$0xff]  ;;  %v5639_v20 = vpack.c.bf16 %v693_v11, %v692_v10  ;;  %v671_v10 = vld [vmem:[%s6386_s29 + $0xce8] sm:$0xff]  ;;  %v702_v11 = vld [vmem:[%s6386_s29 + $0xde0] sm:$0xff] }
  0xcb   : > { %v1416_v27 = vcombine.high %v6858_v12, %v6858_v12  ;;  %v5609_v28 = vpack.c.bf16 %v645_v19, %v644_v18  ;;  %v5627_v18 = vpack.c.bf16 %v671_v10, %v670_v8  ;;  %v654_v19 = vld [vmem:[%s6386_s29 + $0xc60] sm:$0xff] }
  0xcc   : > { %5558 = vmatpush3.bf16.msra.mxu0 %v5557_v23  ;;  %v663_v23 = vld [vmem:[%s6386_s29 + $0xca8] sm:$0xff]  ;;  %v710_v8 = vld [vmem:[%s6386_s29 + $0xe20] sm:$0xff] }
  0xcd   : > { %5590 = vmatpush3.bf16.msra.mxu1 %v5589_v24  ;;  %5560 = vmatprep.subr.bf16.mxu0 %v5559_v25  ;;  %v1415_v24 = vcombine.high %v6853_v9, %v6853_v9  ;;  %v694_v25 = vld [vmem:[%s6386_s29 + $0xda0] sm:$0xff]  ;;  %v5611_v30 = vpack.c.bf16 %v663_v23, %v662_v22  ;;  %v687_v22 = vld [vmem:[%s6386_s29 + $0xd68] sm:$0xff]  ;;  %v672_v23 = vld [vmem:[%s6386_s29 + $0xcf0] sm:$0xff] }
  0xce   : > { %5592 = vmatprep.subr.bf16.mxu1 %v5591_v29  ;;  %v5641_v29 = vpack.c.bf16 %v677_v21, %v676_v16  ;;  %v5643_v35 = vpack.c.bf16 %v695_v26, %v694_v25  ;;  %v655_v16 = vld [vmem:[%s6386_s29 + $0xc68] sm:$0xff]  ;;  %v704_v25 = vld [vmem:[%s6386_s29 + $0xdf0] sm:$0xff]  ;;  %v705_v26 = vld [vmem:[%s6386_s29 + $0xdf8] sm:$0xff] }
  0xcf   : > { %v742_v10 = vld [vmem:[%s6386_s29 + $0xf20] sm:$0xff] }
  0xd0   : > { %5562 = vmatpush3.bf16.msra.mxu0 %v5561_v37  ;;  %v664_v37 = vld [vmem:[%s6386_s29 + $0xcb0] sm:$0xff] }
  0xd1   : > { %5594 = vmatpush3.bf16.msra.mxu1 %v5593_v38  ;;  %5564 = vmatprep.subr.bf16.mxu0 %v5563_v39  ;;  %v665_v38 = vld [vmem:[%s6386_s29 + $0xcb8] sm:$0xff] }
  0xd2   : > { %5596 = vmatprep.subr.bf16.mxu1 %v5595_v42  ;;  %v697_v39 = vld [vmem:[%s6386_s29 + $0xdb8] sm:$0xff]  ;;  %v5615_v41 = vpack.c.bf16 %v665_v38, %v664_v37  ;;  %v648_v42 = vld [vmem:[%s6386_s29 + $0xc30] sm:$0xff]  ;;  %v722_v37 = vld [vmem:[%s6386_s29 + $0xe80] sm:$0xff] }
  0xd3   : > { %v723_v38 = vld [vmem:[%s6386_s29 + $0xe88] sm:$0xff] }
  0xd4   : > { %5566 = vmatpush3.bf16.msra.mxu0 %v5565_v50  ;;  %v667_v50 = vld [vmem:[%s6386_s29 + $0xcc8] sm:$0xff] }
  0xd5   : > { %5598 = vmatpush3.bf16.msra.mxu1 %v5597_v52  ;;  %5568 = vmatprep.subr.bf16.mxu0 %v5567_v54  ;;  %v699_v52 = vld [vmem:[%s6386_s29 + $0xdc8] sm:$0xff]  ;;  %v5617_v54 = vpack.c.bf16 %v649_v44, %v648_v42  ;;  %v5619_v55 = vpack.c.bf16 %v667_v50, %v666_v49  ;;  %v5667_v42 = vpack.c.bf16 %v723_v38, %v722_v37  ;;  %v706_v44 = vld [vmem:[%s6386_s29 + $0xe00] sm:$0xff]  ;;  %v724_v50 = vld [vmem:[%s6386_s29 + $0xe90] sm:$0xff] }
  0xd6   : > { %5600 = vmatprep.subr.bf16.mxu1 %v5599_v57  ;;  %v651_v57 = vld [vmem:[%s6386_s29 + $0xc48] sm:$0xff]  ;;  %v5651_v60 = vpack.c.bf16 %v699_v52, %v698_v51  ;;  %v725_v51 = vld [vmem:[%s6386_s29 + $0xe98] sm:$0xff] }
  0xd7   : > { %v739_v49 = vld [vmem:[%s6386_s29 + $0xf08] sm:$0xff] }
  0xd8   : > { %5570 = vmatpush3.bf16.msra.mxu0 %v5569_v63  ;;  %v701_v63 = vld [vmem:[%s6386_s29 + $0xdd8] sm:$0xff]  ;;  %v747_v38 = vld [vmem:[%s6386_s29 + $0xf48] sm:$0xff] }
  0xd9   : > { %5602 = vmatpush3.bf16.msra.mxu1 %v5601_v0  ;;  %5604 = vmatprep.subr.bf16.mxu0 %v5603_v1  ;;  %v5621_v0 = vpack.c.bf16 %v651_v57, %v650_v56  ;;  %v5653_v1 = vpack.c.bf16 %v683_v61, %v682_v59  ;;  %v5655_v6 = vpack.c.bf16 %v701_v63, %v700_v62  ;;  %v709_v61 = vld [vmem:[%s6386_s29 + $0xe18] sm:$0xff]  ;;  %v726_v63 = vld [vmem:[%s6386_s29 + $0xea0] sm:$0xff] }
  0xda   : > { %5636 = vmatprep.subr.bf16.mxu1 %v5635_v5  ;;  %v684_v5 = vld [vmem:[%s6386_s29 + $0xd50] sm:$0xff]  ;;  %v5669_v56 = vpack.c.bf16 %v707_v45, %v706_v44  ;;  %v5671_v59 = vpack.c.bf16 %v725_v51, %v724_v50  ;;  %v741_v62 = vld [vmem:[%s6386_s29 + $0xf18] sm:$0xff]  ;;  %v734_v51 = vld [vmem:[%s6386_s29 + $0xee0] sm:$0xff] }
  0xdb   : > { %2399 = vmatmul.mubr.f32.vlgmr.msra.gmra.mrb[10].mxu0 %v6776_v32  ;;  %v647_v32 = vld [vmem:[%s6386_s29 + $0xc28] sm:$0xff]  ;;  %v716_v45 = vld [vmem:[%s6386_s29 + $0xe50] sm:$0xff]  ;;  %v749_v50 = vld [vmem:[%s6386_s29 + $0xf58] sm:$0xff] }
  0xdc   : > { %5606 = vmatpush3.bf16.msra.mxu0 %v5605_v13  ;;  %2469 = vmatmul.mubr.f32.vlgmr.msra.gmra.mrb[10].mxu1 %v6781_v43  ;;  %v696_v43 = vld [vmem:[%s6386_s29 + $0xdb0] sm:$0xff]  ;;  %v5613_v40 = vpack.c.bf16 %v647_v32, %v646_v31  ;;  %v703_v13 = vld [vmem:[%s6386_s29 + $0xde8] sm:$0xff]  ;;  %v657_v32 = vld [vmem:[%s6386_s29 + $0xc78] sm:$0xff] }
  0xdd   : > { %5638 = vmatpush3.bf16.msra.mxu1 %v5637_v15  ;;  %5608 = vmatprep.subr.bf16.mxu0 %v5607_v17  ;;  %v5647_v47 = vpack.c.bf16 %v697_v39, %v696_v43  ;;  %v5625_v15 = vpack.c.bf16 %v653_v4, %v652_v3  ;;  %v5657_v17 = vpack.c.bf16 %v685_v7, %v684_v5  ;;  %v656_v31 = vld [vmem:[%s6386_s29 + $0xc70] sm:$0xff]  ;;  %v754_v43 = vld [vmem:[%s6386_s29 + $0xf80] sm:$0xff]  ;;  %v755_v39 = vld [vmem:[%s6386_s29 + $0xf88] sm:$0xff] }
  0xde   : > { %5640 = vmatprep.subr.bf16.mxu1 %v5639_v20  ;;  %2538 = vmatprep.mubr.f32.mxu0 %v1415_v24  ;;  %v686_v20 = vld [vmem:[%s6386_s29 + $0xd60] sm:$0xff]  ;;  %v5659_v21 = vpack.c.bf16 %v703_v13, %v702_v11  ;;  %v673_v24 = vld [vmem:[%s6386_s29 + $0xcf8] sm:$0xff]  ;;  %v5699_v48 = vpack.c.bf16 %v755_v39, %v754_v43  ;;  %v759_v3 = vld [vmem:[%s6386_s29 + $0xfa8] sm:$0xff] }
  0xdf   : > { %2608 = vmatprep.mubr.f32.mxu1 %v1416_v27  ;;  %v5629_v27 = vpack.c.bf16 %v655_v16, %v654_v19  ;;  %v743_v13 = vld [vmem:[%s6386_s29 + $0xf28] sm:$0xff]  ;;  %v732_v43 = vld [vmem:[%s6386_s29 + $0xed0] sm:$0xff]  ;;  %v733_v39 = vld [vmem:[%s6386_s29 + $0xed8] sm:$0xff] }
  0xe0   : > { %5610 = vmatpush3.bf16.msra.mxu0 %v5609_v28  ;;  %v249_v28 = vld [vmem:[%s6381_s25 + $0x38] sm:$0xff]  ;;  %v5709_v16 = vpack.c.bf16 %v743_v13, %v742_v10  ;;  %v5687_v44 = vpack.c.bf16 %v733_v39, %v732_v43  ;;  %v250_v10 = vld [vmem:[%s6381_s25 + $0x40] sm:$0xff] }
  0xe1   : > { %5642 = vmatpush3.bf16.msra.mxu1 %v5641_v29  ;;  %5612 = vmatprep.subr.bf16.mxu0 %v5611_v30  ;;  %v5661_v29 = vpack.c.bf16 %v687_v22, %v686_v20  ;;  %v5631_v30 = vpack.c.bf16 %v673_v24, %v672_v23  ;;  %v6930_v52 = vrot.slane %v249_v28, %v6439_v14  ;;  %v713_v22 = vld [vmem:[%s6386_s29 + $0xe38] sm:$0xff]  ;;  %v744_v23 = vld [vmem:[%s6386_s29 + $0xf30] sm:$0xff] }
  0xe2   : > { %5644 = vmatprep.subr.bf16.mxu1 %v5643_v35  ;;  %v5663_v35 = vpack.c.bf16 %v705_v26, %v704_v25  ;;  %v745_v25 = vld [vmem:[%s6386_s29 + $0xf38] sm:$0xff]  ;;  %v730_v26 = vld [vmem:[%s6386_s29 + $0xec0] sm:$0xff] }
  0xe3   : > { %v821_v43 = vld [vmem:[%s6386_s29 + $0x1198] sm:$0xff] }
  0xe4   : > { %5614 = vmatpush3.bf16.msra.mxu0 %v5613_v40  ;;  %v1417_v40 = vcombine.high %v249_v28, %v249_v28  ;;  %v762_v28 = vld [vmem:[%s6386_s29 + $0xfc0] sm:$0xff] }
  0xe5   : > { %5646 = vmatpush3.bf16.msra.mxu1 %v5645_v53  ;;  %5616 = vmatprep.subr.bf16.mxu0 %v5615_v41  ;;  %v5633_v53 = vpack.c.bf16 %v657_v32, %v656_v31  ;;  %v5665_v41 = vpack.c.bf16 %v689_v36, %v688_v33  ;;  %v5713_v31 = vpack.c.bf16 %v745_v25, %v744_v23  ;;  %v714_v33 = vld [vmem:[%s6386_s29 + $0xe40] sm:$0xff] }
  0xe6   : > { %5648 = vmatprep.subr.bf16.mxu1 %v5647_v47  ;;  %v738_v47 = vld [vmem:[%s6386_s29 + $0xf00] sm:$0xff]  ;;  %v1434_v25 = vcombine.high %v250_v10, %v250_v10 }
  0xe7   : > { %v5701_v57 = vpack.c.bf16 %v739_v49, %v738_v47  ;;  %v746_v36 = vld [vmem:[%s6386_s29 + $0xf40] sm:$0xff]  ;;  %v717_v47 = vld [vmem:[%s6386_s29 + $0xe58] sm:$0xff] }
  0xe8   : > { %5618 = vmatpush3.bf16.msra.mxu0 %v5617_v54  ;;  %v756_v54 = vld [vmem:[%s6386_s29 + $0xf90] sm:$0xff]  ;;  %v818_v23 = vld [vmem:[%s6386_s29 + $0x1180] sm:$0xff]  ;;  %v7014_v39 = vrot.slane %v1434_v25, %v6439_v14  ;;  %v797_v25 = vld [vmem:[%s6386_s29 + $0x10d8] sm:$0xff] }
  0xe9   : > { %5650 = vmatpush3.bf16.msra.mxu1 %v5649_v34  ;;  %5620 = vmatprep.subr.bf16.mxu0 %v5619_v55  ;;  %v757_v34 = vld [vmem:[%s6386_s29 + $0xf98] sm:$0xff]  ;;  %v6935_v55 = vrot.slane %v1417_v40, %v6439_v14  ;;  %v764_v40 = vld [vmem:[%s6386_s29 + $0xfd0] sm:$0xff] }
  0xea   : > { %5652 = vmatprep.subr.bf16.mxu1 %v5651_v60  ;;  %v708_v60 = vld [vmem:[%s6386_s29 + $0xe10] sm:$0xff]  ;;  %v5703_v46 = vpack.c.bf16 %v757_v34, %v756_v54  ;;  %v735_v54 = vld [vmem:[%s6386_s29 + $0xee8] sm:$0xff]  ;;  %v766_v34 = vld [vmem:[%s6386_s29 + $0xfe0] sm:$0xff] }
  0xeb   : > { %v1433_v4 = vcombine.high %v6935_v55, %v6935_v55  ;;  %v5673_v5 = vpack.c.bf16 %v709_v61, %v708_v60  ;;  %v5691_v60 = vpack.c.bf16 %v735_v54, %v734_v51  ;;  %v718_v61 = vld [vmem:[%s6386_s29 + $0xe60] sm:$0xff] }
  0xec   : > { %5622 = vmatpush3.bf16.msra.mxu0 %v5621_v0  ;;  %v727_v0 = vld [vmem:[%s6386_s29 + $0xea8] sm:$0xff]  ;;  %v822_v54 = vld [vmem:[%s6386_s29 + $0x11a0] sm:$0xff] }
  0xed   : > { %5654 = vmatpush3.bf16.msra.mxu1 %v5653_v1  ;;  %5624 = vmatprep.subr.bf16.mxu0 %v5623_v2  ;;  %v1432_v1 = vcombine.high %v6930_v52, %v6930_v52  ;;  %v758_v2 = vld [vmem:[%s6386_s29 + $0xfa0] sm:$0xff]  ;;  %v5675_v7 = vpack.c.bf16 %v727_v0, %v726_v63  ;;  %v751_v0 = vld [vmem:[%s6386_s29 + $0xf68] sm:$0xff] }
  0xee   : > { %5656 = vmatprep.subr.bf16.mxu1 %v5655_v6  ;;  %v5705_v6 = vpack.c.bf16 %v741_v62, %v740_v58  ;;  %v5707_v11 = vpack.c.bf16 %v759_v3, %v758_v2  ;;  %v719_v58 = vld [vmem:[%s6386_s29 + $0xe68] sm:$0xff]  ;;  %v737_v2 = vld [vmem:[%s6386_s29 + $0xef8] sm:$0xff] }
  0xf0   : > { %5626 = vmatpush3.bf16.msra.mxu0 %v5625_v15  ;;  %v728_v15 = vld [vmem:[%s6386_s29 + $0xeb0] sm:$0xff] }
  0xf1   : > { %5658 = vmatpush3.bf16.msra.mxu1 %v5657_v17  ;;  %5628 = vmatprep.subr.bf16.mxu0 %v5627_v18  ;;  %v729_v17 = vld [vmem:[%s6386_s29 + $0xeb8] sm:$0xff] }
  0xf2   : > { %5660 = vmatprep.subr.bf16.mxu1 %v5659_v21  ;;  %v761_v18 = vld [vmem:[%s6386_s29 + $0xfb8] sm:$0xff]  ;;  %v5679_v20 = vpack.c.bf16 %v729_v17, %v728_v15  ;;  %v712_v21 = vld [vmem:[%s6386_s29 + $0xe30] sm:$0xff] }
  0xf3   : > { %v720_v17 = vld [vmem:[%s6386_s29 + $0xe70] sm:$0xff] }
  0xf4   : > { %5630 = vmatpush3.bf16.msra.mxu0 %v5629_v27  ;;  %v731_v27 = vld [vmem:[%s6386_s29 + $0xec8] sm:$0xff] }
  0xf5   : > { %5662 = vmatpush3.bf16.msra.mxu1 %v5661_v29  ;;  %5632 = vmatprep.subr.bf16.mxu0 %v5631_v30  ;;  %v763_v29 = vld [vmem:[%s6386_s29 + $0xfc8] sm:$0xff]  ;;  %v5681_v30 = vpack.c.bf16 %v713_v22, %v712_v21  ;;  %v5683_v32 = vpack.c.bf16 %v731_v27, %v730_v26 }
  0xf6   : > { %5664 = vmatprep.subr.bf16.mxu1 %v5663_v35  ;;  %v715_v35 = vld [vmem:[%s6386_s29 + $0xe48] sm:$0xff]  ;;  %v5715_v37 = vpack.c.bf16 %v763_v29, %v762_v28  ;;  %v770_v29 = vld [vmem:[%s6386_s29 + $0x1000] sm:$0xff] }
  0xf7   : > { %v787_v21 = vld [vmem:[%s6386_s29 + $0x1088] sm:$0xff] }
  0xf8   : > { %5634 = vmatpush3.bf16.msra.mxu0 %v5633_v53  ;;  %v765_v53 = vld [vmem:[%s6386_s29 + $0xfd8] sm:$0xff] }
  0xf9   : > { %5666 = vmatpush3.bf16.msra.mxu1 %v5665_v41  ;;  %5668 = vmatprep.subr.bf16.mxu0 %v5667_v42  ;;  %v5685_v41 = vpack.c.bf16 %v715_v35, %v714_v33  ;;  %v5717_v42 = vpack.c.bf16 %v747_v38, %v746_v36  ;;  %v5719_v49 = vpack.c.bf16 %v765_v53, %v764_v40  ;;  %v803_v33 = vld [vmem:[%s6386_s29 + $0x1108] sm:$0xff]  ;;  %v788_v35 = vld [vmem:[%s6386_s29 + $0x1090] sm:$0xff]  ;;  %v789_v36 = vld [vmem:[%s6386_s29 + $0x1098] sm:$0xff] }
  0xfa   : > { %5700 = vmatprep.subr.bf16.mxu1 %v5699_v48  ;;  %v748_v48 = vld [vmem:[%s6386_s29 + $0xf50] sm:$0xff] }
  0xfb   : > { %2539 = vmatmul.mubr.f32.vlgmr.msra.gmra.mrb[12].mxu0 %v6853_v9  ;;  %v711_v9 = vld [vmem:[%s6386_s29 + $0xe28] sm:$0xff]  ;;  %v820_v38 = vld [vmem:[%s6386_s29 + $0x1190] sm:$0xff] }
  0xfc   : > { %5670 = vmatpush3.bf16.msra.mxu0 %v5669_v56  ;;  %2609 = vmatmul.mubr.f32.vlgmr.msra.gmra.mrb[12].mxu1 %v6858_v12  ;;  %v760_v12 = vld [vmem:[%s6386_s29 + $0xfb0] sm:$0xff]  ;;  %v5677_v19 = vpack.c.bf16 %v711_v9, %v710_v8  ;;  %v767_v56 = vld [vmem:[%s6386_s29 + $0xfe8] sm:$0xff]  ;;  %v5693_v9 = vpack.c.bf16 %v719_v58, %v718_v61  ;;  %v774_v61 = vld [vmem:[%s6386_s29 + $0x1020] sm:$0xff] }
  0xfd   : > { %5702 = vmatpush3.bf16.msra.mxu1 %v5701_v57  ;;  %5672 = vmatprep.subr.bf16.mxu0 %v5671_v59  ;;  %v5711_v24 = vpack.c.bf16 %v761_v18, %v760_v12  ;;  %v5689_v57 = vpack.c.bf16 %v717_v47, %v716_v45  ;;  %v5721_v59 = vpack.c.bf16 %v749_v50, %v748_v48  ;;  %v721_v12 = vld [vmem:[%s6386_s29 + $0xe78] sm:$0xff]  ;;  %v752_v18 = vld [vmem:[%s6386_s29 + $0xf70] sm:$0xff]  ;;  %v791_v50 = vld [vmem:[%s6386_s29 + $0x10a8] sm:$0xff] }
  0xfe   : > { %5704 = vmatprep.subr.bf16.mxu1 %v5703_v46  ;;  %2678 = vmatprep.mubr.f32.mxu0 %v1432_v1  ;;  %v750_v46 = vld [vmem:[%s6386_s29 + $0xf60] sm:$0xff]  ;;  %v5723_v63 = vpack.c.bf16 %v767_v56, %v766_v34  ;;  %v736_v1 = vld [vmem:[%s6386_s29 + $0xef0] sm:$0xff]  ;;  %v5697_v26 = vpack.c.bf16 %v721_v12, %v720_v17  ;;  %v5767_v47 = vpack.c.bf16 %v821_v43, %v820_v38  ;;  %v805_v48 = vld [vmem:[%s6386_s29 + $0x1118] sm:$0xff] }
  0xff   : > { %2748 = vmatprep.mubr.f32.mxu1 %v1433_v4  ;;  %v5725_v13 = vpack.c.bf16 %v751_v0, %v750_v46  ;;  %v5695_v15 = vpack.c.bf16 %v737_v2, %v736_v1  ;;  %v804_v45 = vld [vmem:[%s6386_s29 + $0x1110] sm:$0xff]  ;;  %v823_v34 = vld [vmem:[%s6386_s29 + $0x11a8] sm:$0xff]  ;;  %v1450_v56 = vcombine.high %v7014_v39, %v7014_v39  ;;  %v806_v58 = vld [vmem:[%s6386_s29 + $0x1120] sm:$0xff] }
 0x100   : > { %5674 = vmatpush3.bf16.msra.mxu0 %v5673_v5  ;;  %v768_v5 = vld [vmem:[%s6386_s29 + $0xff0] sm:$0xff]  ;;  %v5771_v46 = vpack.c.bf16 %v823_v34, %v822_v54  ;;  %v793_v0 = vld [vmem:[%s6386_s29 + $0x10b8] sm:$0xff]  ;;  %v798_v38 = vld [vmem:[%s6386_s29 + $0x10e0] sm:$0xff] }
 0x101   : > { %5706 = vmatpush3.bf16.msra.mxu1 %v5705_v6  ;;  %5676 = vmatprep.subr.bf16.mxu0 %v5675_v7  ;;  %v769_v6 = vld [vmem:[%s6386_s29 + $0xff8] sm:$0xff]  ;;  %v799_v43 = vld [vmem:[%s6386_s29 + $0x10e8] sm:$0xff]  ;;  %v800_v54 = vld [vmem:[%s6386_s29 + $0x10f0] sm:$0xff] }
 0x102   : > { %5708 = vmatprep.subr.bf16.mxu1 %v5707_v11  ;;  %v825_v1 = vld [vmem:[%s6386_s29 + $0x11b8] sm:$0xff] }
 0x103   : > { %v801_v34 = vld [vmem:[%s6386_s29 + $0x10f8] sm:$0xff] }
 0x104   : > { %5678 = vmatpush3.bf16.msra.mxu0 %v5677_v19  ;;  %v5727_v19 = vpack.c.bf16 %v769_v6, %v768_v5  ;;  %v776_v5 = vld [vmem:[%s6386_s29 + $0x1030] sm:$0xff]  ;;  %v777_v6 = vld [vmem:[%s6386_s29 + $0x1038] sm:$0xff] }
 0x105   : > { %5710 = vmatpush3.bf16.msra.mxu1 %v5709_v16  ;;  %5680 = vmatprep.subr.bf16.mxu0 %v5679_v20  ;;  %v753_v16 = vld [vmem:[%s6386_s29 + $0xf78] sm:$0xff]  ;;  %v786_v20 = vld [vmem:[%s6386_s29 + $0x1080] sm:$0xff]  ;;  %v5745_v17 = vpack.c.bf16 %v777_v6, %v776_v5 }
 0x106   : > { %5712 = vmatprep.subr.bf16.mxu1 %v5711_v24  ;;  %v819_v24 = vld [vmem:[%s6386_s29 + $0x1188] sm:$0xff]  ;;  %v5729_v27 = vpack.c.bf16 %v753_v16, %v752_v18  ;;  %v5731_v28 = vpack.c.bf16 %v787_v21, %v786_v20  ;;  %v810_v20 = vld [vmem:[%s6386_s29 + $0x1140] sm:$0xff]  ;;  %v817_v5 = vld [vmem:[%s6386_s29 + $0x1178] sm:$0xff] }
 0x107   : > { %v779_v16 = vld [vmem:[%s6386_s29 + $0x1048] sm:$0xff]  ;;  %v850_v6 = vld [vmem:[%s6386_s29 + $0x1280] sm:$0xff] }
 0x108   : > { %5682 = vmatpush3.bf16.msra.mxu0 %v5681_v30  ;;  %v771_v30 = vld [vmem:[%s6386_s29 + $0x1008] sm:$0xff] }
 0x109   : > { %5714 = vmatpush3.bf16.msra.mxu1 %v5713_v31  ;;  %5684 = vmatprep.subr.bf16.mxu0 %v5683_v32  ;;  %v802_v31 = vld [vmem:[%s6386_s29 + $0x1100] sm:$0xff]  ;;  %v5763_v32 = vpack.c.bf16 %v819_v24, %v818_v23  ;;  %v5733_v40 = vpack.c.bf16 %v771_v30, %v770_v29  ;;  %v811_v23 = vld [vmem:[%s6386_s29 + $0x1148] sm:$0xff]  ;;  %v796_v24 = vld [vmem:[%s6386_s29 + $0x10d0] sm:$0xff] }
 0x10a   : > { %5716 = vmatprep.subr.bf16.mxu1 %v5715_v37  ;;  %v7009_v37 = vrot.slane %v250_v10, %v6439_v14  ;;  %v5765_v53 = vpack.c.bf16 %v803_v33, %v802_v31  ;;  %v794_v10 = vld [vmem:[%s6386_s29 + $0x10c0] sm:$0xff]  ;;  %v5781_v29 = vpack.c.bf16 %v811_v23, %v810_v20  ;;  %v5751_v30 = vpack.c.bf16 %v797_v25, %v796_v24  ;;  %v780_v31 = vld [vmem:[%s6386_s29 + $0x1050] sm:$0xff]  ;;  %v885_v25 = vld [vmem:[%s6386_s29 + $0x1398] sm:$0xff] }
 0x10b   : > { %v812_v33 = vld [vmem:[%s6386_s29 + $0x1150] sm:$0xff] }
 0x10c   : > { %5686 = vmatpush3.bf16.msra.mxu0 %v5685_v41  ;;  %v5735_v41 = vpack.c.bf16 %v789_v36, %v788_v35  ;;  %v1449_v51 = vcombine.high %v7009_v37, %v7009_v37  ;;  %v813_v36 = vld [vmem:[%s6386_s29 + $0x1158] sm:$0xff]  ;;  %v852_v20 = vld [vmem:[%s6386_s29 + $0x1290] sm:$0xff] }
 0x10d   : > { %5718 = vmatpush3.bf16.msra.mxu1 %v5717_v42  ;;  %5688 = vmatprep.subr.bf16.mxu0 %v5687_v44  ;;  %v772_v42 = vld [vmem:[%s6386_s29 + $0x1010] sm:$0xff]  ;;  %v773_v44 = vld [vmem:[%s6386_s29 + $0x1018] sm:$0xff] }
 0x10e   : > { %v4106_v62 = vpop.f32.mrb[0].mxu0  ;;  %5720 = vmatprep.subr.bf16.mxu1 %v5719_v49  ;;  %v790_v49 = vld [vmem:[%s6386_s29 + $0x10a0] sm:$0xff]  ;;  %v884_v24 = vld [vmem:[%s6386_s29 + $0x1390] sm:$0xff] }
 0x10f   : > { %v4141_v3 = vpop.f32.mrb[0].mxu1  ;;  %v4107_v4 = vpop.f32.mrb[1].mxu0 }
 0x110   : > { %v4108_v7 = vadd.f32 %v4107_v4, %v4106_v62  ;;  %v4142_v8 = vpop.f32.mrb[1].mxu1  ;;  %5690 = vmatpush3.bf16.msra.mxu0 %v5689_v57  ;;  %v5737_v57 = vpack.c.bf16 %v773_v44, %v772_v42  ;;  %v807_v62 = vld [vmem:[%s6386_s29 + $0x1128] sm:$0xff]  ;;  %v5785_v42 = vpack.c.bf16 %v813_v36, %v812_v33  ;;  %v5755_v44 = vpack.c.bf16 %v799_v43, %v798_v38  ;;  %v854_v36 = vld [vmem:[%s6386_s29 + $0x12a0] sm:$0xff] }
 0x111   : > { %v4143_v11 = vadd.f32 %v4142_v8, %v4141_v3  ;;  %5722 = vmatpush3.bf16.msra.mxu1 %v5721_v59  ;;  %5692 = vmatprep.subr.bf16.mxu0 %v5691_v60  ;;  %v5769_v59 = vpack.c.bf16 %v805_v48, %v804_v45  ;;  %v5739_v60 = vpack.c.bf16 %v791_v50, %v790_v49  ;;  %v782_v45 = vld [vmem:[%s6386_s29 + $0x1060] sm:$0xff]  ;;  %v855_v38 = vld [vmem:[%s6386_s29 + $0x12a8] sm:$0xff] }
 0x112   : > { %5724 = vmatprep.subr.bf16.mxu1 %v5723_v63  ;;  %v792_v63 = vld [vmem:[%s6386_s29 + $0x10b0] sm:$0xff]  ;;  %v5773_v3 = vpack.c.bf16 %v807_v62, %v806_v58  ;;  %v814_v48 = vld [vmem:[%s6386_s29 + $0x1160] sm:$0xff]  ;;  %v5831_v33 = vpack.c.bf16 %v885_v25, %v884_v24  ;;  %v863_v25 = vld [vmem:[%s6386_s29 + $0x12e8] sm:$0xff] }
 0x113   : > { %v6998_v22 = vadd.f32 %v4143_v11, %v4108_v7  ;;  %v5743_v4 = vpack.c.bf16 %v793_v0, %v792_v63  ;;  %v808_v7 = vld [vmem:[%s6386_s29 + $0x1130] sm:$0xff]  ;;  %v795_v11 = vld [vmem:[%s6386_s29 + $0x10c8] sm:$0xff]  ;;  %v5759_v0 = vpack.c.bf16 %v801_v34, %v800_v54  ;;  %v857_v54 = vld [vmem:[%s6386_s29 + $0x12b8] sm:$0xff] }
 0x114   : > { %5694 = vmatpush3.bf16.msra.mxu0 %v5693_v9  ;;  %v809_v9 = vld [vmem:[%s6386_s29 + $0x1138] sm:$0xff]  ;;  %v5747_v18 = vpack.c.bf16 %v795_v11, %v794_v10  ;;  %v862_v24 = vld [vmem:[%s6386_s29 + $0x12e0] sm:$0xff] }
 0x115   : > { %5726 = vmatpush3.bf16.msra.mxu1 %v5725_v13  ;;  %5696 = vmatprep.subr.bf16.mxu0 %v5695_v15  ;;  %v826_v13 = vld [vmem:[%s6386_s29 + $0x11c0] sm:$0xff]  ;;  %v827_v15 = vld [vmem:[%s6386_s29 + $0x11c8] sm:$0xff]  ;;  %v5777_v12 = vpack.c.bf16 %v809_v9, %v808_v7  ;;  %v889_v34 = vld [vmem:[%s6386_s29 + $0x13b8] sm:$0xff] }
 0x116   : > { %5728 = vmatprep.subr.bf16.mxu1 %v5727_v19  ;;  %v778_v19 = vld [vmem:[%s6386_s29 + $0x1040] sm:$0xff]  ;;  %v5779_v21 = vpack.c.bf16 %v827_v15, %v826_v13  ;;  %v851_v7 = vld [vmem:[%s6386_s29 + $0x1288] sm:$0xff] }
 0x117   : > { %v883_v9 = vld [vmem:[%s6386_s29 + $0x1388] sm:$0xff]  ;;  %v5795_v15 = vpack.c.bf16 %v851_v7, %v850_v6  ;;  %v874_v6 = vld [vmem:[%s6386_s29 + $0x1340] sm:$0xff] }
 0x118   : > { %5698 = vmatpush3.bf16.msra.mxu0 %v5697_v26  ;;  %v828_v26 = vld [vmem:[%s6386_s29 + $0x11d0] sm:$0xff] }
 0x119   : > { %5730 = vmatpush3.bf16.msra.mxu1 %v5729_v27  ;;  %5732 = vmatprep.subr.bf16.mxu0 %v5731_v28  ;;  %v829_v27 = vld [vmem:[%s6386_s29 + $0x11d8] sm:$0xff]  ;;  %v5749_v28 = vpack.c.bf16 %v779_v16, %v778_v19  ;;  %v867_v16 = vld [vmem:[%s6386_s29 + $0x1308] sm:$0xff] }
 0x11a   : > { %5764 = vmatprep.subr.bf16.mxu1 %v5763_v32  ;;  %v781_v32 = vld [vmem:[%s6386_s29 + $0x1058] sm:$0xff]  ;;  %v5783_v35 = vpack.c.bf16 %v829_v27, %v828_v26 }
 0x11b   : > { %2679 = vmatmul.mubr.f32.vlgmr.msra.gmra.mrb[14].mxu0 %v6930_v52  ;;  %v775_v52 = vld [vmem:[%s6386_s29 + $0x1028] sm:$0xff] }
 0x11c   : > { %5734 = vmatpush3.bf16.msra.mxu0 %v5733_v40  ;;  %2749 = vmatmul.mubr.f32.vlgmr.msra.gmra.mrb[14].mxu1 %v6935_v55  ;;  %v824_v55 = vld [vmem:[%s6386_s29 + $0x11b0] sm:$0xff]  ;;  %v5741_v2 = vpack.c.bf16 %v775_v52, %v774_v61  ;;  %v830_v40 = vld [vmem:[%s6386_s29 + $0x11e0] sm:$0xff] }
 0x11d   : > { %5766 = vmatpush3.bf16.msra.mxu1 %v5765_v53  ;;  %5736 = vmatprep.subr.bf16.mxu0 %v5735_v41  ;;  %v5775_v8 = vpack.c.bf16 %v825_v1, %v824_v55  ;;  %v831_v53 = vld [vmem:[%s6386_s29 + $0x11e8] sm:$0xff]  ;;  %v5753_v41 = vpack.c.bf16 %v781_v32, %v780_v31  ;;  %v784_v55 = vld [vmem:[%s6386_s29 + $0x1070] sm:$0xff]  ;;  %v785_v1 = vld [vmem:[%s6386_s29 + $0x1078] sm:$0xff] }
 0x11e   : > { %5768 = vmatprep.subr.bf16.mxu1 %v5767_v47  ;;  %2818 = vmatprep.mubr.f32.mxu0 %v1449_v51  ;;  %v783_v47 = vld [vmem:[%s6386_s29 + $0x1068] sm:$0xff]  ;;  %v5787_v50 = vpack.c.bf16 %v831_v53, %v830_v40  ;;  %v837_v31 = vld [vmem:[%s6386_s29 + $0x1218] sm:$0xff]  ;;  %v868_v32 = vld [vmem:[%s6386_s29 + $0x1310] sm:$0xff] }
 0x11f   : > { %2888 = vmatprep.mubr.f32.mxu1 %v1450_v56  ;;  %v815_v51 = vld [vmem:[%s6386_s29 + $0x1168] sm:$0xff]  ;;  %v5757_v58 = vpack.c.bf16 %v783_v47, %v782_v45  ;;  %v886_v40 = vld [vmem:[%s6386_s29 + $0x13a0] sm:$0xff]  ;;  %v5803_v45 = vpack.c.bf16 %v855_v38, %v854_v36 }
 0x120   : > { %5738 = vmatpush3.bf16.msra.mxu0 %v5737_v57  ;;  %v5789_v63 = vpack.c.bf16 %v815_v51, %v814_v48  ;;  %v887_v53 = vld [vmem:[%s6386_s29 + $0x13a8] sm:$0xff]  ;;  %v838_v47 = vld [vmem:[%s6386_s29 + $0x1220] sm:$0xff]  ;;  %v856_v51 = vld [vmem:[%s6386_s29 + $0x12b0] sm:$0xff] }
 0x121   : > { %5770 = vmatpush3.bf16.msra.mxu1 %v5769_v59  ;;  %5740 = vmatprep.subr.bf16.mxu0 %v5739_v60  ;;  %v832_v59 = vld [vmem:[%s6386_s29 + $0x11f0] sm:$0xff]  ;;  %v833_v60 = vld [vmem:[%s6386_s29 + $0x11f8] sm:$0xff]  ;;  %v870_v48 = vld [vmem:[%s6386_s29 + $0x1320] sm:$0xff] }
 0x122   : > { %5772 = vmatprep.subr.bf16.mxu1 %v5771_v46  ;;  %v251_v46 = vld [vmem:[%s6381_s25 + $0x48] sm:$0xff] }
 0x123   : > { %v1451_v10 = vcombine.high %v251_v46, %v251_v46  ;;  %v7089_v23 = vrot.slane %v251_v46, %v6439_v14  ;;  %v873_v46 = vld [vmem:[%s6386_s29 + $0x1338] sm:$0xff] }
 0x124   : > { %5742 = vmatpush3.bf16.msra.mxu0 %v5741_v2  ;;  %v816_v2 = vld [vmem:[%s6386_s29 + $0x1170] sm:$0xff] }
 0x125   : > { %5774 = vmatpush3.bf16.msra.mxu1 %v5773_v3  ;;  %5744 = vmatprep.subr.bf16.mxu0 %v5743_v4  ;;  %v5791_v4 = vpack.c.bf16 %v833_v60, %v832_v59  ;;  %v5793_v13 = vpack.c.bf16 %v817_v5, %v816_v2  ;;  %v7094_v26 = vrot.slane %v1451_v10, %v6439_v14  ;;  %v840_v60 = vld [vmem:[%s6386_s29 + $0x1230] sm:$0xff]  ;;  %v843_v5 = vld [vmem:[%s6386_s29 + $0x1248] sm:$0xff]  ;;  %v861_v10 = vld [vmem:[%s6386_s29 + $0x12d8] sm:$0xff] }
 0x126   : > { %5776 = vmatprep.subr.bf16.mxu1 %v5775_v8  ;;  %v882_v8 = vld [vmem:[%s6386_s29 + $0x1380] sm:$0xff]  ;;  %v1466_v43 = vcombine.high %v7089_v23, %v7089_v23  ;;  %v5807_v59 = vpack.c.bf16 %v857_v54, %v856_v51 }
 0x127   : > { %v5827_v19 = vpack.c.bf16 %v883_v9, %v882_v8  ;;  %v875_v8 = vld [vmem:[%s6386_s29 + $0x1348] sm:$0xff]  ;;  %v860_v9 = vld [vmem:[%s6386_s29 + $0x12d0] sm:$0xff] }
 0x128   : > { %5746 = vmatpush3.bf16.msra.mxu0 %v5745_v17  ;;  %v834_v17 = vld [vmem:[%s6386_s29 + $0x1200] sm:$0xff] }
 0x129   : > { %5778 = vmatpush3.bf16.msra.mxu1 %v5777_v12  ;;  %5748 = vmatprep.subr.bf16.mxu0 %v5747_v18  ;;  %v835_v12 = vld [vmem:[%s6386_s29 + $0x1208] sm:$0xff]  ;;  %v866_v18 = vld [vmem:[%s6386_s29 + $0x1300] sm:$0xff] }
 0x12a   : > { %5780 = vmatprep.subr.bf16.mxu1 %v5779_v21  ;;  %v853_v21 = vld [vmem:[%s6386_s29 + $0x1298] sm:$0xff]  ;;  %v5797_v27 = vpack.c.bf16 %v835_v12, %v834_v17  ;;  %v5845_v17 = vpack.c.bf16 %v875_v8, %v874_v6  ;;  %v5815_v12 = vpack.c.bf16 %v861_v10, %v860_v9  ;;  %v916_v6 = vld [vmem:[%s6386_s29 + $0x1490] sm:$0xff] }
 0x12b   : > { %v948_v9 = vld [vmem:[%s6386_s29 + $0x1590] sm:$0xff]  ;;  %v949_v10 = vld [vmem:[%s6386_s29 + $0x1598] sm:$0xff] }
 0x12c   : > { %5750 = vmatpush3.bf16.msra.mxu0 %v5749_v28  ;;  %v5829_v28 = vpack.c.bf16 %v867_v16, %v866_v18  ;;  %v844_v18 = vld [vmem:[%s6386_s29 + $0x1250] sm:$0xff] }
 0x12d   : > { %5782 = vmatpush3.bf16.msra.mxu1 %v5781_v29  ;;  %5752 = vmatprep.subr.bf16.mxu0 %v5751_v30  ;;  %v5799_v29 = vpack.c.bf16 %v853_v21, %v852_v20  ;;  %v836_v30 = vld [vmem:[%s6386_s29 + $0x1210] sm:$0xff]  ;;  %v877_v21 = vld [vmem:[%s6386_s29 + $0x1358] sm:$0xff] }
 0x12e   : > { %v4176_v49 = vpop.f32.mrb[2].mxu0  ;;  %5784 = vmatprep.subr.bf16.mxu1 %v5783_v35  ;;  %v869_v35 = vld [vmem:[%s6386_s29 + $0x1318] sm:$0xff]  ;;  %v876_v16 = vld [vmem:[%s6386_s29 + $0x1350] sm:$0xff] }
 0x12f   : > { %v4177_v56 = vpop.f32.mrb[3].mxu0  ;;  %v4211_v57 = vpop.f32.mrb[2].mxu1 }
 0x130   : > { %v4178_v61 = vadd.f32 %v4177_v56, %v4176_v49  ;;  %5754 = vmatpush3.bf16.msra.mxu0 %v5753_v41  ;;  %v4212_v52 = vpop.f32.mrb[3].mxu1  ;;  %v1467_v41 = vcombine.high %v7094_v26, %v7094_v26  ;;  %v5835_v49 = vpack.c.bf16 %v887_v53, %v886_v40  ;;  %v864_v40 = vld [vmem:[%s6386_s29 + $0x12f0] sm:$0xff]  ;;  %v865_v53 = vld [vmem:[%s6386_s29 + $0x12f8] sm:$0xff] }
 0x131   : > { %v4213_v62 = vadd.f32 %v4212_v52, %v4211_v57  ;;  %5786 = vmatpush3.bf16.msra.mxu1 %v5785_v42  ;;  %5756 = vmatprep.subr.bf16.mxu0 %v5755_v44  ;;  %v5801_v42 = vpack.c.bf16 %v837_v31, %v836_v30  ;;  %v5833_v44 = vpack.c.bf16 %v869_v35, %v868_v32  ;;  %v872_v52 = vld [vmem:[%s6386_s29 + $0x1330] sm:$0xff]  ;;  %v846_v32 = vld [vmem:[%s6386_s29 + $0x1260] sm:$0xff] }
 0x132   : > { %v1841_v3 = vadd.f32 %v4178_v61, %v6998_v22  ;;  %5788 = vmatprep.subr.bf16.mxu1 %v5787_v50  ;;  %v5761_v22 = vpack.c.bf16 %v785_v1, %v784_v55  ;;  %v871_v50 = vld [vmem:[%s6386_s29 + $0x1328] sm:$0xff]  ;;  %v841_v61 = vld [vmem:[%s6386_s29 + $0x1238] sm:$0xff]  ;;  %v5841_v2 = vpack.c.bf16 %v873_v46, %v872_v52  ;;  %v5849_v30 = vpack.c.bf16 %v877_v21, %v876_v16  ;;  %v878_v35 = vld [vmem:[%s6386_s29 + $0x1360] sm:$0xff] }
 0x133   : > { %v5837_v57 = vpack.c.bf16 %v871_v50, %v870_v48  ;;  %v891_v55 = vld [vmem:[%s6386_s29 + $0x13c8] sm:$0xff]  ;;  %v5809_v1 = vpack.c.bf16 %v841_v61, %v840_v60  ;;  %v5819_v31 = vpack.c.bf16 %v863_v25, %v862_v24  ;;  %v5823_v54 = vpack.c.bf16 %v865_v53, %v864_v40  ;;  %v881_v60 = vld [vmem:[%s6386_s29 + $0x1378] sm:$0xff]  ;;  %v914_v61 = vld [vmem:[%s6386_s29 + $0x1480] sm:$0xff] }
 0x134   : > { %v7080_v11 = vadd.f32 %v4213_v62, %v1841_v3  ;;  %5758 = vmatpush3.bf16.msra.mxu0 %v5757_v58  ;;  %v858_v62 = vld [vmem:[%s6386_s29 + $0x12c0] sm:$0xff]  ;;  %v915_v52 = vld [vmem:[%s6386_s29 + $0x1488] sm:$0xff]  ;;  %v5895_v16 = vpack.c.bf16 %v949_v10, %v948_v9  ;;  %v921_v40 = vld [vmem:[%s6386_s29 + $0x14b8] sm:$0xff] }
 0x135   : > { %5790 = vmatpush3.bf16.msra.mxu1 %v5789_v63  ;;  %5760 = vmatprep.subr.bf16.mxu0 %v5759_v0  ;;  %v859_v63 = vld [vmem:[%s6386_s29 + $0x12c8] sm:$0xff]  ;;  %v890_v0 = vld [vmem:[%s6386_s29 + $0x13c0] sm:$0xff]  ;;  %v953_v53 = vld [vmem:[%s6386_s29 + $0x15b8] sm:$0xff] }
 0x136   : > { %5792 = vmatprep.subr.bf16.mxu1 %v5791_v4  ;;  %v5811_v3 = vpack.c.bf16 %v859_v63, %v858_v62  ;;  %v842_v4 = vld [vmem:[%s6386_s29 + $0x1240] sm:$0xff]  ;;  %v5843_v7 = vpack.c.bf16 %v891_v55, %v890_v0  ;;  %v947_v46 = vld [vmem:[%s6386_s29 + $0x1588] sm:$0xff]  ;;  %v5859_v55 = vpack.c.bf16 %v915_v52, %v914_v61 }
 0x137   : > { %v918_v21 = vld [vmem:[%s6386_s29 + $0x14a0] sm:$0xff]  ;;  %v919_v24 = vld [vmem:[%s6386_s29 + $0x14a8] sm:$0xff] }
 0x138   : > { %5762 = vmatpush3.bf16.msra.mxu0 %v5761_v22  ;;  %v892_v22 = vld [vmem:[%s6386_s29 + $0x13d0] sm:$0xff]  ;;  %v938_v61 = vld [vmem:[%s6386_s29 + $0x1540] sm:$0xff]  ;;  %v927_v10 = vld [vmem:[%s6386_s29 + $0x14e8] sm:$0xff] }
 0x139   : > { %5794 = vmatpush3.bf16.msra.mxu1 %v5793_v13  ;;  %5796 = vmatprep.subr.bf16.mxu0 %v5795_v15  ;;  %v893_v13 = vld [vmem:[%s6386_s29 + $0x13d8] sm:$0xff]  ;;  %v5813_v15 = vpack.c.bf16 %v843_v5, %v842_v4  ;;  %v931_v5 = vld [vmem:[%s6386_s29 + $0x1508] sm:$0xff]  ;;  %v926_v9 = vld [vmem:[%s6386_s29 + $0x14e0] sm:$0xff] }
 0x13a   : > { %5828 = vmatprep.subr.bf16.mxu1 %v5827_v19  ;;  %v845_v19 = vld [vmem:[%s6386_s29 + $0x1258] sm:$0xff]  ;;  %v5847_v20 = vpack.c.bf16 %v893_v13, %v892_v22 }
 0x13b   : > { %2819 = vmatmul.mubr.f32.vlgmr.msra.gmra.mrb[16].mxu0 %v7009_v37  ;;  %v839_v37 = vld [vmem:[%s6386_s29 + $0x1228] sm:$0xff] }
 0x13c   : > { %5798 = vmatpush3.bf16.msra.mxu0 %v5797_v27  ;;  %2889 = vmatmul.mubr.f32.vlgmr.msra.gmra.mrb[16].mxu1 %v7014_v39  ;;  %v888_v39 = vld [vmem:[%s6386_s29 + $0x13b0] sm:$0xff]  ;;  %v5805_v56 = vpack.c.bf16 %v839_v37, %v838_v47  ;;  %v894_v27 = vld [vmem:[%s6386_s29 + $0x13e0] sm:$0xff] }
 0x13d   : > { %5830 = vmatpush3.bf16.msra.mxu1 %v5829_v28  ;;  %5800 = vmatprep.subr.bf16.mxu0 %v5799_v29  ;;  %v5839_v58 = vpack.c.bf16 %v889_v34, %v888_v39  ;;  %v895_v28 = vld [vmem:[%s6386_s29 + $0x13e8] sm:$0xff]  ;;  %v5817_v29 = vpack.c.bf16 %v845_v19, %v844_v18  ;;  %v848_v39 = vld [vmem:[%s6386_s29 + $0x1270] sm:$0xff]  ;;  %v849_v34 = vld [vmem:[%s6386_s29 + $0x1278] sm:$0xff] }
 0x13e   : > { %5832 = vmatprep.subr.bf16.mxu1 %v5831_v33  ;;  %2958 = vmatprep.mubr.f32.mxu0 %v1466_v43  ;;  %v847_v33 = vld [vmem:[%s6386_s29 + $0x1268] sm:$0xff]  ;;  %v5851_v38 = vpack.c.bf16 %v895_v28, %v894_v27  ;;  %v901_v18 = vld [vmem:[%s6386_s29 + $0x1418] sm:$0xff]  ;;  %v932_v19 = vld [vmem:[%s6386_s29 + $0x1510] sm:$0xff] }
 0x13f   : > { %3028 = vmatprep.mubr.f32.mxu1 %v1467_v41  ;;  %v879_v43 = vld [vmem:[%s6386_s29 + $0x1368] sm:$0xff]  ;;  %v5821_v48 = vpack.c.bf16 %v847_v33, %v846_v32  ;;  %v950_v27 = vld [vmem:[%s6386_s29 + $0x15a0] sm:$0xff]  ;;  %v5867_v32 = vpack.c.bf16 %v919_v24, %v918_v21 }
 0x140   : > { %5802 = vmatpush3.bf16.msra.mxu0 %v5801_v42  ;;  %v5853_v51 = vpack.c.bf16 %v879_v43, %v878_v35  ;;  %v951_v28 = vld [vmem:[%s6386_s29 + $0x15a8] sm:$0xff]  ;;  %v902_v33 = vld [vmem:[%s6386_s29 + $0x1420] sm:$0xff]  ;;  %v920_v43 = vld [vmem:[%s6386_s29 + $0x14b0] sm:$0xff] }
 0x141   : > { %5834 = vmatpush3.bf16.msra.mxu1 %v5833_v44  ;;  %5804 = vmatprep.subr.bf16.mxu0 %v5803_v45  ;;  %v896_v44 = vld [vmem:[%s6386_s29 + $0x13f0] sm:$0xff]  ;;  %v897_v45 = vld [vmem:[%s6386_s29 + $0x13f8] sm:$0xff]  ;;  %v934_v35 = vld [vmem:[%s6386_s29 + $0x1520] sm:$0xff] }
 0x142   : > { %5836 = vmatprep.subr.bf16.mxu1 %v5835_v49  ;;  %v252_v49 = vld [vmem:[%s6381_s25 + $0x50] sm:$0xff] }
 0x143   : > { %v1468_v62 = vcombine.high %v252_v49, %v252_v49  ;;  %v7169_v8 = vrot.slane %v252_v49, %v6439_v14  ;;  %v937_v49 = vld [vmem:[%s6386_s29 + $0x1538] sm:$0xff] }
 0x144   : > { %5806 = vmatpush3.bf16.msra.mxu0 %v5805_v56  ;;  %v880_v56 = vld [vmem:[%s6386_s29 + $0x1370] sm:$0xff] }
 0x145   : > { %5838 = vmatpush3.bf16.msra.mxu1 %v5837_v57  ;;  %5808 = vmatprep.subr.bf16.mxu0 %v5807_v59  ;;  %v5855_v59 = vpack.c.bf16 %v897_v45, %v896_v44  ;;  %v5857_v0 = vpack.c.bf16 %v881_v60, %v880_v56  ;;  %v7174_v22 = vrot.slane %v1468_v62, %v6439_v14  ;;  %v904_v45 = vld [vmem:[%s6386_s29 + $0x1430] sm:$0xff]  ;;  %v907_v60 = vld [vmem:[%s6386_s29 + $0x1448] sm:$0xff]  ;;  %v925_v62 = vld [vmem:[%s6386_s29 + $0x14d8] sm:$0xff] }
 0x146   : > { %5840 = vmatprep.subr.bf16.mxu1 %v5839_v58  ;;  %v946_v58 = vld [vmem:[%s6386_s29 + $0x1580] sm:$0xff]  ;;  %v1483_v25 = vcombine.high %v7169_v8, %v7169_v8  ;;  %v5871_v44 = vpack.c.bf16 %v921_v40, %v920_v43 }
 0x147   : > { %v5891_v4 = vpack.c.bf16 %v947_v46, %v946_v58  ;;  %v939_v58 = vld [vmem:[%s6386_s29 + $0x1548] sm:$0xff]  ;;  %v924_v46 = vld [vmem:[%s6386_s29 + $0x14d0] sm:$0xff] }
 0x148   : > { %5810 = vmatpush3.bf16.msra.mxu0 %v5809_v1  ;;  %v898_v1 = vld [vmem:[%s6386_s29 + $0x1400] sm:$0xff] }
 0x149   : > { %5842 = vmatpush3.bf16.msra.mxu1 %v5841_v2  ;;  %5812 = vmatprep.subr.bf16.mxu0 %v5811_v3  ;;  %v899_v2 = vld [vmem:[%s6386_s29 + $0x1408] sm:$0xff]  ;;  %v930_v3 = vld [vmem:[%s6386_s29 + $0x1500] sm:$0xff] }
 0x14a   : > { %5844 = vmatprep.subr.bf16.mxu1 %v5843_v7  ;;  %v917_v7 = vld [vmem:[%s6386_s29 + $0x1498] sm:$0xff]  ;;  %v5861_v13 = vpack.c.bf16 %v899_v2, %v898_v1  ;;  %v5909_v1 = vpack.c.bf16 %v939_v58, %v938_v61  ;;  %v5879_v2 = vpack.c.bf16 %v925_v62, %v924_v46  ;;  %v980_v61 = vld [vmem:[%s6386_s29 + $0x1690] sm:$0xff] }
 0x14b   : > { %v1012_v46 = vld [vmem:[%s6386_s29 + $0x1790] sm:$0xff]  ;;  %v1013_v62 = vld [vmem:[%s6386_s29 + $0x1798] sm:$0xff] }
 0x14c   : > { %5814 = vmatpush3.bf16.msra.mxu0 %v5813_v15  ;;  %v5893_v15 = vpack.c.bf16 %v931_v5, %v930_v3  ;;  %v908_v3 = vld [vmem:[%s6386_s29 + $0x1450] sm:$0xff] }
 0x14d   : > { %5846 = vmatpush3.bf16.msra.mxu1 %v5845_v17  ;;  %5816 = vmatprep.subr.bf16.mxu0 %v5815_v12  ;;  %v5863_v17 = vpack.c.bf16 %v917_v7, %v916_v6  ;;  %v900_v12 = vld [vmem:[%s6386_s29 + $0x1410] sm:$0xff]  ;;  %v941_v7 = vld [vmem:[%s6386_s29 + $0x1558] sm:$0xff] }
 0x14e   : > { %v4246_v36 = vpop.f32.mrb[4].mxu0  ;;  %5848 = vmatprep.subr.bf16.mxu1 %v5847_v20  ;;  %v933_v20 = vld [vmem:[%s6386_s29 + $0x1518] sm:$0xff]  ;;  %v940_v5 = vld [vmem:[%s6386_s29 + $0x1550] sm:$0xff] }
 0x14f   : > { %v4247_v41 = vpop.f32.mrb[5].mxu0  ;;  %v4281_v42 = vpop.f32.mrb[4].mxu1 }
 0x150   : > { %v4248_v47 = vadd.f32 %v4247_v41, %v4246_v36  ;;  %5818 = vmatpush3.bf16.msra.mxu0 %v5817_v29  ;;  %v4282_v37 = vpop.f32.mrb[5].mxu1  ;;  %v1484_v29 = vcombine.high %v7174_v22, %v7174_v22  ;;  %v5899_v36 = vpack.c.bf16 %v951_v28, %v950_v27  ;;  %v928_v27 = vld [vmem:[%s6386_s29 + $0x14f0] sm:$0xff]  ;;  %v929_v28 = vld [vmem:[%s6386_s29 + $0x14f8] sm:$0xff] }
 0x151   : > { %v4283_v50 = vadd.f32 %v4282_v37, %v4281_v42  ;;  %5850 = vmatpush3.bf16.msra.mxu1 %v5849_v30  ;;  %5820 = vmatprep.subr.bf16.mxu0 %v5819_v31  ;;  %v5865_v30 = vpack.c.bf16 %v901_v18, %v900_v12  ;;  %v5897_v31 = vpack.c.bf16 %v933_v20, %v932_v19  ;;  %v936_v37 = vld [vmem:[%s6386_s29 + $0x1530] sm:$0xff]  ;;  %v910_v19 = vld [vmem:[%s6386_s29 + $0x1460] sm:$0xff] }
 0x152   : > { %v1981_v57 = vadd.f32 %v4248_v47, %v7080_v11  ;;  %5852 = vmatprep.subr.bf16.mxu1 %v5851_v38  ;;  %v5825_v11 = vpack.c.bf16 %v849_v34, %v848_v39  ;;  %v935_v38 = vld [vmem:[%s6386_s29 + $0x1528] sm:$0xff]  ;;  %v905_v47 = vld [vmem:[%s6386_s29 + $0x1438] sm:$0xff]  ;;  %v5905_v56 = vpack.c.bf16 %v937_v49, %v936_v37  ;;  %v5913_v12 = vpack.c.bf16 %v941_v7, %v940_v5  ;;  %v942_v20 = vld [vmem:[%s6386_s29 + $0x1560] sm:$0xff] }
 0x153   : > { %v5901_v42 = vpack.c.bf16 %v935_v38, %v934_v35  ;;  %v955_v39 = vld [vmem:[%s6386_s29 + $0x15c8] sm:$0xff]  ;;  %v5873_v34 = vpack.c.bf16 %v905_v47, %v904_v45  ;;  %v5883_v18 = vpack.c.bf16 %v927_v10, %v926_v9  ;;  %v5887_v40 = vpack.c.bf16 %v929_v28, %v928_v27  ;;  %v945_v45 = vld [vmem:[%s6386_s29 + $0x1578] sm:$0xff]  ;;  %v978_v47 = vld [vmem:[%s6386_s29 + $0x1680] sm:$0xff] }
 0x154   : > { %v7160_v63 = vadd.f32 %v4283_v50, %v1981_v57  ;;  %5822 = vmatpush3.bf16.msra.mxu0 %v5821_v48  ;;  %v922_v50 = vld [vmem:[%s6386_s29 + $0x14c0] sm:$0xff]  ;;  %v979_v37 = vld [vmem:[%s6386_s29 + $0x1688] sm:$0xff]  ;;  %v5959_v5 = vpack.c.bf16 %v1013_v62, %v1012_v46  ;;  %v985_v27 = vld [vmem:[%s6386_s29 + $0x16b8] sm:$0xff] }
 0x155   : > { %5854 = vmatpush3.bf16.msra.mxu1 %v5853_v51  ;;  %5824 = vmatprep.subr.bf16.mxu0 %v5823_v54  ;;  %v923_v51 = vld [vmem:[%s6386_s29 + $0x14c8] sm:$0xff]  ;;  %v954_v54 = vld [vmem:[%s6386_s29 + $0x15c0] sm:$0xff]  ;;  %v1017_v28 = vld [vmem:[%s6386_s29 + $0x17b8] sm:$0xff] }
 0x156   : > { %5856 = vmatprep.subr.bf16.mxu1 %v5855_v59  ;;  %v5875_v57 = vpack.c.bf16 %v923_v51, %v922_v50  ;;  %v906_v59 = vld [vmem:[%s6386_s29 + $0x1440] sm:$0xff]  ;;  %v5907_v52 = vpack.c.bf16 %v955_v39, %v954_v54  ;;  %v1011_v49 = vld [vmem:[%s6386_s29 + $0x1788] sm:$0xff]  ;;  %v5923_v39 = vpack.c.bf16 %v979_v37, %v978_v47 }
 0x157   : > { %v982_v7 = vld [vmem:[%s6386_s29 + $0x16a0] sm:$0xff]  ;;  %v983_v9 = vld [vmem:[%s6386_s29 + $0x16a8] sm:$0xff] }
 0x158   : > { %5826 = vmatpush3.bf16.msra.mxu0 %v5825_v11  ;;  %v956_v11 = vld [vmem:[%s6386_s29 + $0x15d0] sm:$0xff]  ;;  %v1002_v47 = vld [vmem:[%s6386_s29 + $0x1740] sm:$0xff]  ;;  %v991_v62 = vld [vmem:[%s6386_s29 + $0x16e8] sm:$0xff] }
 0x159   : > { %5858 = vmatpush3.bf16.msra.mxu1 %v5857_v0  ;;  %5860 = vmatprep.subr.bf16.mxu0 %v5859_v55  ;;  %v957_v0 = vld [vmem:[%s6386_s29 + $0x15d8] sm:$0xff]  ;;  %v5877_v55 = vpack.c.bf16 %v907_v60, %v906_v59  ;;  %v995_v60 = vld [vmem:[%s6386_s29 + $0x1708] sm:$0xff]  ;;  %v990_v46 = vld [vmem:[%s6386_s29 + $0x16e0] sm:$0xff] }
 0x15a   : > { %5892 = vmatprep.subr.bf16.mxu1 %v5891_v4  ;;  %v909_v4 = vld [vmem:[%s6386_s29 + $0x1458] sm:$0xff]  ;;  %v5911_v6 = vpack.c.bf16 %v957_v0, %v956_v11 }
 0x15b   : > { %2959 = vmatmul.mubr.f32.vlgmr.msra.gmra.mrb[18].mxu0 %v7089_v23  ;;  %v903_v23 = vld [vmem:[%s6386_s29 + $0x1428] sm:$0xff] }
 0x15c   : > { %5862 = vmatpush3.bf16.msra.mxu0 %v5861_v13  ;;  %3029 = vmatmul.mubr.f32.vlgmr.msra.gmra.mrb[18].mxu1 %v7094_v26  ;;  %v952_v26 = vld [vmem:[%s6386_s29 + $0x15b0] sm:$0xff]  ;;  %v5869_v41 = vpack.c.bf16 %v903_v23, %v902_v33  ;;  %v958_v13 = vld [vmem:[%s6386_s29 + $0x15e0] sm:$0xff] }
 0x15d   : > { %5894 = vmatpush3.bf16.msra.mxu1 %v5893_v15  ;;  %5864 = vmatprep.subr.bf16.mxu0 %v5863_v17  ;;  %v5903_v48 = vpack.c.bf16 %v953_v53, %v952_v26  ;;  %v959_v15 = vld [vmem:[%s6386_s29 + $0x15e8] sm:$0xff]  ;;  %v5881_v17 = vpack.c.bf16 %v909_v4, %v908_v3  ;;  %v912_v26 = vld [vmem:[%s6386_s29 + $0x1470] sm:$0xff]  ;;  %v913_v53 = vld [vmem:[%s6386_s29 + $0x1478] sm:$0xff] }
 0x15e   : > { %5896 = vmatprep.subr.bf16.mxu1 %v5895_v16  ;;  %3098 = vmatprep.mubr.f32.mxu0 %v1483_v25  ;;  %v911_v16 = vld [vmem:[%s6386_s29 + $0x1468] sm:$0xff]  ;;  %v5915_v24 = vpack.c.bf16 %v959_v15, %v958_v13  ;;  %v965_v3 = vld [vmem:[%s6386_s29 + $0x1618] sm:$0xff]  ;;  %v996_v4 = vld [vmem:[%s6386_s29 + $0x1710] sm:$0xff] }
 0x15f   : > { %3168 = vmatprep.mubr.f32.mxu1 %v1484_v29  ;;  %v943_v25 = vld [vmem:[%s6386_s29 + $0x1568] sm:$0xff]  ;;  %v5885_v35 = vpack.c.bf16 %v911_v16, %v910_v19  ;;  %v1014_v13 = vld [vmem:[%s6386_s29 + $0x17a0] sm:$0xff]  ;;  %v5931_v19 = vpack.c.bf16 %v983_v9, %v982_v7 }
 0x160   : > { %5866 = vmatpush3.bf16.msra.mxu0 %v5865_v30  ;;  %v5917_v43 = vpack.c.bf16 %v943_v25, %v942_v20  ;;  %v1015_v15 = vld [vmem:[%s6386_s29 + $0x17a8] sm:$0xff]  ;;  %v966_v16 = vld [vmem:[%s6386_s29 + $0x1620] sm:$0xff]  ;;  %v984_v25 = vld [vmem:[%s6386_s29 + $0x16b0] sm:$0xff] }
 0x161   : > { %5898 = vmatpush3.bf16.msra.mxu1 %v5897_v31  ;;  %5868 = vmatprep.subr.bf16.mxu0 %v5867_v32  ;;  %v960_v31 = vld [vmem:[%s6386_s29 + $0x15f0] sm:$0xff]  ;;  %v961_v32 = vld [vmem:[%s6386_s29 + $0x15f8] sm:$0xff]  ;;  %v998_v20 = vld [vmem:[%s6386_s29 + $0x1720] sm:$0xff] }
 0x162   : > { %5900 = vmatprep.subr.bf16.mxu1 %v5899_v36  ;;  %v253_v36 = vld [vmem:[%s6381_s25 + $0x58] sm:$0xff] }
 0x163   : > { %v1485_v50 = vcombine.high %v253_v36, %v253_v36  ;;  %v7249_v58 = vrot.slane %v253_v36, %v6439_v14  ;;  %v1001_v36 = vld [vmem:[%s6386_s29 + $0x1738] sm:$0xff] }
 0x164   : > { %5870 = vmatpush3.bf16.msra.mxu0 %v5869_v41  ;;  %v944_v41 = vld [vmem:[%s6386_s29 + $0x1570] sm:$0xff] }
 0x165   : > { %5902 = vmatpush3.bf16.msra.mxu1 %v5901_v42  ;;  %5872 = vmatprep.subr.bf16.mxu0 %v5871_v44  ;;  %v5919_v44 = vpack.c.bf16 %v961_v32, %v960_v31  ;;  %v5921_v54 = vpack.c.bf16 %v945_v45, %v944_v41  ;;  %v7254_v11 = vrot.slane %v1485_v50, %v6439_v14  ;;  %v968_v32 = vld [vmem:[%s6386_s29 + $0x1630] sm:$0xff]  ;;  %v971_v45 = vld [vmem:[%s6386_s29 + $0x1648] sm:$0xff]  ;;  %v989_v50 = vld [vmem:[%s6386_s29 + $0x16d8] sm:$0xff] }
 0x166   : > { %5904 = vmatprep.subr.bf16.mxu1 %v5903_v48  ;;  %v1010_v48 = vld [vmem:[%s6386_s29 + $0x1780] sm:$0xff]  ;;  %v1500_v10 = vcombine.high %v7249_v58, %v7249_v58  ;;  %v5935_v31 = vpack.c.bf16 %v985_v27, %v984_v25 }
 0x167   : > { %v5955_v59 = vpack.c.bf16 %v1011_v49, %v1010_v48  ;;  %v1003_v48 = vld [vmem:[%s6386_s29 + $0x1748] sm:$0xff]  ;;  %v988_v49 = vld [vmem:[%s6386_s29 + $0x16d0] sm:$0xff] }
 0x168   : > { %5874 = vmatpush3.bf16.msra.mxu0 %v5873_v34  ;;  %v962_v34 = vld [vmem:[%s6386_s29 + $0x1600] sm:$0xff] }
 0x169   : > { %5906 = vmatpush3.bf16.msra.mxu1 %v5905_v56  ;;  %5876 = vmatprep.subr.bf16.mxu0 %v5875_v57  ;;  %v963_v56 = vld [vmem:[%s6386_s29 + $0x1608] sm:$0xff]  ;;  %v994_v57 = vld [vmem:[%s6386_s29 + $0x1700] sm:$0xff] }
 0x16a   : > { %5908 = vmatprep.subr.bf16.mxu1 %v5907_v52  ;;  %v981_v52 = vld [vmem:[%s6386_s29 + $0x1698] sm:$0xff]  ;;  %v5925_v0 = vpack.c.bf16 %v963_v56, %v962_v34  ;;  %v5973_v34 = vpack.c.bf16 %v1003_v48, %v1002_v47  ;;  %v5943_v56 = vpack.c.bf16 %v989_v50, %v988_v49  ;;  %v1044_v47 = vld [vmem:[%s6386_s29 + $0x1890] sm:$0xff] }
 0x16b   : > { %v1076_v49 = vld [vmem:[%s6386_s29 + $0x1990] sm:$0xff]  ;;  %v1077_v50 = vld [vmem:[%s6386_s29 + $0x1998] sm:$0xff] }
 0x16c   : > { %5878 = vmatpush3.bf16.msra.mxu0 %v5877_v55  ;;  %v5957_v55 = vpack.c.bf16 %v995_v60, %v994_v57  ;;  %v972_v57 = vld [vmem:[%s6386_s29 + $0x1650] sm:$0xff] }
 0x16d   : > { %5910 = vmatpush3.bf16.msra.mxu1 %v5909_v1  ;;  %5880 = vmatprep.subr.bf16.mxu0 %v5879_v2  ;;  %v5927_v1 = vpack.c.bf16 %v981_v52, %v980_v61  ;;  %v964_v2 = vld [vmem:[%s6386_s29 + $0x1610] sm:$0xff]  ;;  %v1005_v52 = vld [vmem:[%s6386_s29 + $0x1758] sm:$0xff] }
 0x16e   : > { %v4316_v21 = vpop.f32.mrb[6].mxu0  ;;  %5912 = vmatprep.subr.bf16.mxu1 %v5911_v6  ;;  %v997_v6 = vld [vmem:[%s6386_s29 + $0x1718] sm:$0xff]  ;;  %v1004_v60 = vld [vmem:[%s6386_s29 + $0x1750] sm:$0xff] }
 0x16f   : > { %v4317_v29 = vpop.f32.mrb[7].mxu0  ;;  %v4351_v30 = vpop.f32.mrb[6].mxu1 }
 0x170   : > { %v4318_v33 = vadd.f32 %v4317_v29, %v4316_v21  ;;  %5882 = vmatpush3.bf16.msra.mxu0 %v5881_v17  ;;  %v4352_v23 = vpop.f32.mrb[7].mxu1  ;;  %v1501_v17 = vcombine.high %v7254_v11, %v7254_v11  ;;  %v5963_v21 = vpack.c.bf16 %v1015_v15, %v1014_v13  ;;  %v992_v13 = vld [vmem:[%s6386_s29 + $0x16f0] sm:$0xff]  ;;  %v993_v15 = vld [vmem:[%s6386_s29 + $0x16f8] sm:$0xff] }
 0x171   : > { %v4353_v38 = vadd.f32 %v4352_v23, %v4351_v30  ;;  %5914 = vmatpush3.bf16.msra.mxu1 %v5913_v12  ;;  %5884 = vmatprep.subr.bf16.mxu0 %v5883_v18  ;;  %v5929_v12 = vpack.c.bf16 %v965_v3, %v964_v2  ;;  %v5961_v18 = vpack.c.bf16 %v997_v6, %v996_v4  ;;  %v1000_v23 = vld [vmem:[%s6386_s29 + $0x1730] sm:$0xff]  ;;  %v974_v4 = vld [vmem:[%s6386_s29 + $0x1660] sm:$0xff] }
 0x172   : > { %v2121_v42 = vadd.f32 %v4318_v33, %v7160_v63  ;;  %5916 = vmatprep.subr.bf16.mxu1 %v5915_v24  ;;  %v5889_v63 = vpack.c.bf16 %v913_v53, %v912_v26  ;;  %v999_v24 = vld [vmem:[%s6386_s29 + $0x1728] sm:$0xff]  ;;  %v969_v33 = vld [vmem:[%s6386_s29 + $0x1638] sm:$0xff]  ;;  %v5969_v41 = vpack.c.bf16 %v1001_v36, %v1000_v23  ;;  %v5977_v2 = vpack.c.bf16 %v1005_v52, %v1004_v60  ;;  %v1006_v6 = vld [vmem:[%s6386_s29 + $0x1760] sm:$0xff] }
 0x173   : > { %v5965_v30 = vpack.c.bf16 %v999_v24, %v998_v20  ;;  %v1019_v26 = vld [vmem:[%s6386_s29 + $0x17c8] sm:$0xff]  ;;  %v5937_v53 = vpack.c.bf16 %v969_v33, %v968_v32  ;;  %v5947_v3 = vpack.c.bf16 %v991_v62, %v990_v46  ;;  %v5951_v27 = vpack.c.bf16 %v993_v15, %v992_v13  ;;  %v1009_v32 = vld [vmem:[%s6386_s29 + $0x1778] sm:$0xff]  ;;  %v1042_v33 = vld [vmem:[%s6386_s29 + $0x1880] sm:$0xff] }
 0x174   : > { %v7240_v51 = vadd.f32 %v4353_v38, %v2121_v42  ;;  %5886 = vmatpush3.bf16.msra.mxu0 %v5885_v35  ;;  %v986_v38 = vld [vmem:[%s6386_s29 + $0x16c0] sm:$0xff]  ;;  %v1043_v23 = vld [vmem:[%s6386_s29 + $0x1888] sm:$0xff]  ;;  %v6023_v60 = vpack.c.bf16 %v1077_v50, %v1076_v49  ;;  %v1049_v13 = vld [vmem:[%s6386_s29 + $0x18b8] sm:$0xff] }
 0x175   : > { %5918 = vmatpush3.bf16.msra.mxu1 %v5917_v43  ;;  %5888 = vmatprep.subr.bf16.mxu0 %v5887_v40  ;;  %v987_v43 = vld [vmem:[%s6386_s29 + $0x16c8] sm:$0xff]  ;;  %v1018_v40 = vld [vmem:[%s6386_s29 + $0x17c0] sm:$0xff]  ;;  %v1081_v15 = vld [vmem:[%s6386_s29 + $0x19b8] sm:$0xff] }
 0x176   : > { %5920 = vmatprep.subr.bf16.mxu1 %v5919_v44  ;;  %v5939_v42 = vpack.c.bf16 %v987_v43, %v986_v38  ;;  %v970_v44 = vld [vmem:[%s6386_s29 + $0x1640] sm:$0xff]  ;;  %v5971_v37 = vpack.c.bf16 %v1019_v26, %v1018_v40  ;;  %v1075_v36 = vld [vmem:[%s6386_s29 + $0x1988] sm:$0xff]  ;;  %v5987_v26 = vpack.c.bf16 %v1043_v23, %v1042_v33 }
 0x177   : > { %v1046_v52 = vld [vmem:[%s6386_s29 + $0x18a0] sm:$0xff]  ;;  %v1047_v46 = vld [vmem:[%s6386_s29 + $0x18a8] sm:$0xff] }
 0x178   : > { %5890 = vmatpush3.bf16.msra.mxu0 %v5889_v63  ;;  %v1020_v63 = vld [vmem:[%s6386_s29 + $0x17d0] sm:$0xff]  ;;  %v1066_v33 = vld [vmem:[%s6386_s29 + $0x1940] sm:$0xff]  ;;  %v1055_v50 = vld [vmem:[%s6386_s29 + $0x18e8] sm:$0xff] }
 0x179   : > { %5922 = vmatpush3.bf16.msra.mxu1 %v5921_v54  ;;  %5924 = vmatprep.subr.bf16.mxu0 %v5923_v39  ;;  %v1021_v54 = vld [vmem:[%s6386_s29 + $0x17d8] sm:$0xff]  ;;  %v5941_v39 = vpack.c.bf16 %v971_v45, %v970_v44  ;;  %v1059_v45 = vld [vmem:[%s6386_s29 + $0x1908] sm:$0xff]  ;;  %v1054_v49 = vld [vmem:[%s6386_s29 + $0x18e0] sm:$0xff] }
 0x17a   : > { %5956 = vmatprep.subr.bf16.mxu1 %v5955_v59  ;;  %v973_v59 = vld [vmem:[%s6386_s29 + $0x1658] sm:$0xff]  ;;  %v5975_v61 = vpack.c.bf16 %v1021_v54, %v1020_v63 }
 0x17b   : > { %3099 = vmatmul.mubr.f32.vlgmr.msra.gmra.mrb[20].mxu0 %v7169_v8  ;;  %v967_v8 = vld [vmem:[%s6386_s29 + $0x1628] sm:$0xff] }
 0x17c   : > { %5926 = vmatpush3.bf16.msra.mxu0 %v5925_v0  ;;  %3169 = vmatmul.mubr.f32.vlgmr.msra.gmra.mrb[20].mxu1 %v7174_v22  ;;  %v1016_v22 = vld [vmem:[%s6386_s29 + $0x17b0] sm:$0xff]  ;;  %v5933_v29 = vpack.c.bf16 %v967_v8, %v966_v16  ;;  %v1022_v0 = vld [vmem:[%s6386_s29 + $0x17e0] sm:$0xff] }
 0x17d   : > { %5958 = vmatpush3.bf16.msra.mxu1 %v5957_v55  ;;  %5928 = vmatprep.subr.bf16.mxu0 %v5927_v1  ;;  %v5967_v35 = vpack.c.bf16 %v1017_v28, %v1016_v22  ;;  %v1023_v55 = vld [vmem:[%s6386_s29 + $0x17e8] sm:$0xff]  ;;  %v5945_v1 = vpack.c.bf16 %v973_v59, %v972_v57  ;;  %v976_v22 = vld [vmem:[%s6386_s29 + $0x1670] sm:$0xff]  ;;  %v977_v28 = vld [vmem:[%s6386_s29 + $0x1678] sm:$0xff] }
 0x17e   : > { %5960 = vmatprep.subr.bf16.mxu1 %v5959_v5  ;;  %3238 = vmatprep.mubr.f32.mxu0 %v1500_v10  ;;  %v975_v5 = vld [vmem:[%s6386_s29 + $0x1668] sm:$0xff]  ;;  %v5979_v9 = vpack.c.bf16 %v1023_v55, %v1022_v0  ;;  %v1029_v57 = vld [vmem:[%s6386_s29 + $0x1818] sm:$0xff]  ;;  %v1060_v59 = vld [vmem:[%s6386_s29 + $0x1910] sm:$0xff] }
 0x17f   : > { %3308 = vmatprep.mubr.f32.mxu1 %v1501_v17  ;;  %v1007_v10 = vld [vmem:[%s6386_s29 + $0x1768] sm:$0xff]  ;;  %v5949_v20 = vpack.c.bf16 %v975_v5, %v974_v4  ;;  %v1078_v0 = vld [vmem:[%s6386_s29 + $0x19a0] sm:$0xff]  ;;  %v5995_v4 = vpack.c.bf16 %v1047_v46, %v1046_v52 }
 0x180   : > { %5930 = vmatpush3.bf16.msra.mxu0 %v5929_v12  ;;  %v5981_v25 = vpack.c.bf16 %v1007_v10, %v1006_v6  ;;  %v1079_v55 = vld [vmem:[%s6386_s29 + $0x19a8] sm:$0xff]  ;;  %v1030_v5 = vld [vmem:[%s6386_s29 + $0x1820] sm:$0xff]  ;;  %v1048_v10 = vld [vmem:[%s6386_s29 + $0x18b0] sm:$0xff] }
 0x181   : > { %5962 = vmatpush3.bf16.msra.mxu1 %v5961_v18  ;;  %5932 = vmatprep.subr.bf16.mxu0 %v5931_v19  ;;  %v1024_v18 = vld [vmem:[%s6386_s29 + $0x17f0] sm:$0xff]  ;;  %v1025_v19 = vld [vmem:[%s6386_s29 + $0x17f8] sm:$0xff]  ;;  %v1062_v6 = vld [vmem:[%s6386_s29 + $0x1920] sm:$0xff] }
 0x182   : > { %5964 = vmatprep.subr.bf16.mxu1 %v5963_v21  ;;  %v254_v21 = vld [vmem:[%s6381_s25 + $0x60] sm:$0xff] }
 0x183   : > { %v1502_v38 = vcombine.high %v254_v21, %v254_v21  ;;  %v7329_v48 = vrot.slane %v254_v21, %v6439_v14  ;;  %v1065_v21 = vld [vmem:[%s6386_s29 + $0x1938] sm:$0xff] }
 0x184   : > { %5934 = vmatpush3.bf16.msra.mxu0 %v5933_v29  ;;  %v1008_v29 = vld [vmem:[%s6386_s29 + $0x1770] sm:$0xff] }
 0x185   : > { %5966 = vmatpush3.bf16.msra.mxu1 %v5965_v30  ;;  %5936 = vmatprep.subr.bf16.mxu0 %v5935_v31  ;;  %v5983_v31 = vpack.c.bf16 %v1025_v19, %v1024_v18  ;;  %v5985_v40 = vpack.c.bf16 %v1009_v32, %v1008_v29  ;;  %v7334_v63 = vrot.slane %v1502_v38, %v6439_v14  ;;  %v1032_v19 = vld [vmem:[%s6386_s29 + $0x1830] sm:$0xff]  ;;  %v1035_v32 = vld [vmem:[%s6386_s29 + $0x1848] sm:$0xff]  ;;  %v1053_v38 = vld [vmem:[%s6386_s29 + $0x18d8] sm:$0xff] }
 0x186   : > { %5968 = vmatprep.subr.bf16.mxu1 %v5967_v35  ;;  %v1074_v35 = vld [vmem:[%s6386_s29 + $0x1980] sm:$0xff]  ;;  %v1517_v62 = vcombine.high %v7329_v48, %v7329_v48  ;;  %v5999_v18 = vpack.c.bf16 %v1049_v13, %v1048_v10 }
 0x187   : > { %v6019_v44 = vpack.c.bf16 %v1075_v36, %v1074_v35  ;;  %v1067_v35 = vld [vmem:[%s6386_s29 + $0x1948] sm:$0xff]  ;;  %v1052_v36 = vld [vmem:[%s6386_s29 + $0x18d0] sm:$0xff] }
 0x188   : > { %5938 = vmatpush3.bf16.msra.mxu0 %v5937_v53  ;;  %v1026_v53 = vld [vmem:[%s6386_s29 + $0x1800] sm:$0xff] }
 0x189   : > { %5970 = vmatpush3.bf16.msra.mxu1 %v5969_v41  ;;  %5940 = vmatprep.subr.bf16.mxu0 %v5939_v42  ;;  %v1027_v41 = vld [vmem:[%s6386_s29 + $0x1808] sm:$0xff]  ;;  %v1058_v42 = vld [vmem:[%s6386_s29 + $0x1900] sm:$0xff] }
 0x18a   : > { %5972 = vmatprep.subr.bf16.mxu1 %v5971_v37  ;;  %v1045_v37 = vld [vmem:[%s6386_s29 + $0x1898] sm:$0xff]  ;;  %v5989_v54 = vpack.c.bf16 %v1027_v41, %v1026_v53  ;;  %v6037_v53 = vpack.c.bf16 %v1067_v35, %v1066_v33  ;;  %v6007_v41 = vpack.c.bf16 %v1053_v38, %v1052_v36  ;;  %v1108_v33 = vld [vmem:[%s6386_s29 + $0x1a90] sm:$0xff] }
 0x18b   : > { %v1140_v36 = vld [vmem:[%s6386_s29 + $0x1b90] sm:$0xff]  ;;  %v1141_v38 = vld [vmem:[%s6386_s29 + $0x1b98] sm:$0xff] }
 0x18c   : > { %5942 = vmatpush3.bf16.msra.mxu0 %v5941_v39  ;;  %v6021_v39 = vpack.c.bf16 %v1059_v45, %v1058_v42  ;;  %v1036_v42 = vld [vmem:[%s6386_s29 + $0x1850] sm:$0xff] }
 0x18d   : > { %5974 = vmatpush3.bf16.msra.mxu1 %v5973_v34  ;;  %5944 = vmatprep.subr.bf16.mxu0 %v5943_v56  ;;  %v5991_v34 = vpack.c.bf16 %v1045_v37, %v1044_v47  ;;  %v1028_v56 = vld [vmem:[%s6386_s29 + $0x1810] sm:$0xff]  ;;  %v1069_v37 = vld [vmem:[%s6386_s29 + $0x1958] sm:$0xff] }
 0x18e   : > { %v4386_v7 = vpop.f32.mrb[8].mxu0  ;;  %5976 = vmatprep.subr.bf16.mxu1 %v5975_v61  ;;  %v1061_v61 = vld [vmem:[%s6386_s29 + $0x1918] sm:$0xff]  ;;  %v1068_v45 = vld [vmem:[%s6386_s29 + $0x1950] sm:$0xff] }
 0x18f   : > { %v4387_v17 = vpop.f32.mrb[9].mxu0  ;;  %v4421_v12 = vpop.f32.mrb[8].mxu1 }
 0x190   : > { %v4388_v16 = vadd.f32 %v4387_v17, %v4386_v7  ;;  %5946 = vmatpush3.bf16.msra.mxu0 %v5945_v1  ;;  %v4422_v8 = vpop.f32.mrb[9].mxu1  ;;  %v1518_v1 = vcombine.high %v7334_v63, %v7334_v63  ;;  %v6027_v7 = vpack.c.bf16 %v1079_v55, %v1078_v0  ;;  %v1056_v0 = vld [vmem:[%s6386_s29 + $0x18f0] sm:$0xff]  ;;  %v1057_v55 = vld [vmem:[%s6386_s29 + $0x18f8] sm:$0xff] }
 0x191   : > { %v4423_v24 = vadd.f32 %v4422_v8, %v4421_v12  ;;  %5978 = vmatpush3.bf16.msra.mxu1 %v5977_v2  ;;  %5948 = vmatprep.subr.bf16.mxu0 %v5947_v3  ;;  %v5993_v2 = vpack.c.bf16 %v1029_v57, %v1028_v56  ;;  %v6025_v3 = vpack.c.bf16 %v1061_v61, %v1060_v59  ;;  %v1064_v8 = vld [vmem:[%s6386_s29 + $0x1930] sm:$0xff]  ;;  %v1038_v59 = vld [vmem:[%s6386_s29 + $0x1860] sm:$0xff] }
 0x192   : > { %v2261_v30 = vadd.f32 %v4388_v16, %v7240_v51  ;;  %5980 = vmatprep.subr.bf16.mxu1 %v5979_v9  ;;  %v5953_v51 = vpack.c.bf16 %v977_v28, %v976_v22  ;;  %v1063_v9 = vld [vmem:[%s6386_s29 + $0x1928] sm:$0xff]  ;;  %v1033_v16 = vld [vmem:[%s6386_s29 + $0x1838] sm:$0xff]  ;;  %v6033_v29 = vpack.c.bf16 %v1065_v21, %v1064_v8  ;;  %v6041_v56 = vpack.c.bf16 %v1069_v37, %v1068_v45  ;;  %v1070_v61 = vld [vmem:[%s6386_s29 + $0x1960] sm:$0xff] }
 0x193   : > { %v6029_v12 = vpack.c.bf16 %v1063_v9, %v1062_v6  ;;  %v1083_v22 = vld [vmem:[%s6386_s29 + $0x19c8] sm:$0xff]  ;;  %v6001_v28 = vpack.c.bf16 %v1033_v16, %v1032_v19  ;;  %v6011_v57 = vpack.c.bf16 %v1055_v50, %v1054_v49  ;;  %v6015_v13 = vpack.c.bf16 %v1057_v55, %v1056_v0  ;;  %v1073_v19 = vld [vmem:[%s6386_s29 + $0x1978] sm:$0xff]  ;;  %v1106_v16 = vld [vmem:[%s6386_s29 + $0x1a80] sm:$0xff] }
 0x194   : > { %v7320_v43 = vadd.f32 %v4423_v24, %v2261_v30  ;;  %5950 = vmatpush3.bf16.msra.mxu0 %v5949_v20  ;;  %v1050_v24 = vld [vmem:[%s6386_s29 + $0x18c0] sm:$0xff]  ;;  %v1107_v8 = vld [vmem:[%s6386_s29 + $0x1a88] sm:$0xff]  ;;  %v6087_v45 = vpack.c.bf16 %v1141_v38, %v1140_v36  ;;  %v1113_v0 = vld [vmem:[%s6386_s29 + $0x1ab8] sm:$0xff] }
 0x195   : > { %5982 = vmatpush3.bf16.msra.mxu1 %v5981_v25  ;;  %5952 = vmatprep.subr.bf16.mxu0 %v5951_v27  ;;  %v1051_v25 = vld [vmem:[%s6386_s29 + $0x18c8] sm:$0xff]  ;;  %v1082_v27 = vld [vmem:[%s6386_s29 + $0x19c0] sm:$0xff]  ;;  %v1145_v55 = vld [vmem:[%s6386_s29 + $0x1bb8] sm:$0xff] }
 0x196   : > { %5984 = vmatprep.subr.bf16.mxu1 %v5983_v31  ;;  %v6003_v30 = vpack.c.bf16 %v1051_v25, %v1050_v24  ;;  %v1034_v31 = vld [vmem:[%s6386_s29 + $0x1840] sm:$0xff]  ;;  %v6035_v23 = vpack.c.bf16 %v1083_v22, %v1082_v27  ;;  %v1139_v21 = vld [vmem:[%s6386_s29 + $0x1b88] sm:$0xff]  ;;  %v6051_v22 = vpack.c.bf16 %v1107_v8, %v1106_v16 }
 0x197   : > { %v1110_v37 = vld [vmem:[%s6386_s29 + $0x1aa0] sm:$0xff]  ;;  %v1111_v49 = vld [vmem:[%s6386_s29 + $0x1aa8] sm:$0xff] }
 0x198   : > { %5954 = vmatpush3.bf16.msra.mxu0 %v5953_v51  ;;  %v1084_v51 = vld [vmem:[%s6386_s29 + $0x19d0] sm:$0xff]  ;;  %v1130_v16 = vld [vmem:[%s6386_s29 + $0x1b40] sm:$0xff]  ;;  %v1119_v38 = vld [vmem:[%s6386_s29 + $0x1ae8] sm:$0xff] }
 0x199   : > { %5986 = vmatpush3.bf16.msra.mxu1 %v5985_v40  ;;  %5988 = vmatprep.subr.bf16.mxu0 %v5987_v26  ;;  %v1085_v40 = vld [vmem:[%s6386_s29 + $0x19d8] sm:$0xff]  ;;  %v6005_v26 = vpack.c.bf16 %v1035_v32, %v1034_v31  ;;  %v1123_v32 = vld [vmem:[%s6386_s29 + $0x1b08] sm:$0xff]  ;;  %v1118_v36 = vld [vmem:[%s6386_s29 + $0x1ae0] sm:$0xff] }
 0x19a   : > { %6020 = vmatprep.subr.bf16.mxu1 %v6019_v44  ;;  %v1037_v44 = vld [vmem:[%s6386_s29 + $0x1858] sm:$0xff]  ;;  %v6039_v47 = vpack.c.bf16 %v1085_v40, %v1084_v51 }
 0x19b   : > { %3239 = vmatmul.mubr.f32.vlgmr.msra.gmra.mrb[22].mxu0 %v7249_v58  ;;  %v1031_v58 = vld [vmem:[%s6386_s29 + $0x1828] sm:$0xff] }
 0x19c   : > { %5990 = vmatpush3.bf16.msra.mxu0 %v5989_v54  ;;  %3309 = vmatmul.mubr.f32.vlgmr.msra.gmra.mrb[22].mxu1 %v7254_v11  ;;  %v1080_v11 = vld [vmem:[%s6386_s29 + $0x19b0] sm:$0xff]  ;;  %v5997_v17 = vpack.c.bf16 %v1031_v58, %v1030_v5  ;;  %v1086_v54 = vld [vmem:[%s6386_s29 + $0x19e0] sm:$0xff] }
 0x19d   : > { %6022 = vmatpush3.bf16.msra.mxu1 %v6021_v39  ;;  %5992 = vmatprep.subr.bf16.mxu0 %v5991_v34  ;;  %v6031_v20 = vpack.c.bf16 %v1081_v15, %v1080_v11  ;;  %v1087_v39 = vld [vmem:[%s6386_s29 + $0x19e8] sm:$0xff]  ;;  %v6009_v34 = vpack.c.bf16 %v1037_v44, %v1036_v42  ;;  %v1040_v11 = vld [vmem:[%s6386_s29 + $0x1870] sm:$0xff]  ;;  %v1041_v15 = vld [vmem:[%s6386_s29 + $0x1878] sm:$0xff] }
 0x19e   : > { %6024 = vmatprep.subr.bf16.mxu1 %v6023_v60  ;;  %3378 = vmatprep.mubr.f32.mxu0 %v1517_v62  ;;  %v1039_v60 = vld [vmem:[%s6386_s29 + $0x1868] sm:$0xff]  ;;  %v6043_v46 = vpack.c.bf16 %v1087_v39, %v1086_v54  ;;  %v1093_v42 = vld [vmem:[%s6386_s29 + $0x1a18] sm:$0xff]  ;;  %v1124_v44 = vld [vmem:[%s6386_s29 + $0x1b10] sm:$0xff] }
 0x19f   : > { %3448 = vmatprep.mubr.f32.mxu1 %v1518_v1  ;;  %v1071_v62 = vld [vmem:[%s6386_s29 + $0x1968] sm:$0xff]  ;;  %v6013_v6 = vpack.c.bf16 %v1039_v60, %v1038_v59  ;;  %v1142_v54 = vld [vmem:[%s6386_s29 + $0x1ba0] sm:$0xff]  ;;  %v6059_v59 = vpack.c.bf16 %v1111_v49, %v1110_v37 }
 0x1a0   : > { %5994 = vmatpush3.bf16.msra.mxu0 %v5993_v2  ;;  %v6045_v10 = vpack.c.bf16 %v1071_v62, %v1070_v61  ;;  %v1143_v39 = vld [vmem:[%s6386_s29 + $0x1ba8] sm:$0xff]  ;;  %v1094_v60 = vld [vmem:[%s6386_s29 + $0x1a20] sm:$0xff]  ;;  %v1112_v62 = vld [vmem:[%s6386_s29 + $0x1ab0] sm:$0xff] }
 0x1a1   : > { %6026 = vmatpush3.bf16.msra.mxu1 %v6025_v3  ;;  %5996 = vmatprep.subr.bf16.mxu0 %v5995_v4  ;;  %v1088_v3 = vld [vmem:[%s6386_s29 + $0x19f0] sm:$0xff]  ;;  %v1089_v4 = vld [vmem:[%s6386_s29 + $0x19f8] sm:$0xff]  ;;  %v1126_v61 = vld [vmem:[%s6386_s29 + $0x1b20] sm:$0xff] }
 0x1a2   : > { %6028 = vmatprep.subr.bf16.mxu1 %v6027_v7  ;;  %v255_v7 = vld [vmem:[%s6381_s25 + $0x68] sm:$0xff] }
 0x1a3   : > { %v1519_v24 = vcombine.high %v255_v7, %v255_v7  ;;  %v7409_v35 = vrot.slane %v255_v7, %v6439_v14  ;;  %v1129_v7 = vld [vmem:[%s6386_s29 + $0x1b38] sm:$0xff] }
 0x1a4   : > { %5998 = vmatpush3.bf16.msra.mxu0 %v5997_v17  ;;  %v1072_v17 = vld [vmem:[%s6386_s29 + $0x1970] sm:$0xff] }
 0x1a5   : > { %6030 = vmatpush3.bf16.msra.mxu1 %v6029_v12  ;;  %6000 = vmatprep.subr.bf16.mxu0 %v5999_v18  ;;  %v6047_v18 = vpack.c.bf16 %v1089_v4, %v1088_v3  ;;  %v6049_v27 = vpack.c.bf16 %v1073_v19, %v1072_v17  ;;  %v7414_v51 = vrot.slane %v1519_v24, %v6439_v14  ;;  %v1096_v4 = vld [vmem:[%s6386_s29 + $0x1a30] sm:$0xff]  ;;  %v1099_v19 = vld [vmem:[%s6386_s29 + $0x1a48] sm:$0xff]  ;;  %v1117_v24 = vld [vmem:[%s6386_s29 + $0x1ad8] sm:$0xff] }
 0x1a6   : > { %6032 = vmatprep.subr.bf16.mxu1 %v6031_v20  ;;  %v1138_v20 = vld [vmem:[%s6386_s29 + $0x1b80] sm:$0xff]  ;;  %v1534_v50 = vcombine.high %v7409_v35, %v7409_v35  ;;  %v6063_v3 = vpack.c.bf16 %v1113_v0, %v1112_v62 }
 0x1a7   : > { %v6083_v31 = vpack.c.bf16 %v1139_v21, %v1138_v20  ;;  %v1131_v20 = vld [vmem:[%s6386_s29 + $0x1b48] sm:$0xff]  ;;  %v1116_v21 = vld [vmem:[%s6386_s29 + $0x1ad0] sm:$0xff] }
 0x1a8   : > { %6002 = vmatpush3.bf16.msra.mxu0 %v6001_v28  ;;  %v1090_v28 = vld [vmem:[%s6386_s29 + $0x1a00] sm:$0xff] }
 0x1a9   : > { %6034 = vmatpush3.bf16.msra.mxu1 %v6033_v29  ;;  %6004 = vmatprep.subr.bf16.mxu0 %v6003_v30  ;;  %v1091_v29 = vld [vmem:[%s6386_s29 + $0x1a08] sm:$0xff]  ;;  %v1122_v30 = vld [vmem:[%s6386_s29 + $0x1b00] sm:$0xff] }
 0x1aa   : > { %6036 = vmatprep.subr.bf16.mxu1 %v6035_v23  ;;  %v1109_v23 = vld [vmem:[%s6386_s29 + $0x1a98] sm:$0xff]  ;;  %v6053_v40 = vpack.c.bf16 %v1091_v29, %v1090_v28  ;;  %v6101_v28 = vpack.c.bf16 %v1131_v20, %v1130_v16  ;;  %v6071_v29 = vpack.c.bf16 %v1117_v24, %v1116_v21  ;;  %v1172_v16 = vld [vmem:[%s6386_s29 + $0x1c90] sm:$0xff] }
 0x1ab   : > { %v1204_v21 = vld [vmem:[%s6386_s29 + $0x1d90] sm:$0xff]  ;;  %v1205_v24 = vld [vmem:[%s6386_s29 + $0x1d98] sm:$0xff] }
 0x1ac   : > { %6006 = vmatpush3.bf16.msra.mxu0 %v6005_v26  ;;  %v6085_v26 = vpack.c.bf16 %v1123_v32, %v1122_v30  ;;  %v1100_v30 = vld [vmem:[%s6386_s29 + $0x1a50] sm:$0xff] }
 0x1ad   : > { %6038 = vmatpush3.bf16.msra.mxu1 %v6037_v53  ;;  %6008 = vmatprep.subr.bf16.mxu0 %v6007_v41  ;;  %v6055_v53 = vpack.c.bf16 %v1109_v23, %v1108_v33  ;;  %v1092_v41 = vld [vmem:[%s6386_s29 + $0x1a10] sm:$0xff]  ;;  %v1133_v23 = vld [vmem:[%s6386_s29 + $0x1b58] sm:$0xff] }
 0x1ae   : > { %v4456_v52 = vpop.f32.mrb[10].mxu0  ;;  %6040 = vmatprep.subr.bf16.mxu1 %v6039_v47  ;;  %v1125_v47 = vld [vmem:[%s6386_s29 + $0x1b18] sm:$0xff]  ;;  %v1132_v32 = vld [vmem:[%s6386_s29 + $0x1b50] sm:$0xff] }
 0x1af   : > { %v4457_v1 = vpop.f32.mrb[11].mxu0  ;;  %v4491_v2 = vpop.f32.mrb[10].mxu1 }
 0x1b0   : > { %v4458_v5 = vadd.f32 %v4457_v1, %v4456_v52  ;;  %6010 = vmatpush3.bf16.msra.mxu0 %v6009_v34  ;;  %v4492_v58 = vpop.f32.mrb[11].mxu1  ;;  %v1535_v34 = vcombine.high %v7414_v51, %v7414_v51  ;;  %v6091_v52 = vpack.c.bf16 %v1143_v39, %v1142_v54  ;;  %v1120_v54 = vld [vmem:[%s6386_s29 + $0x1af0] sm:$0xff]  ;;  %v1121_v39 = vld [vmem:[%s6386_s29 + $0x1af8] sm:$0xff] }
 0x1b1   : > { %v4493_v9 = vadd.f32 %v4492_v58, %v4491_v2  ;;  %6042 = vmatpush3.bf16.msra.mxu1 %v6041_v56  ;;  %6012 = vmatprep.subr.bf16.mxu0 %v6011_v57  ;;  %v6057_v56 = vpack.c.bf16 %v1093_v42, %v1092_v41  ;;  %v6089_v57 = vpack.c.bf16 %v1125_v47, %v1124_v44  ;;  %v1128_v58 = vld [vmem:[%s6386_s29 + $0x1b30] sm:$0xff]  ;;  %v1102_v44 = vld [vmem:[%s6386_s29 + $0x1a60] sm:$0xff] }
 0x1b2   : > { %v2401_v12 = vadd.f32 %v4458_v5, %v7320_v43  ;;  %6044 = vmatprep.subr.bf16.mxu1 %v6043_v46  ;;  %v6017_v43 = vpack.c.bf16 %v1041_v15, %v1040_v11  ;;  %v1127_v46 = vld [vmem:[%s6386_s29 + $0x1b28] sm:$0xff]  ;;  %v1097_v5 = vld [vmem:[%s6386_s29 + $0x1a38] sm:$0xff]  ;;  %v6097_v17 = vpack.c.bf16 %v1129_v7, %v1128_v58  ;;  %v6105_v41 = vpack.c.bf16 %v1133_v23, %v1132_v32  ;;  %v1134_v47 = vld [vmem:[%s6386_s29 + $0x1b60] sm:$0xff] }
 0x1b3   : > { %v6093_v2 = vpack.c.bf16 %v1127_v46, %v1126_v61  ;;  %v1147_v11 = vld [vmem:[%s6386_s29 + $0x1bc8] sm:$0xff]  ;;  %v6065_v15 = vpack.c.bf16 %v1097_v5, %v1096_v4  ;;  %v6075_v42 = vpack.c.bf16 %v1119_v38, %v1118_v36  ;;  %v6079_v0 = vpack.c.bf16 %v1121_v39, %v1120_v54  ;;  %v1137_v4 = vld [vmem:[%s6386_s29 + $0x1b78] sm:$0xff]  ;;  %v1170_v5 = vld [vmem:[%s6386_s29 + $0x1c80] sm:$0xff] }
 0x1b4   : > { %v7400_v25 = vadd.f32 %v4493_v9, %v2401_v12  ;;  %6014 = vmatpush3.bf16.msra.mxu0 %v6013_v6  ;;  %v1114_v9 = vld [vmem:[%s6386_s29 + $0x1ac0] sm:$0xff]  ;;  %v1171_v58 = vld [vmem:[%s6386_s29 + $0x1c88] sm:$0xff]  ;;  %v6151_v32 = vpack.c.bf16 %v1205_v24, %v1204_v21  ;;  %v1177_v54 = vld [vmem:[%s6386_s29 + $0x1cb8] sm:$0xff] }
 0x1b5   : > { %6046 = vmatpush3.bf16.msra.mxu1 %v6045_v10  ;;  %6016 = vmatprep.subr.bf16.mxu0 %v6015_v13  ;;  %v1115_v10 = vld [vmem:[%s6386_s29 + $0x1ac8] sm:$0xff]  ;;  %v1146_v13 = vld [vmem:[%s6386_s29 + $0x1bc0] sm:$0xff]  ;;  %v1209_v39 = vld [vmem:[%s6386_s29 + $0x1db8] sm:$0xff] }
 0x1b6   : > { %6048 = vmatprep.subr.bf16.mxu1 %v6047_v18  ;;  %v6067_v12 = vpack.c.bf16 %v1115_v10, %v1114_v9  ;;  %v1098_v18 = vld [vmem:[%s6386_s29 + $0x1a40] sm:$0xff]  ;;  %v6099_v8 = vpack.c.bf16 %v1147_v11, %v1146_v13  ;;  %v1203_v7 = vld [vmem:[%s6386_s29 + $0x1d88] sm:$0xff]  ;;  %v6115_v11 = vpack.c.bf16 %v1171_v58, %v1170_v5 }
 0x1b7   : > { %v1174_v23 = vld [vmem:[%s6386_s29 + $0x1ca0] sm:$0xff]  ;;  %v1175_v36 = vld [vmem:[%s6386_s29 + $0x1ca8] sm:$0xff] }
 0x1b8   : > { %6018 = vmatpush3.bf16.msra.mxu0 %v6017_v43  ;;  %v1148_v43 = vld [vmem:[%s6386_s29 + $0x1bd0] sm:$0xff]  ;;  %v1194_v5 = vld [vmem:[%s6386_s29 + $0x1d40] sm:$0xff]  ;;  %v1183_v24 = vld [vmem:[%s6386_s29 + $0x1ce8] sm:$0xff] }
 0x1b9   : > { %6050 = vmatpush3.bf16.msra.mxu1 %v6049_v27  ;;  %6052 = vmatprep.subr.bf16.mxu0 %v6051_v22  ;;  %v1149_v27 = vld [vmem:[%s6386_s29 + $0x1bd8] sm:$0xff]  ;;  %v6069_v22 = vpack.c.bf16 %v1099_v19, %v1098_v18  ;;  %v1187_v19 = vld [vmem:[%s6386_s29 + $0x1d08] sm:$0xff]  ;;  %v1182_v21 = vld [vmem:[%s6386_s29 + $0x1ce0] sm:$0xff] }
 0x1ba   : > { %6084 = vmatprep.subr.bf16.mxu1 %v6083_v31  ;;  %v1101_v31 = vld [vmem:[%s6386_s29 + $0x1a58] sm:$0xff]  ;;  %v6103_v33 = vpack.c.bf16 %v1149_v27, %v1148_v43 }
 0x1bb   : > { %3379 = vmatmul.mubr.f32.vlgmr.msra.gmra.mrb[24].mxu0 %v7329_v48  ;;  %v1095_v48 = vld [vmem:[%s6386_s29 + $0x1a28] sm:$0xff] }
 0x1bc   : > { %6054 = vmatpush3.bf16.msra.mxu0 %v6053_v40  ;;  %3449 = vmatmul.mubr.f32.vlgmr.msra.gmra.mrb[24].mxu1 %v7334_v63  ;;  %v1144_v63 = vld [vmem:[%s6386_s29 + $0x1bb0] sm:$0xff]  ;;  %v6061_v1 = vpack.c.bf16 %v1095_v48, %v1094_v60  ;;  %v1150_v40 = vld [vmem:[%s6386_s29 + $0x1be0] sm:$0xff] }
 0x1bd   : > { %6086 = vmatpush3.bf16.msra.mxu1 %v6085_v26  ;;  %6056 = vmatprep.subr.bf16.mxu0 %v6055_v53  ;;  %v6095_v6 = vpack.c.bf16 %v1145_v55, %v1144_v63  ;;  %v1151_v26 = vld [vmem:[%s6386_s29 + $0x1be8] sm:$0xff]  ;;  %v6073_v53 = vpack.c.bf16 %v1101_v31, %v1100_v30  ;;  %v1104_v63 = vld [vmem:[%s6386_s29 + $0x1a70] sm:$0xff]  ;;  %v1105_v55 = vld [vmem:[%s6386_s29 + $0x1a78] sm:$0xff] }
 0x1be   : > { %6088 = vmatprep.subr.bf16.mxu1 %v6087_v45  ;;  %3518 = vmatprep.mubr.f32.mxu0 %v1534_v50  ;;  %v1103_v45 = vld [vmem:[%s6386_s29 + $0x1a68] sm:$0xff]  ;;  %v6107_v49 = vpack.c.bf16 %v1151_v26, %v1150_v40  ;;  %v1157_v30 = vld [vmem:[%s6386_s29 + $0x1c18] sm:$0xff]  ;;  %v1188_v31 = vld [vmem:[%s6386_s29 + $0x1d10] sm:$0xff] }
 0x1bf   : > { %3588 = vmatprep.mubr.f32.mxu1 %v1535_v34  ;;  %v1135_v50 = vld [vmem:[%s6386_s29 + $0x1b68] sm:$0xff]  ;;  %v6077_v61 = vpack.c.bf16 %v1103_v45, %v1102_v44  ;;  %v1206_v40 = vld [vmem:[%s6386_s29 + $0x1da0] sm:$0xff]  ;;  %v6123_v44 = vpack.c.bf16 %v1175_v36, %v1174_v23 }
 0x1c0   : > { %6058 = vmatpush3.bf16.msra.mxu0 %v6057_v56  ;;  %v6109_v62 = vpack.c.bf16 %v1135_v50, %v1134_v47  ;;  %v1207_v26 = vld [vmem:[%s6386_s29 + $0x1da8] sm:$0xff]  ;;  %v1158_v45 = vld [vmem:[%s6386_s29 + $0x1c20] sm:$0xff]  ;;  %v1176_v50 = vld [vmem:[%s6386_s29 + $0x1cb0] sm:$0xff] }
 0x1c1   : > { %6090 = vmatpush3.bf16.msra.mxu1 %v6089_v57  ;;  %6060 = vmatprep.subr.bf16.mxu0 %v6059_v59  ;;  %v1152_v57 = vld [vmem:[%s6386_s29 + $0x1bf0] sm:$0xff]  ;;  %v1153_v59 = vld [vmem:[%s6386_s29 + $0x1bf8] sm:$0xff]  ;;  %v1190_v47 = vld [vmem:[%s6386_s29 + $0x1d20] sm:$0xff] }
 0x1c2   : > { %6092 = vmatprep.subr.bf16.mxu1 %v6091_v52  ;;  %v256_v52 = vld [vmem:[%s6381_s25 + $0x70] sm:$0xff] }
 0x1c3   : > { %v1536_v9 = vcombine.high %v256_v52, %v256_v52  ;;  %v7489_v20 = vrot.slane %v256_v52, %v6439_v14  ;;  %v1193_v52 = vld [vmem:[%s6386_s29 + $0x1d38] sm:$0xff] }
 0x1c4   : > { %6062 = vmatpush3.bf16.msra.mxu0 %v6061_v1  ;;  %v1136_v1 = vld [vmem:[%s6386_s29 + $0x1b70] sm:$0xff] }
 0x1c5   : > { %6094 = vmatpush3.bf16.msra.mxu1 %v6093_v2  ;;  %6064 = vmatprep.subr.bf16.mxu0 %v6063_v3  ;;  %v6111_v3 = vpack.c.bf16 %v1153_v59, %v1152_v57  ;;  %v6113_v13 = vpack.c.bf16 %v1137_v4, %v1136_v1  ;;  %v7494_v43 = vrot.slane %v1536_v9, %v6439_v14  ;;  %v1160_v59 = vld [vmem:[%s6386_s29 + $0x1c30] sm:$0xff]  ;;  %v1163_v4 = vld [vmem:[%s6386_s29 + $0x1c48] sm:$0xff]  ;;  %v1181_v9 = vld [vmem:[%s6386_s29 + $0x1cd8] sm:$0xff] }
 0x1c6   : > { %6096 = vmatprep.subr.bf16.mxu1 %v6095_v6  ;;  %v1202_v6 = vld [vmem:[%s6386_s29 + $0x1d80] sm:$0xff]  ;;  %v1551_v38 = vcombine.high %v7489_v20, %v7489_v20  ;;  %v6127_v57 = vpack.c.bf16 %v1177_v54, %v1176_v50 }
 0x1c7   : > { %v6147_v18 = vpack.c.bf16 %v1203_v7, %v1202_v6  ;;  %v1195_v6 = vld [vmem:[%s6386_s29 + $0x1d48] sm:$0xff]  ;;  %v1180_v7 = vld [vmem:[%s6386_s29 + $0x1cd0] sm:$0xff] }
 0x1c8   : > { %6066 = vmatpush3.bf16.msra.mxu0 %v6065_v15  ;;  %v1154_v15 = vld [vmem:[%s6386_s29 + $0x1c00] sm:$0xff] }
 0x1c9   : > { %6098 = vmatpush3.bf16.msra.mxu1 %v6097_v17  ;;  %6068 = vmatprep.subr.bf16.mxu0 %v6067_v12  ;;  %v1155_v17 = vld [vmem:[%s6386_s29 + $0x1c08] sm:$0xff]  ;;  %v1186_v12 = vld [vmem:[%s6386_s29 + $0x1d00] sm:$0xff] }
 0x1ca   : > { %6100 = vmatprep.subr.bf16.mxu1 %v6099_v8  ;;  %v1173_v8 = vld [vmem:[%s6386_s29 + $0x1c98] sm:$0xff]  ;;  %v6117_v27 = vpack.c.bf16 %v1155_v17, %v1154_v15  ;;  %v6165_v15 = vpack.c.bf16 %v1195_v6, %v1194_v5  ;;  %v6135_v17 = vpack.c.bf16 %v1181_v9, %v1180_v7  ;;  %v1236_v5 = vld [vmem:[%s6386_s29 + $0x1e90] sm:$0xff] }
 0x1cb   : > { %v1268_v7 = vld [vmem:[%s6386_s29 + $0x1f90] sm:$0xff]  ;;  %v1269_v9 = vld [vmem:[%s6386_s29 + $0x1f98] sm:$0xff] }
 0x1cc   : > { %6070 = vmatpush3.bf16.msra.mxu0 %v6069_v22  ;;  %v6149_v22 = vpack.c.bf16 %v1187_v19, %v1186_v12  ;;  %v1164_v12 = vld [vmem:[%s6386_s29 + $0x1c50] sm:$0xff] }
 0x1cd   : > { %6102 = vmatpush3.bf16.msra.mxu1 %v6101_v28  ;;  %6072 = vmatprep.subr.bf16.mxu0 %v6071_v29  ;;  %v6119_v28 = vpack.c.bf16 %v1173_v8, %v1172_v16  ;;  %v1156_v29 = vld [vmem:[%s6386_s29 + $0x1c10] sm:$0xff]  ;;  %v1197_v8 = vld [vmem:[%s6386_s29 + $0x1d58] sm:$0xff] }
 0x1ce   : > { %v4526_v37 = vpop.f32.mrb[12].mxu0  ;;  %6104 = vmatprep.subr.bf16.mxu1 %v6103_v33  ;;  %v1189_v33 = vld [vmem:[%s6386_s29 + $0x1d18] sm:$0xff]  ;;  %v1196_v19 = vld [vmem:[%s6386_s29 + $0x1d50] sm:$0xff] }
 0x1cf   : > { %v4527_v34 = vpop.f32.mrb[13].mxu0  ;;  %v4561_v56 = vpop.f32.mrb[12].mxu1 }
 0x1d0   : > { %v4528_v60 = vadd.f32 %v4527_v34, %v4526_v37  ;;  %6074 = vmatpush3.bf16.msra.mxu0 %v6073_v53  ;;  %v4562_v48 = vpop.f32.mrb[13].mxu1  ;;  %v1552_v53 = vcombine.high %v7494_v43, %v7494_v43  ;;  %v6155_v37 = vpack.c.bf16 %v1207_v26, %v1206_v40  ;;  %v1184_v40 = vld [vmem:[%s6386_s29 + $0x1cf0] sm:$0xff]  ;;  %v1185_v26 = vld [vmem:[%s6386_s29 + $0x1cf8] sm:$0xff] }
 0x1d1   : > { %v4563_v46 = vadd.f32 %v4562_v48, %v4561_v56  ;;  %6106 = vmatpush3.bf16.msra.mxu1 %v6105_v41  ;;  %6076 = vmatprep.subr.bf16.mxu0 %v6075_v42  ;;  %v6121_v41 = vpack.c.bf16 %v1157_v30, %v1156_v29  ;;  %v6153_v42 = vpack.c.bf16 %v1189_v33, %v1188_v31  ;;  %v1192_v48 = vld [vmem:[%s6386_s29 + $0x1d30] sm:$0xff]  ;;  %v1166_v31 = vld [vmem:[%s6386_s29 + $0x1c60] sm:$0xff] }
 0x1d2   : > { %v2541_v2 = vadd.f32 %v4528_v60, %v7400_v25  ;;  %6108 = vmatprep.subr.bf16.mxu1 %v6107_v49  ;;  %v6081_v25 = vpack.c.bf16 %v1105_v55, %v1104_v63  ;;  %v1191_v49 = vld [vmem:[%s6386_s29 + $0x1d28] sm:$0xff]  ;;  %v1161_v60 = vld [vmem:[%s6386_s29 + $0x1c38] sm:$0xff]  ;;  %v6161_v1 = vpack.c.bf16 %v1193_v52, %v1192_v48  ;;  %v6169_v29 = vpack.c.bf16 %v1197_v8, %v1196_v19  ;;  %v1198_v33 = vld [vmem:[%s6386_s29 + $0x1d60] sm:$0xff] }
 0x1d3   : > { %v6157_v56 = vpack.c.bf16 %v1191_v49, %v1190_v47  ;;  %v1211_v63 = vld [vmem:[%s6386_s29 + $0x1dc8] sm:$0xff]  ;;  %v6129_v55 = vpack.c.bf16 %v1161_v60, %v1160_v59  ;;  %v6139_v30 = vpack.c.bf16 %v1183_v24, %v1182_v21  ;;  %v6143_v54 = vpack.c.bf16 %v1185_v26, %v1184_v40  ;;  %v1201_v59 = vld [vmem:[%s6386_s29 + $0x1d78] sm:$0xff]  ;;  %v1234_v60 = vld [vmem:[%s6386_s29 + $0x1e80] sm:$0xff] }
 0x1d4   : > { %v7480_v10 = vadd.f32 %v4563_v46, %v2541_v2  ;;  %6078 = vmatpush3.bf16.msra.mxu0 %v6077_v61  ;;  %v1178_v46 = vld [vmem:[%s6386_s29 + $0x1cc0] sm:$0xff]  ;;  %v1235_v48 = vld [vmem:[%s6386_s29 + $0x1e88] sm:$0xff]  ;;  %v6215_v19 = vpack.c.bf16 %v1269_v9, %v1268_v7  ;;  %v1273_v40 = vld [vmem:[%s6386_s29 + $0x1fb8] sm:$0xff] }
 0x1d5   : > { %6110 = vmatpush3.bf16.msra.mxu1 %v6109_v62  ;;  %6080 = vmatprep.subr.bf16.mxu0 %v6079_v0  ;;  %v1179_v62 = vld [vmem:[%s6386_s29 + $0x1cc8] sm:$0xff]  ;;  %v1210_v0 = vld [vmem:[%s6386_s29 + $0x1dc0] sm:$0xff] }
 0x1d6   : > { %6112 = vmatprep.subr.bf16.mxu1 %v6111_v3  ;;  %v6131_v2 = vpack.c.bf16 %v1179_v62, %v1178_v46  ;;  %v1162_v3 = vld [vmem:[%s6386_s29 + $0x1c40] sm:$0xff]  ;;  %v6163_v58 = vpack.c.bf16 %v1211_v63, %v1210_v0  ;;  %v1267_v52 = vld [vmem:[%s6386_s29 + $0x1f88] sm:$0xff]  ;;  %v6179_v63 = vpack.c.bf16 %v1235_v48, %v1234_v60 }
 0x1d7   : > { %v1238_v8 = vld [vmem:[%s6386_s29 + $0x1ea0] sm:$0xff]  ;;  %v1259_v48 = vld [vmem:[%s6386_s29 + $0x1f48] sm:$0xff] }
 0x1d8   : > { %6082 = vmatpush3.bf16.msra.mxu0 %v6081_v25  ;;  %v1212_v25 = vld [vmem:[%s6386_s29 + $0x1dd0] sm:$0xff]  ;;  %v1270_v24 = vld [vmem:[%s6386_s29 + $0x1fa0] sm:$0xff]  ;;  %v1247_v7 = vld [vmem:[%s6386_s29 + $0x1ee8] sm:$0xff] }
 0x1d9   : > { %6114 = vmatpush3.bf16.msra.mxu1 %v6113_v13  ;;  %6116 = vmatprep.subr.bf16.mxu0 %v6115_v11  ;;  %v1213_v13 = vld [vmem:[%s6386_s29 + $0x1dd8] sm:$0xff]  ;;  %v6133_v11 = vpack.c.bf16 %v1163_v4, %v1162_v3  ;;  %v1251_v4 = vld [vmem:[%s6386_s29 + $0x1f08] sm:$0xff]  ;;  %v1278_v9 = vld [vmem:[%s6386_s29 + $0x1fe0] sm:$0xff] }
 0x1da   : > { %6148 = vmatprep.subr.bf16.mxu1 %v6147_v18  ;;  %v1165_v18 = vld [vmem:[%s6386_s29 + $0x1c58] sm:$0xff]  ;;  %v6167_v16 = vpack.c.bf16 %v1213_v13, %v1212_v25 }
 0x1db   : > { %3519 = vmatmul.mubr.f32.vlgmr.msra.gmra.mrb[26].mxu0 %v7409_v35  ;;  %v1159_v35 = vld [vmem:[%s6386_s29 + $0x1c28] sm:$0xff] }
 0x1dc   : > { %6118 = vmatpush3.bf16.msra.mxu0 %v6117_v27  ;;  %3589 = vmatmul.mubr.f32.vlgmr.msra.gmra.mrb[26].mxu1 %v7414_v51  ;;  %v1208_v51 = vld [vmem:[%s6386_s29 + $0x1db0] sm:$0xff]  ;;  %v6125_v34 = vpack.c.bf16 %v1159_v35, %v1158_v45  ;;  %v1214_v27 = vld [vmem:[%s6386_s29 + $0x1de0] sm:$0xff] }
 0x1dd   : > { %6150 = vmatpush3.bf16.msra.mxu1 %v6149_v22  ;;  %6120 = vmatprep.subr.bf16.mxu0 %v6119_v28  ;;  %v6159_v61 = vpack.c.bf16 %v1209_v39, %v1208_v51  ;;  %v1215_v22 = vld [vmem:[%s6386_s29 + $0x1de8] sm:$0xff]  ;;  %v6137_v28 = vpack.c.bf16 %v1165_v18, %v1164_v12  ;;  %v1168_v51 = vld [vmem:[%s6386_s29 + $0x1c70] sm:$0xff]  ;;  %v1169_v39 = vld [vmem:[%s6386_s29 + $0x1c78] sm:$0xff] }
 0x1de   : > { %6152 = vmatprep.subr.bf16.mxu1 %v6151_v32  ;;  %3658 = vmatprep.mubr.f32.mxu0 %v1551_v38  ;;  %v1167_v32 = vld [vmem:[%s6386_s29 + $0x1c68] sm:$0xff]  ;;  %v6171_v36 = vpack.c.bf16 %v1215_v22, %v1214_v27  ;;  %v1221_v12 = vld [vmem:[%s6386_s29 + $0x1e18] sm:$0xff]  ;;  %v1252_v18 = vld [vmem:[%s6386_s29 + $0x1f10] sm:$0xff] }
 0x1df   : > { %3728 = vmatprep.mubr.f32.mxu1 %v1552_v53  ;;  %v1199_v38 = vld [vmem:[%s6386_s29 + $0x1d68] sm:$0xff]  ;;  %v6141_v47 = vpack.c.bf16 %v1167_v32, %v1166_v31  ;;  %v1222_v31 = vld [vmem:[%s6386_s29 + $0x1e20] sm:$0xff] }
 0x1e0   : > { %6122 = vmatpush3.bf16.msra.mxu0 %v6121_v41  ;;  %v6173_v50 = vpack.c.bf16 %v1199_v38, %v1198_v33  ;;  %v1271_v27 = vld [vmem:[%s6386_s29 + $0x1fa8] sm:$0xff]  ;;  %v1254_v32 = vld [vmem:[%s6386_s29 + $0x1f20] sm:$0xff]  ;;  %v1241_v38 = vld [vmem:[%s6386_s29 + $0x1eb8] sm:$0xff] }
 0x1e1   : > { %6154 = vmatpush3.bf16.msra.mxu1 %v6153_v42  ;;  %6124 = vmatprep.subr.bf16.mxu0 %v6123_v44  ;;  %v1216_v42 = vld [vmem:[%s6386_s29 + $0x1df0] sm:$0xff]  ;;  %v1217_v44 = vld [vmem:[%s6386_s29 + $0x1df8] sm:$0xff]  ;;  %v6219_v33 = vpack.c.bf16 %v1271_v27, %v1270_v24 }
 0x1e2   : > { %6156 = vmatprep.subr.bf16.mxu1 %v6155_v37  ;;  %v257_v37 = vld [vmem:[%s6381_s25 + $0x78] sm:$0xff] }
 0x1e3   : > { %v1553_v46 = vcombine.high %v257_v37, %v257_v37  ;;  %v7569_v6 = vrot.slane %v257_v37, %v6439_v14  ;;  %v1242_v37 = vld [vmem:[%s6386_s29 + $0x1ec0] sm:$0xff]  ;;  %v1249_v24 = vld [vmem:[%s6386_s29 + $0x1ef8] sm:$0xff] }
 0x1e4   : > { %6126 = vmatpush3.bf16.msra.mxu0 %v6125_v34  ;;  %v1200_v34 = vld [vmem:[%s6386_s29 + $0x1d70] sm:$0xff] }
 0x1e5   : > { %6158 = vmatpush3.bf16.msra.mxu1 %v6157_v56  ;;  %6128 = vmatprep.subr.bf16.mxu0 %v6127_v57  ;;  %v6175_v57 = vpack.c.bf16 %v1217_v44, %v1216_v42  ;;  %v6177_v0 = vpack.c.bf16 %v1201_v59, %v1200_v34  ;;  %v7574_v25 = vrot.slane %v1553_v46, %v6439_v14  ;;  %v1239_v14 = vld [vmem:[%s6386_s29 + $0x1ea8] sm:$0xff]  ;;  %v1224_v42 = vld [vmem:[%s6386_s29 + $0x1e30] sm:$0xff]  ;;  %v1225_v44 = vld [vmem:[%s6386_s29 + $0x1e38] sm:$0xff] }
 0x1e6   : > { %6160 = vmatprep.subr.bf16.mxu1 %v6159_v61  ;;  %v1266_v61 = vld [vmem:[%s6386_s29 + $0x1f80] sm:$0xff]  ;;  %v1568_v21 = vcombine.high %v7569_v6, %v7569_v6  ;;  %v1276_v46 = vld [vmem:[%s6386_s29 + $0x1fd0] sm:$0xff] }
 0x1e7   : > { %v6211_v3 = vpack.c.bf16 %v1267_v52, %v1266_v61  ;;  %v1569_v22 = vcombine.high %v7574_v25, %v7574_v25  ;;  %v1258_v59 = vld [vmem:[%s6386_s29 + $0x1f40] sm:$0xff]  ;;  %v1244_v61 = vld [vmem:[%s6386_s29 + $0x1ed0] sm:$0xff]  ;;  %v1245_v52 = vld [vmem:[%s6386_s29 + $0x1ed8] sm:$0xff] }
 0x1e8   : > { %6130 = vmatpush3.bf16.msra.mxu0 %v6129_v55  ;;  %v1218_v55 = vld [vmem:[%s6386_s29 + $0x1e00] sm:$0xff] }
 0x1e9   : > { %6162 = vmatpush3.bf16.msra.mxu1 %v6161_v1  ;;  %6132 = vmatprep.subr.bf16.mxu0 %v6131_v2  ;;  %v1219_v1 = vld [vmem:[%s6386_s29 + $0x1e08] sm:$0xff]  ;;  %v1250_v2 = vld [vmem:[%s6386_s29 + $0x1f00] sm:$0xff] }
 0x1ea   : > { %6164 = vmatprep.subr.bf16.mxu1 %v6163_v58  ;;  %v1237_v58 = vld [vmem:[%s6386_s29 + $0x1e98] sm:$0xff]  ;;  %v6181_v13 = vpack.c.bf16 %v1219_v1, %v1218_v55  ;;  %v6199_v55 = vpack.c.bf16 %v1245_v52, %v1244_v61  ;;  %v1228_v1 = vld [vmem:[%s6386_s29 + $0x1e50] sm:$0xff] }
 0x1ec   : > { %6134 = vmatpush3.bf16.msra.mxu0 %v6133_v11  ;;  %v6213_v11 = vpack.c.bf16 %v1251_v4, %v1250_v2  ;;  %v1229_v2 = vld [vmem:[%s6386_s29 + $0x1e58] sm:$0xff] }
 0x1ed   : > { %6166 = vmatpush3.bf16.msra.mxu1 %v6165_v15  ;;  %6136 = vmatprep.subr.bf16.mxu0 %v6135_v17  ;;  %v6183_v15 = vpack.c.bf16 %v1237_v58, %v1236_v5  ;;  %v1220_v17 = vld [vmem:[%s6386_s29 + $0x1e10] sm:$0xff]  ;;  %v1261_v5 = vld [vmem:[%s6386_s29 + $0x1f58] sm:$0xff]  ;;  %v1246_v58 = vld [vmem:[%s6386_s29 + $0x1ee0] sm:$0xff] }
 0x1ee   : > { %v4596_v23 = vpop.f32.mrb[14].mxu0  ;;  %6168 = vmatprep.subr.bf16.mxu1 %v6167_v16  ;;  %v1253_v16 = vld [vmem:[%s6386_s29 + $0x1f18] sm:$0xff] }
 0x1ef   : > { %v4597_v53 = vpop.f32.mrb[15].mxu0  ;;  %v4631_v41 = vpop.f32.mrb[14].mxu1 }
 0x1f0   : > { %v4598_v45 = vadd.f32 %v4597_v53, %v4596_v23  ;;  %6138 = vmatpush3.bf16.msra.mxu0 %v6137_v28  ;;  %v4632_v35 = vpop.f32.mrb[15].mxu1  ;;  %v6185_v28 = vpack.c.bf16 %v1221_v12, %v1220_v17  ;;  %v1255_v23 = vld [vmem:[%s6386_s29 + $0x1f28] sm:$0xff]  ;;  %v6203_v17 = vpack.c.bf16 %v1247_v7, %v1246_v58  ;;  %v1230_v12 = vld [vmem:[%s6386_s29 + $0x1e60] sm:$0xff] }
 0x1f1   : > { %v4633_v49 = vadd.f32 %v4632_v35, %v4631_v41  ;;  %6170 = vmatpush3.bf16.msra.mxu1 %v6169_v29  ;;  %6140 = vmatprep.subr.bf16.mxu0 %v6139_v30  ;;  %v6217_v29 = vpack.c.bf16 %v1253_v16, %v1252_v18  ;;  %v6187_v30 = vpack.c.bf16 %v1239_v14, %v1238_v8  ;;  %v1231_v18 = vld [vmem:[%s6386_s29 + $0x1e68] sm:$0xff] }
 0x1f2   : > { %v2681_v56 = vadd.f32 %v4598_v45, %v7480_v10  ;;  %6172 = vmatprep.subr.bf16.mxu1 %v6171_v36  ;;  %v6145_v10 = vpack.c.bf16 %v1169_v39, %v1168_v51  ;;  %v1240_v36 = vld [vmem:[%s6386_s29 + $0x1eb0] sm:$0xff]  ;;  %v6221_v53 = vpack.c.bf16 %v1255_v23, %v1254_v32  ;;  %v6193_v51 = vpack.c.bf16 %v1225_v44, %v1224_v42  ;;  %v1263_v14 = vld [vmem:[%s6386_s29 + $0x1f68] sm:$0xff] }
 0x1f3   : > { %v6191_v41 = vpack.c.bf16 %v1241_v38, %v1240_v36  ;;  %v1256_v45 = vld [vmem:[%s6386_s29 + $0x1f30] sm:$0xff]  ;;  %v1233_v38 = vld [vmem:[%s6386_s29 + $0x1e78] sm:$0xff] }
 0x1f4   : > { %v7560_v62 = vadd.f32 %v4633_v49, %v2681_v56  ;;  %6142 = vmatpush3.bf16.msra.mxu0 %v6141_v47  ;;  %v1257_v47 = vld [vmem:[%s6386_s29 + $0x1f38] sm:$0xff]  ;;  %v1243_v49 = vld [vmem:[%s6386_s29 + $0x1ec8] sm:$0xff]  ;;  %v1226_v56 = vld [vmem:[%s6386_s29 + $0x1e40] sm:$0xff] }
 0x1f5   : > { %6174 = vmatpush3.bf16.msra.mxu1 %v6173_v50  ;;  %6144 = vmatprep.subr.bf16.mxu0 %v6143_v54  ;;  %v1274_v50 = vld [vmem:[%s6386_s29 + $0x1fc0] sm:$0xff]  ;;  %v1275_v54 = vld [vmem:[%s6386_s29 + $0x1fc8] sm:$0xff]  ;;  %v6225_v39 = vpack.c.bf16 %v1257_v47, %v1256_v45  ;;  %v6195_v34 = vpack.c.bf16 %v1243_v49, %v1242_v37  ;;  %v1232_v36 = vld [vmem:[%s6386_s29 + $0x1e70] sm:$0xff] }
 0x1f6   : > { %6176 = vmatprep.subr.bf16.mxu1 %v6175_v57  ;;  %v1227_v57 = vld [vmem:[%s6386_s29 + $0x1e48] sm:$0xff]  ;;  %v6227_v60 = vpack.c.bf16 %v1275_v54, %v1274_v50  ;;  %v6209_v42 = vpack.c.bf16 %v1233_v38, %v1232_v36  ;;  %v241_v36 = vld [vmem:[#allocation2] sm:$0x3] }
 0x1f8   : > { %6146 = vmatpush3.bf16.msra.mxu0 %v6145_v10  ;;  %v1277_v10 = vld [vmem:[%s6386_s29 + $0x1fd8] sm:$0xff] }
 0x1f9   : > { %6178 = vmatpush3.bf16.msra.mxu1 %v6177_v0  ;;  %6180 = vmatprep.subr.bf16.mxu0 %v6179_v63  ;;  %v6197_v0 = vpack.c.bf16 %v1227_v57, %v1226_v56  ;;  %v6229_v63 = vpack.c.bf16 %v1259_v48, %v1258_v59  ;;  %v6231_v4 = vpack.c.bf16 %v1277_v10, %v1276_v46 }
 0x1fa   : > { %6212 = vmatprep.subr.bf16.mxu1 %v6211_v3  ;;  %v1260_v3 = vld [vmem:[%s6386_s29 + $0x1f50] sm:$0xff] }
 0x1fb   : > { %3659 = vmatmul.mubr.f32.vlgmr.msra.gmra.mrb[28].mxu0 %v7489_v20  ;;  %v1223_v20 = vld [vmem:[%s6386_s29 + $0x1e28] sm:$0xff] }
 0x1fc   : > { %6182 = vmatpush3.bf16.msra.mxu0 %v6181_v13  ;;  %3729 = vmatmul.mubr.f32.vlgmr.msra.gmra.mrb[28].mxu1 %v7494_v43  ;;  %v1272_v43 = vld [vmem:[%s6386_s29 + $0x1fb0] sm:$0xff]  ;;  %v6189_v26 = vpack.c.bf16 %v1223_v20, %v1222_v31  ;;  %v1279_v13 = vld [vmem:[%s6386_s29 + $0x1fe8] sm:$0xff]  ;;  %v6205_v20 = vpack.c.bf16 %v1231_v18, %v1230_v12 }
 0x1fd   : > { %6214 = vmatpush3.bf16.msra.mxu1 %v6213_v11  ;;  %6184 = vmatprep.subr.bf16.mxu0 %v6183_v15  ;;  %v6223_v35 = vpack.c.bf16 %v1273_v40, %v1272_v43  ;;  %v6201_v11 = vpack.c.bf16 %v1229_v2, %v1228_v1  ;;  %v6233_v15 = vpack.c.bf16 %v1261_v5, %v1260_v3 }
 0x1fe   : > { %6216 = vmatprep.subr.bf16.mxu1 %v6215_v19  ;;  %3798 = vmatprep.mubr.f32.mxu0 %v1568_v21  ;;  %v1262_v19 = vld [vmem:[%s6386_s29 + $0x1f60] sm:$0xff]  ;;  %v6235_v8 = vpack.c.bf16 %v1279_v13, %v1278_v9  ;;  %v1248_v21 = vld [vmem:[%s6386_s29 + $0x1ef0] sm:$0xff] }
 0x1ff   : > { %3868 = vmatprep.mubr.f32.mxu1 %v1569_v22  ;;  %v6207_v23 = vpack.c.bf16 %v1249_v24, %v1248_v21 }
 0x200   : > { %6186 = vmatpush3.bf16.msra.mxu0 %v6185_v28  ;;  %v1280_v28 = vld [vmem:[%s6386_s29 + $0x1ff0] sm:$0xff] }
 0x201   : > { %6218 = vmatpush3.bf16.msra.mxu1 %v6217_v29  ;;  %6188 = vmatprep.subr.bf16.mxu0 %v6187_v30  ;;  %v1281_v29 = vld [vmem:[%s6386_s29 + $0x1ff8] sm:$0xff] }
 0x202   : > { %6220 = vmatprep.subr.bf16.mxu1 %v6219_v33  ;;  %v6237_v33 = vpack.c.bf16 %v1263_v14, %v1262_v19  ;;  %v6239_v40 = vpack.c.bf16 %v1281_v29, %v1280_v28 }
 0x204   : > { %6190 = vmatpush3.bf16.msra.mxu0 %v6189_v26  ;;  %v1264_v26 = vld [vmem:[%s6386_s29 + $0x1f70] sm:$0xff] }
 0x205   : > { %6222 = vmatpush3.bf16.msra.mxu1 %v6221_v53  ;;  %6192 = vmatprep.subr.bf16.mxu0 %v6191_v41  ;;  %v1265_v53 = vld [vmem:[%s6386_s29 + $0x1f78] sm:$0xff] }
 0x206   : > { %6224 = vmatprep.subr.bf16.mxu1 %v6223_v35  ;;  %v6241_v44 = vpack.c.bf16 %v1265_v53, %v1264_v26  ;;  %v3892_v26 = vld [vmem:[%s7697_s3 + $0x8] sm:$0xff] (!%p4065_p6)  ;;  %v3893_v53 = vld [vmem:[%s7697_s3 + $0x10] sm:$0xff] (!%p4065_p6) }
 0x208   : > { %6194 = vmatpush3.bf16.msra.mxu0 %v6193_v51 }
 0x209   : > { %6226 = vmatpush3.bf16.msra.mxu1 %v6225_v39  ;;  %6196 = vmatprep.subr.bf16.mxu0 %v6195_v34 }
 0x20a   : > { %6228 = vmatprep.subr.bf16.mxu1 %v6227_v60 }
 0x20c   : > { %6198 = vmatpush3.bf16.msra.mxu0 %v6197_v0 }
 0x20d   : > { %6230 = vmatpush3.bf16.msra.mxu1 %v6229_v63  ;;  %6200 = vmatprep.subr.bf16.mxu0 %v6199_v55 }
 0x20e   : > { %v4666_v16 = vpop.f32.mrb[16].mxu0  ;;  %6232 = vmatprep.subr.bf16.mxu1 %v6231_v4 }
 0x20f   : > { %v4667_v27 = vpop.f32.mrb[17].mxu0  ;;  %v4701_v22 = vpop.f32.mrb[16].mxu1 }
 0x210   : > { %v4668_v30 = vadd.f32 %v4667_v27, %v4666_v16  ;;  %6202 = vmatpush3.bf16.msra.mxu0 %v6201_v11  ;;  %v4702_v31 = vpop.f32.mrb[17].mxu1 }
 0x211   : > { %v4703_v32 = vadd.f32 %v4702_v31, %v4701_v22  ;;  %6234 = vmatpush3.bf16.msra.mxu1 %v6233_v15  ;;  %6204 = vmatprep.subr.bf16.mxu0 %v6203_v17 }
 0x212   : > { %v2821_v43 = vadd.f32 %v4668_v30, %v7560_v62  ;;  %6236 = vmatprep.subr.bf16.mxu1 %v6235_v8 }
 0x214   : > { %v2891_v41 = vadd.f32 %v4703_v32, %v2821_v43  ;;  %6206 = vmatpush3.bf16.msra.mxu0 %v6205_v20 }
 0x215   : > { %6238 = vmatpush3.bf16.msra.mxu1 %v6237_v33  ;;  %6208 = vmatprep.subr.bf16.mxu0 %v6207_v23 }
 0x216   : > { %6240 = vmatprep.subr.bf16.mxu1 %v6239_v40  ;;  %v3891_v40 = vld [vmem:[%s7697_s3] sm:$0xff] (!%p4065_p6) }
 0x218   : > { %6210 = vmatpush3.bf16.msra.mxu0 %v6209_v42  ;;  %v6244_v42 = vpack.c.bf16 (!%p4065_p6), %v3892_v26, %v3891_v40 }
 0x219   : > { %6242 = vmatpush3.bf16.msra.mxu1 %v6241_v44  ;;  %v3894_v44 = vld [vmem:[%s7697_s3 + $0x18] sm:$0xff] (!%p4065_p6) }
 0x21b   : > { %3799 = vmatmul.mubr.f32.vlgmr.msra.gmra.mrb[30].mxu0 %v7569_v6 }
 0x21c   : > { %3869 = vmatmul.mubr.f32.vlgmr.msra.gmra.mrb[30].mxu1 %v7574_v25 }
 0x22e   : > { %v4736_v45 = vpop.f32.mrb[18].mxu0 }
 0x22f   : > { %v4737_v35 = vpop.f32.mrb[19].mxu0  ;;  %v4771_v62 = vpop.f32.mrb[18].mxu1 }
 0x230   : > { %v4738_v47 = vadd.f32 %v4737_v35, %v4736_v45  ;;  %v4772_v37 = vpop.f32.mrb[19].mxu1  ;;  %v6334_v45 = vmov (!%p4065_p6), 0.0   ;;  %v6247_v35 = vpack.c.bf16 (!%p4065_p6), %v3894_v44, %v3893_v53 }
 0x231   : > { %v4773_v49 = vadd.f32 %v4772_v37, %v4771_v62  ;;  %5216 = vmatprep.mubr.msk.f32.mxu0 (!%p4065_p6), %vm6333_vm2, %v6334_v45  ;;  %v3895_v62 = vld [vmem:[%s7697_s3 + $0x20] sm:$0xff] (!%p4065_p6) }
 0x232   : > { %v2961_v50 = vadd.f32 %v4738_v47, %v2891_v41  ;;  %v6332_v41 = vmov (!%p4065_p6), 0.0|0.0   ;;  %v3896_v47 = vld [vmem:[%s7697_s3 + $0x28] sm:$0xff] (!%p4065_p6) }
 0x233   : > { %6243 = vmatprep.subr.bf16.mxu0 (!%p4065_p6), %v6332_v41 }
 0x234   : > { %v3031_v54 = vadd.f32 %v4773_v49, %v2961_v50  ;;  %6245 = vmatpush3.bf16.msra.mxu0 (!%p4065_p6), %v6244_v42  ;;  %v4066_v49 = vld [vmem:[%s7696_s2] ss:$0 sm:$0xff] (!%p4065_p6)  ;;  %v6250_v50 = vpack.c.bf16 (!%p4065_p6), %v3896_v47, %v3895_v62 }
 0x235   : > { %6246 = vmatprep.subr.bf16.mxu0 (!%p4065_p6), %v6332_v41 }
 0x238   : > { %6248 = vmatpush3.bf16.msra.mxu0 (!%p4065_p6), %v6247_v35 }
 0x239   : > { %6249 = vmatprep.subr.bf16.mxu0 (!%p4065_p6), %v6332_v41 }
 0x23c   : > { %6251 = vmatpush3.bf16.msra.mxu0 (!%p4065_p6), %v6250_v50 }
 0x23d   : > { %5214 = vmatprep.subr.mxu0 (!%p4065_p6), %v6334_v45 }
 0x24e   : > { %v4806_v51 = vpop.f32.mrb[20].mxu0 }
 0x24f   : > { %v4807_v39 = vpop.f32.mrb[21].mxu0  ;;  %v4841_v34 = vpop.f32.mrb[20].mxu1 }
 0x250   : > { %v4808_v56 = vadd.f32 %v4807_v39, %v4806_v51  ;;  %v4842_v57 = vpop.f32.mrb[21].mxu1  ;;  %v3897_v51 = vld [vmem:[%s7697_s3 + $0x30] sm:$0x3] (!%p4065_p6) }
 0x251   : > { %v4843_v59 = vadd.f32 %v4842_v57, %v4841_v34  ;;  %5215 = vmatpush3.msk.msra.mxu0 (!%p4065_p6), %vm3909_vm3, %v3897_v51  ;;  %v4067_v34 = vld [vmem:[%s7698_s4] ss:$0 sm:$0xff] (!%p4065_p6) }
 0x252   : > { %v3101_v60 = vadd.f32 %v4808_v56, %v3031_v54 }
 0x254   : > { %v3171_v48 = vadd.f32 %v4843_v59, %v3101_v60 }
 0x26e   : > { %v4876_v61 = vpop.f32.mrb[22].mxu0 }
 0x26f   : > { %v4877_v6 = vpop.f32.mrb[23].mxu0  ;;  %v4911_v52 = vpop.f32.mrb[22].mxu1 }
 0x270   : > { %v4878_v25 = vadd.f32 %v4877_v6, %v4876_v61  ;;  %v4912_v46 = vpop.f32.mrb[23].mxu1 }
 0x271   : > { %v4913_v10 = vadd.f32 %v4912_v46, %v4911_v52 }
 0x272   : > { %v3241_v0 = vadd.f32 %v4878_v25, %v3171_v48 }
 0x274   : > { %v3311_v63 = vadd.f32 %v4913_v10, %v3241_v0 }
 0x28e   : > { %v4946_v55 = vpop.f32.mrb[24].mxu0 }
 0x28f   : > { %v4947_v1 = vpop.f32.mrb[25].mxu0  ;;  %v4981_v2 = vpop.f32.mrb[24].mxu1 }
 0x290   : > { %v4948_v3 = vadd.f32 %v4947_v1, %v4946_v55  ;;  %v4982_v4 = vpop.f32.mrb[25].mxu1 }
 0x291   : > { %v4983_v5 = vadd.f32 %v4982_v4, %v4981_v2 }
 0x292   : > { %v3381_v58 = vadd.f32 %v4948_v3, %v3311_v63 }
 0x294   : > { %v3451_v7 = vadd.f32 %v4983_v5, %v3381_v58 }
 0x2ae   : > { %v5016_v9 = vpop.f32.mrb[26].mxu0 }
 0x2af   : > { %v5017_v13 = vpop.f32.mrb[27].mxu0  ;;  %v5051_v11 = vpop.f32.mrb[26].mxu1 }
 0x2b0   : > { %v5018_v15 = vadd.f32 %v5017_v13, %v5016_v9  ;;  %v5052_v17 = vpop.f32.mrb[27].mxu1 }
 0x2b1   : > { %v5053_v12 = vadd.f32 %v5052_v17, %v5051_v11 }
 0x2b2   : > { %v3521_v18 = vadd.f32 %v5018_v15, %v3451_v7 }
 0x2b4   : > { %v3591_v19 = vadd.f32 %v5053_v12, %v3521_v18 }
 0x2ce   : > { %v5086_v16 = vpop.f32.mrb[28].mxu0 }
 0x2cf   : > { %v5087_v8 = vpop.f32.mrb[29].mxu0  ;;  %v5121_v14 = vpop.f32.mrb[28].mxu1 }
 0x2d0   : > { %v5088_v21 = vadd.f32 %v5087_v8, %v5086_v16  ;;  %v5122_v24 = vpop.f32.mrb[29].mxu1 }
 0x2d1   : > { %v5123_v27 = vadd.f32 %v5122_v24, %v5121_v14 }
 0x2d2   : > { %v3661_v22 = vadd.f32 %v5088_v21, %v3591_v19 }
 0x2d4   : > { %v3731_v28 = vadd.f32 %v5123_v27, %v3661_v22 }
 0x2ee   : > { %v5156_v29 = vpop.f32.mrb[30].mxu0 }
 0x2ef   : > { %v5157_v30 = vpop.f32.mrb[31].mxu0  ;;  %v5191_v31 = vpop.f32.mrb[30].mxu1 }
 0x2f0   : > { %v5158_v20 = vadd.f32 %v5157_v30, %v5156_v29  ;;  %v5192_v32 = vpop.f32.mrb[31].mxu1 }
 0x2f1   : > { %v5193_v33 = vadd.f32 %v5192_v32, %v5191_v31 }
 0x2f2   : > { %v3801_v23 = vadd.f32 %v5158_v20, %v3731_v28  ;;  %3880 = sbr.rel (%p4065_p6) target bundleno = 1305 (0x519), region = 48 }
 0x2f4   : > { %v3871_v38 = vadd.f32 %v5193_v33, %v3801_v23 }
 0x2f6   : > { %v3874_v43 = vadd.f32 %v3871_v38, %v241_v36 }
 0x2f8   : > { %3876 = vst.msk [vmem:[#allocation2] sm:$0x3] %vm3875_vm1, %v3874_v43 }
 0x2ff   : > { %v3881_v37 = vld [vmem:[#allocation2] sm:$0x3] }
 0x300   : > { %v3889_v54 = vadd.f32 %v4066_v49, %v3881_v37 }
 0x302   : > { %v3890_v39 = vmax.f32 %v3889_v54, 0.0 }
 0x304   : > { %5217 = vmatmul.mubr.msk.f32.vlgmr.msra.gmra.mrb[0].mxu0 %vm3905_vm4, %v3890_v39 }
 0x3d7   : > { %v3979_v56 = vpop.f32.mrb[0].mxu0 }
 0x3d8   : > { %v3980_v57 = vadd.f32 %v4067_v34, %v3979_v56  ;;  %v5218_v59 = vpop.f32.mrb[1].mxu0 }
 0x3da   : > { %v3984_v60 = vsel %vm3983_vm5, %v3980_v57, -inf }
 0x3db   : > { %3985 = vmax.xlane.f32.xlu0 %v3984_v60 }
 0x468   : > { %v3986_v48 = vpop.xlane.xlu0 %3985 }
 0x469   : > { %v3987_v61 = vsub.f32 %v3980_v57, %v3986_v48 }
 0x46b   : > { %v3988_v6 = vmul.f32 1.442695, %v3987_v61 }
 0x46d   : > { %6288 = vpow2.f32 %v3988_v6 }
 0x477   : > { %v6289_v52 = vpop.eup %6288 }
 0x478   : > { %v3990_v25 = vsel %vm3983_vm5, %v6289_v52, 0.0 }
 0x479   : > { %3991 = vadd.xlane.f32.xlu0 %v3990_v25 }
 0x506   : > { %v3992_v46 = vpop.xlane.xlu0 %3991 }
 0x507   : > { %6290 = vlog2.f32 %v3992_v46 }
 0x511   : > { %v6291_v10 = vpop.eup %6290 }
 0x512   : > { %v3994_v0 = vmul.f32 0.6931472, %v6291_v10 }
 0x514   : > { %v3995_v63 = vadd.f32 %v3994_v0, %v3986_v48 }
 0x516   : > { %v3996_v55 = vsub.f32 %v3980_v57, %v3995_v63 }
 0x518   : > { %3997 = vst.msk [vmem:[#allocation3] sm:$0x3] %vm3983_vm5, %v3996_v55 }
 0x519 PF: > { %p6256_p7 = scmp.eq.s32.totalorder %s6372_s19, 6  ;;  %s6335_s25 = smov [#allocation3]  }
 0x51a   : > { %s4005_s26 = sshll.u32 %s6335_s25, 4  ;;  %s4006_s26 = int_to_ptr.vmem [resolvable:$true] %s4005_s26 }
 0x51b   : > { %s6292_s27 = scalar_lea.vmem %s4006_s26, 32  ;;  %p6299_p11 = scmp.lt.s32.totalorder %s4006_s26, %s4006_s26 }
 0x51c   : > { %p6293_p8 = scmp.ne.s32.totalorder %s4006_s26, %s6292_s27  ;;  %p6300_p12 = scmp.lt.s32.totalorder %s6292_s27, %s6292_s27 }
 0x51e   : > { %p6294_p9 = pnand %p6293_p8, %p6256_p7  ;;  %p6301_p13 = por %p6300_p12, %p6299_p11 }
 0x520   : > { %p6295_p10 = pneg %p6294_p9 }
 0x522   : > { %p6302_p0 = pnand %p6301_p13, %p6295_p10 }
 0x524   : > { %6305 = shalt.err (!%p6302_p0)
}
 0x525   : > { %s6306_s30 = scalar_lea.hbm %s7699_s5, 32 }
 0x526   : > { %p6307_p1 = scmp.ne.s32.totalorder %s7699_s5, %s6306_s30  ;;  %p6312_p4 = scmp.lt.u32.totalorder %s6306_s30, %s7699_s5 }
 0x528   : > { %p6308_p2 = pnand %p6307_p1, %p6256_p7 }
 0x52a   : > { %p6309_p3 = pneg %p6308_p2 }
 0x52c   : > { %p6314_p5 = pnand %p6312_p4, %p6309_p3 }
 0x52e   : > { %6317 = shalt.err (!%p6314_p5)
}
 0x52f   : > { %6253 = dma.vmem_to_hbm [thread:$0]  (%p6256_p7), %s4006_s26, 32, %s7699_s5, [#allocation4]  }
 0x530   : > { %6323 = dma.done.wait (%p6256_p7), [#allocation4], 32  }
 0x531   : > { %6325 = vsyncadd (%p6256_p7), [#allocation4], 4294967264 }
 0x532 PF: > { %s16_s18 = sadd.s32 1, %s6328_s18  }
 0x533   : > { %p13_p6 = scmp.ge.s32.totalorder %s16_s18, 9  }
 0x535   :  { %15 = sbr.rel (!%p13_p6) target bundleno = 1 (0x1), region = 78 }
 0x53c   :  { %4018 = vsyncpa [#allocation4], 1 }
 0x53d   :  { %4020 = vsyncpa [#allocation4 + $0x1], 1 }

</bundles_post_ra>
